<compile_context>
chip_gen: v7x
topology: tpu7x:2x2x1
jax: 0.10.0
libtpu: 0.0.40
codegen_flags: <defaults>
</compile_context>

<pallas_src>
import jax
import jax.numpy as jnp
from jax.experimental import pallas as pl
from jax.experimental.pallas import tpu as pltpu


def _zero_map(nd):
    return lambda i, _nd=nd: (0,) * _nd


# ---------------------------------------------------------------------------
# Fused model kernel: all LSTM layers (both directions) + final Linear.
# ---------------------------------------------------------------------------
def _make_lstm_model_kernel(n_layers):
    def kernel(*refs):
        # refs = x, [wih_pk, b_pk, whh_f, whh_b] * n_layers, w_out, b_out,
        #        out, xgf_sc, xgb_sc, outf_sc, outb_sc
        x_ref = refs[0]
        n_w = 4 * n_layers
        layer_refs = refs[1:1 + n_w]
        wout_ref = refs[1 + n_w]
        bout_ref = refs[2 + n_w]
        out_ref = refs[3 + n_w]
        xgf_sc, xgb_sc, outf_sc, outb_sc = refs[4 + n_w:]

        T, B, D = x_ref.shape
        H = layer_refs[2].shape[0]          # whh_f: (H, 4H)
        G = 4 * H

        for layer in range(n_layers):
            wih_ref, b_ref, whhf_ref, whhb_ref = layer_refs[4 * layer:4 * layer + 4]

            # ---- Input projection for ALL timesteps at once (one fat MXU
            # matmul, fw+bw gates packed along N = 8H). ----
            b_pk = b_ref[...]                                   # (1, 8H)
            if layer == 0:
                flat = x_ref[...].reshape(T * B, D)
                xg = jnp.dot(flat, wih_ref[...],
                             preferred_element_type=jnp.float32) + b_pk
            else:
                # previous layer output = [fw | bw]; split the packed weight
                # rows instead of concatenating activations.
                ff = outf_sc[...].reshape(T * B, H)
                fb = outb_sc[...].reshape(T * B, H)
                xg = (jnp.dot(ff, wih_ref[0:H, :],
                              preferred_element_type=jnp.float32)
                      + jnp.dot(fb, wih_ref[H:2 * H, :],
                                preferred_element_type=jnp.float32)
                      + b_pk)                                   # (T*B, 8H)
            xgf_sc[...] = xg[:, 0:G].reshape(T, B, G)
            xgb_sc[...] = xg[:, G:2 * G].reshape(T, B, G)

            whh_f = whhf_ref[...]                               # (H, 4H)
            whh_b = whhb_ref[...]

            # ---- Recurrence: fw processes t, bw processes T-1-t. ----
            def cell(g, c):
                i = jax.nn.sigmoid(g[:, 0:H])
                f = jax.nn.sigmoid(g[:, H:2 * H])
                gg = jnp.tanh(g[:, 2 * H:3 * H])
                o = jax.nn.sigmoid(g[:, 3 * H:4 * H])
                c_new = f * c + i * gg
                h_new = o * jnp.tanh(c_new)
                return h_new, c_new

            def step(t, carry):
                h_f, c_f, h_b, c_b = carry
                rt = T - 1 - t
                gf = xgf_sc[t] + jnp.dot(h_f, whh_f,
                                         preferred_element_type=jnp.float32)
                gb = xgb_sc[rt] + jnp.dot(h_b, whh_b,
                                          preferred_element_type=jnp.float32)
                hf_new, cf_new = cell(gf, c_f)
                hb_new, cb_new = cell(gb, c_b)
                outf_sc[t] = hf_new
                outb_sc[rt] = hb_new
                return hf_new, cf_new, hb_new, cb_new

            z = jnp.zeros((B, H), jnp.float32)
            jax.lax.fori_loop(0, T, step, (z, z, z, z), unroll=True)

        # ---- Final Linear on lstm_out[:, -1, :] = [h_fw(T-1) | h_bw@pos T-1]
        hf_last = outf_sc[T - 1]                                # (B, H)
        hb_last = outb_sc[T - 1]                                # (B, H)
        y = (jnp.dot(hf_last, wout_ref[0:H, :],
                     preferred_element_type=jnp.float32)
             + jnp.dot(hb_last, wout_ref[H:2 * H, :],
                       preferred_element_type=jnp.float32)
             + bout_ref[...])                                   # (B, 1)
        out_ref[...] = y.astype(out_ref.dtype)

    return kernel


# ---------------------------------------------------------------------------
# Wrapper: packing, batch padding, single pallas_call.
# ---------------------------------------------------------------------------
def lstm_model_forward(x_btd, params):
    B, T, D = x_btd.shape
    H = params["lstm"][0]["fw"]["w_hh"].shape[0]
    n_layers = len(params["lstm"])

    # Pad batch to a multiple of 8 so state/gate tiles are sublane-dense.
    B_pad = max(8, ((B + 7) // 8) * 8)
    x = jnp.transpose(x_btd, (1, 0, 2))                         # (T, B, D)
    if B_pad != B:
        x = jnp.pad(x, ((0, 0), (0, B_pad - B), (0, 0)))

    args = [x]
    in_specs = [pl.BlockSpec((T, B_pad, D), _zero_map(3))]

    for layer in params["lstm"]:
        # Pack fw/bw gate weights along the output dim -> N = 8H (MXU-friendly)
        wih_pk = jnp.concatenate([layer["fw"]["w_ih"], layer["bw"]["w_ih"]],
                                 axis=1)                        # (Din, 8H)
        b_pk = jnp.concatenate([layer["fw"]["b"], layer["bw"]["b"]], axis=1)
        for a in (wih_pk, b_pk, layer["fw"]["w_hh"], layer["bw"]["w_hh"]):
            args.append(a)
            in_specs.append(pl.BlockSpec(a.shape, _zero_map(a.ndim)))
    for a in (params["w_out"], params["b_out"]):
        args.append(a)
        in_specs.append(pl.BlockSpec(a.shape, _zero_map(a.ndim)))

    y = pl.pallas_call(
        _make_lstm_model_kernel(n_layers),
        out_shape=jax.ShapeDtypeStruct((B_pad, 1), jnp.float32),
        grid_spec=pltpu.PrefetchScalarGridSpec(
            num_scalar_prefetch=0,
            grid=(1,),
            in_specs=in_specs,
            out_specs=pl.BlockSpec((B_pad, 1), _zero_map(2)),
            scratch_shapes=[
                pltpu.VMEM((T, B_pad, 4 * H), jnp.float32),   # fw gate preacts
                pltpu.VMEM((T, B_pad, 4 * H), jnp.float32),   # bw gate preacts
                pltpu.VMEM((T, B_pad, H), jnp.float32),       # fw hidden seq
                pltpu.VMEM((T, B_pad, H), jnp.float32),       # bw hidden seq
            ]),
        compiler_params=pltpu.CompilerParams(
            dimension_semantics=("arbitrary",)),
    )(*args)
    return y[:B, 0]                                             # (B,)


# ---------------------------------------------------------------------------
# Pure-JAX reference (lax.scan) for correctness checking.
# ---------------------------------------------------------------------------
def _ref_direction(x_tbd, w_ih, w_hh, b):
    H = w_hh.shape[0]
    B = x_tbd.shape[1]

    def step(carry, x_t):
        h, c = carry
        gates = x_t @ w_ih + h @ w_hh + b
        i = jax.nn.sigmoid(gates[:, :H])
        f = jax.nn.sigmoid(gates[:, H:2 * H])
        g = jnp.tanh(gates[:, 2 * H:3 * H])
        o = jax.nn.sigmoid(gates[:, 3 * H:])
        c = f * c + i * g
        h = o * jnp.tanh(c)
        return (h, c), h

    h0 = jnp.zeros((B, H), jnp.float32)
    _, hs = jax.lax.scan(step, (h0, h0), x_tbd)
    return hs


def _ref_forward(x_btd, params):
    x = jnp.transpose(x_btd, (1, 0, 2))
    for layer in params["lstm"]:
        out_f = _ref_direction(x, layer["fw"]["w_ih"], layer["fw"]["w_hh"],
                               layer["fw"]["b"])
        out_b = _ref_direction(x[::-1], layer["bw"]["w_ih"],
                               layer["bw"]["w_hh"], layer["bw"]["b"])[::-1]
        x = jnp.concatenate([out_f, out_b], axis=-1)
    last = x[-1]
    return jnp.squeeze(last @ params["w_out"] + params["b_out"], axis=-1)


# ---------------------------------------------------------------------------
# Deterministic parameter init (PyTorch-style uniform(-1/sqrt(H), 1/sqrt(H))).
# ---------------------------------------------------------------------------
def init_params(key, embedding_dim, hidden_dim, n_layers):
    H = hidden_dim
    bound = 1.0 / jnp.sqrt(jnp.float32(H))
    layers = []
    d_in = embedding_dim
    for _ in range(n_layers):
        dirs = {}
        for dname in ("fw", "bw"):
            key, k1, k2, k3 = jax.random.split(key, 4)
            dirs[dname] = {
                # stored pre-transposed: (D, 4H) and (H, 4H); bias = b_ih + b_hh
                "w_ih": jax.random.uniform(k1, (d_in, 4 * H), jnp.float32,
                                           -bound, bound),
                "w_hh": jax.random.uniform(k2, (H, 4 * H), jnp.float32,
                                           -bound, bound),
                "b": jax.random.uniform(k3, (1, 4 * H), jnp.float32,
                                        -2 * bound, 2 * bound),
            }
        layers.append(dirs)
        d_in = 2 * H
    key, k1, k2 = jax.random.split(key, 3)
    lin_bound = 1.0 / jnp.sqrt(jnp.float32(2 * H))
    params = {
        "lstm": layers,
        "w_out": jax.random.uniform(k1, (2 * H, 1), jnp.float32,
                                    -lin_bound, lin_bound),
        "b_out": jax.random.uniform(k2, (1, 1), jnp.float32,
                                    -lin_bound, lin_bound),
    }
    return params


if __name__ == "__main__":
    B, T, D, H, N_LAYERS = 2, 8, 32, 32, 2

    key = jax.random.PRNGKey(0)
    key, kx, kp = jax.random.split(key, 3)
    text = jax.random.normal(kx, (B, T, D), jnp.float32)   # (batch, seq, emb)
    params = init_params(kp, D, H, N_LAYERS)

    fwd = jax.jit(lstm_model_forward)
    out = jax.block_until_ready(fwd(text, params))

    ref = jax.block_until_ready(_ref_forward(text, params))
    assert out.shape == (B,), out.shape
    assert jnp.allclose(out, ref, atol=1e-5, rtol=1e-5), (out, ref)

    print("KERNEL_OK")
</pallas_src>

<mosaic_0001>
module attributes {stable_mosaic.version = 11 : i64} {
  func.func @kernel(%arg0: i32, %arg1: memref<8x8x32xf32, #tpu.memory_space<vmem>>, %arg2: memref<32x256xf32, #tpu.memory_space<vmem>>, %arg3: memref<1x256xf32, #tpu.memory_space<vmem>>, %arg4: memref<32x128xf32, #tpu.memory_space<vmem>>, %arg5: memref<32x128xf32, #tpu.memory_space<vmem>>, %arg6: memref<64x256xf32, #tpu.memory_space<vmem>>, %arg7: memref<1x256xf32, #tpu.memory_space<vmem>>, %arg8: memref<32x128xf32, #tpu.memory_space<vmem>>, %arg9: memref<32x128xf32, #tpu.memory_space<vmem>>, %arg10: memref<64x1xf32, #tpu.memory_space<vmem>>, %arg11: memref<1x1xf32, #tpu.memory_space<vmem>>, %arg12: memref<8x1xf32, #tpu.memory_space<vmem>>, %arg13: memref<8x8x128xf32, #tpu.memory_space<vmem>>, %arg14: memref<8x8x128xf32, #tpu.memory_space<vmem>>, %arg15: memref<8x8x32xf32, #tpu.memory_space<vmem>>, %arg16: memref<8x8x32xf32, #tpu.memory_space<vmem>>) attributes {dimension_semantics = [#tpu.dimension_semantics<arbitrary>], iteration_bounds = array<i64: 1>, scalar_prefetch = 0 : i64, scratch_operands = 4 : i64, tpu.core_type = #tpu.core_type<tc>, window_params = [{pipeline_mode = #tpu.pipeline_mode<synchronous>, transform_indices = @transform_0, window_bounds = array<i64: 8, 8, 32>}, {pipeline_mode = #tpu.pipeline_mode<synchronous>, transform_indices = @transform_1, window_bounds = array<i64: 32, 256>}, {pipeline_mode = #tpu.pipeline_mode<synchronous>, transform_indices = @transform_2, window_bounds = array<i64: 1, 256>}, {pipeline_mode = #tpu.pipeline_mode<synchronous>, transform_indices = @transform_3, window_bounds = array<i64: 32, 128>}, {pipeline_mode = #tpu.pipeline_mode<synchronous>, transform_indices = @transform_4, window_bounds = array<i64: 32, 128>}, {pipeline_mode = #tpu.pipeline_mode<synchronous>, transform_indices = @transform_5, window_bounds = array<i64: 64, 256>}, {pipeline_mode = #tpu.pipeline_mode<synchronous>, transform_indices = @transform_6, window_bounds = array<i64: 1, 256>}, {pipeline_mode = #tpu.pipeline_mode<synchronous>, transform_indices = @transform_7, window_bounds = array<i64: 32, 128>}, {pipeline_mode = #tpu.pipeline_mode<synchronous>, transform_indices = @transform_8, window_bounds = array<i64: 32, 128>}, {pipeline_mode = #tpu.pipeline_mode<synchronous>, transform_indices = @transform_9, window_bounds = array<i64: 64, 1>}, {pipeline_mode = #tpu.pipeline_mode<synchronous>, transform_indices = @transform_10, window_bounds = array<i64: 1, 1>}, {pipeline_mode = #tpu.pipeline_mode<synchronous>, transform_indices = @transform_11, window_bounds = array<i64: 8, 1>}]} {
    %c0 = arith.constant 0 : index
    %c0_0 = arith.constant 0 : index
    %0 = vector.load %arg3[%c0, %c0_0] : memref<1x256xf32, #tpu.memory_space<vmem>>, vector<1x256xf32>
    %c0_1 = arith.constant 0 : index
    %c0_2 = arith.constant 0 : index
    %c0_3 = arith.constant 0 : index
    %1 = vector.load %arg1[%c0_1, %c0_2, %c0_3] : memref<8x8x32xf32, #tpu.memory_space<vmem>>, vector<8x8x32xf32>
    %2 = vector.shape_cast %1 : vector<8x8x32xf32> to vector<64x32xf32>
    %c0_4 = arith.constant 0 : index
    %c0_5 = arith.constant 0 : index
    %3 = vector.load %arg2[%c0_4, %c0_5] : memref<32x256xf32, #tpu.memory_space<vmem>>, vector<32x256xf32>
    %cst = arith.constant dense<0.000000e+00> : vector<64x256xf32>
    %4 = tpu.matmul %2, %3, %cst {dimension_numbers = #tpu.dot_dimension_numbers<[1], [0], [0], [1], [0, 0, 1, 1], [], []>} : vector<64x32xf32>, vector<32x256xf32>, vector<64x256xf32> -> vector<64x256xf32>
    %5 = vector.broadcast %0 : vector<1x256xf32> to vector<64x256xf32>
    %6 = arith.addf %4, %5 : vector<64x256xf32>
    %7 = vector.extract_strided_slice %6 {offsets = [0, 0], sizes = [64, 128], strides = [1, 1]} : vector<64x256xf32> to vector<64x128xf32>
    %8 = vector.shape_cast %7 : vector<64x128xf32> to vector<8x8x128xf32>
    %c0_6 = arith.constant 0 : index
    %c0_7 = arith.constant 0 : index
    %c0_8 = arith.constant 0 : index
    %9 = vector.load %arg13[%c0_6, %c0_7, %c0_8] : memref<8x8x128xf32, #tpu.memory_space<vmem>>, vector<8x8x128xf32>
    tpu.vector_store %arg13[%c0_6, %c0_7, %c0_8], %8 {strides = array<i32>} : memref<8x8x128xf32, #tpu.memory_space<vmem>>, vector<8x8x128xf32>,
    %10 = vector.extract_strided_slice %6 {offsets = [0, 128], sizes = [64, 128], strides = [1, 1]} : vector<64x256xf32> to vector<64x128xf32>
    %11 = vector.shape_cast %10 : vector<64x128xf32> to vector<8x8x128xf32>
    %c0_9 = arith.constant 0 : index
    %c0_10 = arith.constant 0 : index
    %c0_11 = arith.constant 0 : index
    %12 = vector.load %arg14[%c0_9, %c0_10, %c0_11] : memref<8x8x128xf32, #tpu.memory_space<vmem>>, vector<8x8x128xf32>
    tpu.vector_store %arg14[%c0_9, %c0_10, %c0_11], %11 {strides = array<i32>} : memref<8x8x128xf32, #tpu.memory_space<vmem>>, vector<8x8x128xf32>,
    %c0_12 = arith.constant 0 : index
    %c0_13 = arith.constant 0 : index
    %13 = vector.load %arg4[%c0_12, %c0_13] : memref<32x128xf32, #tpu.memory_space<vmem>>, vector<32x128xf32>
    %c0_14 = arith.constant 0 : index
    %c0_15 = arith.constant 0 : index
    %14 = vector.load %arg5[%c0_14, %c0_15] : memref<32x128xf32, #tpu.memory_space<vmem>>, vector<32x128xf32>
    %cst_16 = arith.constant 0.000000e+00 : f32
    %15 = vector.broadcast %cst_16 : f32 to vector<8x32xf32>
    %c0_i32 = arith.constant 0 : i32
    %c7_i32 = arith.constant 7 : i32
    %16 = arith.subi %c7_i32, %c0_i32 : i32
    %17 = arith.index_cast %c0_i32 : i32 to index
    %c0_17 = arith.constant 0 : index
    %c0_18 = arith.constant 0 : index
    %18 = vector.load %arg13[%17, %c0_17, %c0_18] : memref<8x8x128xf32, #tpu.memory_space<vmem>>, vector<1x8x128xf32>
    %19 = vector.shape_cast %18 : vector<1x8x128xf32> to vector<8x128xf32>
    %cst_19 = arith.constant dense<0.000000e+00> : vector<8x128xf32>
    %20 = tpu.matmul %15, %13, %cst_19 {dimension_numbers = #tpu.dot_dimension_numbers<[1], [0], [0], [1], [0, 0, 1, 1], [], []>} : vector<8x32xf32>, vector<32x128xf32>, vector<8x128xf32> -> vector<8x128xf32>
    %21 = arith.addf %19, %20 : vector<8x128xf32>
    %22 = arith.index_cast %16 : i32 to index
    %c0_20 = arith.constant 0 : index
    %c0_21 = arith.constant 0 : index
    %23 = vector.load %arg14[%22, %c0_20, %c0_21] : memref<8x8x128xf32, #tpu.memory_space<vmem>>, vector<1x8x128xf32>
    %24 = vector.shape_cast %23 : vector<1x8x128xf32> to vector<8x128xf32>
    %cst_22 = arith.constant dense<0.000000e+00> : vector<8x128xf32>
    %25 = tpu.matmul %15, %14, %cst_22 {dimension_numbers = #tpu.dot_dimension_numbers<[1], [0], [0], [1], [0, 0, 1, 1], [], []>} : vector<8x32xf32>, vector<32x128xf32>, vector<8x128xf32> -> vector<8x128xf32>
    %26 = arith.addf %24, %25 : vector<8x128xf32>
    %27 = vector.extract_strided_slice %21 {offsets = [0, 0], sizes = [8, 32], strides = [1, 1]} : vector<8x128xf32> to vector<8x32xf32>
    %28 = arith.negf %27 : vector<8x32xf32>
    %29 = math.exp %28 : vector<8x32xf32>
    %cst_23 = arith.constant 1.000000e+00 : f32
    %30 = vector.broadcast %cst_23 : f32 to vector<8x32xf32>
    %31 = arith.addf %30, %29 : vector<8x32xf32>
    %32 = arith.divf %30, %31 : vector<8x32xf32>
    %33 = vector.extract_strided_slice %21 {offsets = [0, 32], sizes = [8, 32], strides = [1, 1]} : vector<8x128xf32> to vector<8x32xf32>
    %34 = arith.negf %33 : vector<8x32xf32>
    %35 = math.exp %34 : vector<8x32xf32>
    %cst_24 = arith.constant 1.000000e+00 : f32
    %36 = vector.broadcast %cst_24 : f32 to vector<8x32xf32>
    %37 = arith.addf %36, %35 : vector<8x32xf32>
    %38 = arith.divf %36, %37 : vector<8x32xf32>
    %39 = vector.extract_strided_slice %21 {offsets = [0, 64], sizes = [8, 32], strides = [1, 1]} : vector<8x128xf32> to vector<8x32xf32>
    %40 = math.tanh %39 : vector<8x32xf32>
    %41 = vector.extract_strided_slice %21 {offsets = [0, 96], sizes = [8, 32], strides = [1, 1]} : vector<8x128xf32> to vector<8x32xf32>
    %42 = arith.negf %41 : vector<8x32xf32>
    %43 = math.exp %42 : vector<8x32xf32>
    %cst_25 = arith.constant 1.000000e+00 : f32
    %44 = vector.broadcast %cst_25 : f32 to vector<8x32xf32>
    %45 = arith.addf %44, %43 : vector<8x32xf32>
    %46 = arith.divf %44, %45 : vector<8x32xf32>
    %47 = arith.mulf %38, %15 : vector<8x32xf32>
    %48 = arith.mulf %32, %40 : vector<8x32xf32>
    %49 = arith.addf %47, %48 : vector<8x32xf32>
    %50 = math.tanh %49 : vector<8x32xf32>
    %51 = arith.mulf %46, %50 : vector<8x32xf32>
    %52 = vector.extract_strided_slice %26 {offsets = [0, 0], sizes = [8, 32], strides = [1, 1]} : vector<8x128xf32> to vector<8x32xf32>
    %53 = arith.negf %52 : vector<8x32xf32>
    %54 = math.exp %53 : vector<8x32xf32>
    %cst_26 = arith.constant 1.000000e+00 : f32
    %55 = vector.broadcast %cst_26 : f32 to vector<8x32xf32>
    %56 = arith.addf %55, %54 : vector<8x32xf32>
    %57 = arith.divf %55, %56 : vector<8x32xf32>
    %58 = vector.extract_strided_slice %26 {offsets = [0, 32], sizes = [8, 32], strides = [1, 1]} : vector<8x128xf32> to vector<8x32xf32>
    %59 = arith.negf %58 : vector<8x32xf32>
    %60 = math.exp %59 : vector<8x32xf32>
    %cst_27 = arith.constant 1.000000e+00 : f32
    %61 = vector.broadcast %cst_27 : f32 to vector<8x32xf32>
    %62 = arith.addf %61, %60 : vector<8x32xf32>
    %63 = arith.divf %61, %62 : vector<8x32xf32>
    %64 = vector.extract_strided_slice %26 {offsets = [0, 64], sizes = [8, 32], strides = [1, 1]} : vector<8x128xf32> to vector<8x32xf32>
    %65 = math.tanh %64 : vector<8x32xf32>
    %66 = vector.extract_strided_slice %26 {offsets = [0, 96], sizes = [8, 32], strides = [1, 1]} : vector<8x128xf32> to vector<8x32xf32>
    %67 = arith.negf %66 : vector<8x32xf32>
    %68 = math.exp %67 : vector<8x32xf32>
    %cst_28 = arith.constant 1.000000e+00 : f32
    %69 = vector.broadcast %cst_28 : f32 to vector<8x32xf32>
    %70 = arith.addf %69, %68 : vector<8x32xf32>
    %71 = arith.divf %69, %70 : vector<8x32xf32>
    %72 = arith.mulf %63, %15 : vector<8x32xf32>
    %73 = arith.mulf %57, %65 : vector<8x32xf32>
    %74 = arith.addf %72, %73 : vector<8x32xf32>
    %75 = math.tanh %74 : vector<8x32xf32>
    %76 = arith.mulf %71, %75 : vector<8x32xf32>
    %77 = arith.index_cast %c0_i32 : i32 to index
    %c0_29 = arith.constant 0 : index
    %c0_30 = arith.constant 0 : index
    %78 = vector.load %arg15[%77, %c0_29, %c0_30] : memref<8x8x32xf32, #tpu.memory_space<vmem>>, vector<1x8x32xf32>
    %79 = vector.shape_cast %78 : vector<1x8x32xf32> to vector<8x32xf32>
    %80 = vector.shape_cast %51 : vector<8x32xf32> to vector<1x8x32xf32>
    tpu.vector_store %arg15[%77, %c0_29, %c0_30], %80 {strides = array<i32>} : memref<8x8x32xf32, #tpu.memory_space<vmem>>, vector<1x8x32xf32>,
    %81 = arith.index_cast %16 : i32 to index
    %c0_31 = arith.constant 0 : index
    %c0_32 = arith.constant 0 : index
    %82 = vector.load %arg16[%81, %c0_31, %c0_32] : memref<8x8x32xf32, #tpu.memory_space<vmem>>, vector<1x8x32xf32>
    %83 = vector.shape_cast %82 : vector<1x8x32xf32> to vector<8x32xf32>
    %84 = vector.shape_cast %76 : vector<8x32xf32> to vector<1x8x32xf32>
    tpu.vector_store %arg16[%81, %c0_31, %c0_32], %84 {strides = array<i32>} : memref<8x8x32xf32, #tpu.memory_space<vmem>>, vector<1x8x32xf32>,
    %c1_i32 = arith.constant 1 : i32
    %c7_i32_33 = arith.constant 7 : i32
    %85 = arith.subi %c7_i32_33, %c1_i32 : i32
    %86 = arith.index_cast %c1_i32 : i32 to index
    %c0_34 = arith.constant 0 : index
    %c0_35 = arith.constant 0 : index
    %87 = vector.load %arg13[%86, %c0_34, %c0_35] : memref<8x8x128xf32, #tpu.memory_space<vmem>>, vector<1x8x128xf32>
    %88 = vector.shape_cast %87 : vector<1x8x128xf32> to vector<8x128xf32>
    %cst_36 = arith.constant dense<0.000000e+00> : vector<8x128xf32>
    %89 = tpu.matmul %51, %13, %cst_36 {dimension_numbers = #tpu.dot_dimension_numbers<[1], [0], [0], [1], [0, 0, 1, 1], [], []>} : vector<8x32xf32>, vector<32x128xf32>, vector<8x128xf32> -> vector<8x128xf32>
    %90 = arith.addf %88, %89 : vector<8x128xf32>
    %91 = arith.index_cast %85 : i32 to index
    %c0_37 = arith.constant 0 : index
    %c0_38 = arith.constant 0 : index
    %92 = vector.load %arg14[%91, %c0_37, %c0_38] : memref<8x8x128xf32, #tpu.memory_space<vmem>>, vector<1x8x128xf32>
    %93 = vector.shape_cast %92 : vector<1x8x128xf32> to vector<8x128xf32>
    %cst_39 = arith.constant dense<0.000000e+00> : vector<8x128xf32>
    %94 = tpu.matmul %76, %14, %cst_39 {dimension_numbers = #tpu.dot_dimension_numbers<[1], [0], [0], [1], [0, 0, 1, 1], [], []>} : vector<8x32xf32>, vector<32x128xf32>, vector<8x128xf32> -> vector<8x128xf32>
    %95 = arith.addf %93, %94 : vector<8x128xf32>
    %96 = vector.extract_strided_slice %90 {offsets = [0, 0], sizes = [8, 32], strides = [1, 1]} : vector<8x128xf32> to vector<8x32xf32>
    %97 = arith.negf %96 : vector<8x32xf32>
    %98 = math.exp %97 : vector<8x32xf32>
    %cst_40 = arith.constant 1.000000e+00 : f32
    %99 = vector.broadcast %cst_40 : f32 to vector<8x32xf32>
    %100 = arith.addf %99, %98 : vector<8x32xf32>
    %101 = arith.divf %99, %100 : vector<8x32xf32>
    %102 = vector.extract_strided_slice %90 {offsets = [0, 32], sizes = [8, 32], strides = [1, 1]} : vector<8x128xf32> to vector<8x32xf32>
    %103 = arith.negf %102 : vector<8x32xf32>
    %104 = math.exp %103 : vector<8x32xf32>
    %cst_41 = arith.constant 1.000000e+00 : f32
    %105 = vector.broadcast %cst_41 : f32 to vector<8x32xf32>
    %106 = arith.addf %105, %104 : vector<8x32xf32>
    %107 = arith.divf %105, %106 : vector<8x32xf32>
    %108 = vector.extract_strided_slice %90 {offsets = [0, 64], sizes = [8, 32], strides = [1, 1]} : vector<8x128xf32> to vector<8x32xf32>
    %109 = math.tanh %108 : vector<8x32xf32>
    %110 = vector.extract_strided_slice %90 {offsets = [0, 96], sizes = [8, 32], strides = [1, 1]} : vector<8x128xf32> to vector<8x32xf32>
    %111 = arith.negf %110 : vector<8x32xf32>
    %112 = math.exp %111 : vector<8x32xf32>
    %cst_42 = arith.constant 1.000000e+00 : f32
    %113 = vector.broadcast %cst_42 : f32 to vector<8x32xf32>
    %114 = arith.addf %113, %112 : vector<8x32xf32>
    %115 = arith.divf %113, %114 : vector<8x32xf32>
    %116 = arith.mulf %107, %49 : vector<8x32xf32>
    %117 = arith.mulf %101, %109 : vector<8x32xf32>
    %118 = arith.addf %116, %117 : vector<8x32xf32>
    %119 = math.tanh %118 : vector<8x32xf32>
    %120 = arith.mulf %115, %119 : vector<8x32xf32>
    %121 = vector.extract_strided_slice %95 {offsets = [0, 0], sizes = [8, 32], strides = [1, 1]} : vector<8x128xf32> to vector<8x32xf32>
    %122 = arith.negf %121 : vector<8x32xf32>
    %123 = math.exp %122 : vector<8x32xf32>
    %cst_43 = arith.constant 1.000000e+00 : f32
    %124 = vector.broadcast %cst_43 : f32 to vector<8x32xf32>
    %125 = arith.addf %124, %123 : vector<8x32xf32>
    %126 = arith.divf %124, %125 : vector<8x32xf32>
    %127 = vector.extract_strided_slice %95 {offsets = [0, 32], sizes = [8, 32], strides = [1, 1]} : vector<8x128xf32> to vector<8x32xf32>
    %128 = arith.negf %127 : vector<8x32xf32>
    %129 = math.exp %128 : vector<8x32xf32>
    %cst_44 = arith.constant 1.000000e+00 : f32
    %130 = vector.broadcast %cst_44 : f32 to vector<8x32xf32>
    %131 = arith.addf %130, %129 : vector<8x32xf32>
    %132 = arith.divf %130, %131 : vector<8x32xf32>
    %133 = vector.extract_strided_slice %95 {offsets = [0, 64], sizes = [8, 32], strides = [1, 1]} : vector<8x128xf32> to vector<8x32xf32>
    %134 = math.tanh %133 : vector<8x32xf32>
    %135 = vector.extract_strided_slice %95 {offsets = [0, 96], sizes = [8, 32], strides = [1, 1]} : vector<8x128xf32> to vector<8x32xf32>
    %136 = arith.negf %135 : vector<8x32xf32>
    %137 = math.exp %136 : vector<8x32xf32>
    %cst_45 = arith.constant 1.000000e+00 : f32
    %138 = vector.broadcast %cst_45 : f32 to vector<8x32xf32>
    %139 = arith.addf %138, %137 : vector<8x32xf32>
    %140 = arith.divf %138, %139 : vector<8x32xf32>
    %141 = arith.mulf %132, %74 : vector<8x32xf32>
    %142 = arith.mulf %126, %134 : vector<8x32xf32>
    %143 = arith.addf %141, %142 : vector<8x32xf32>
    %144 = math.tanh %143 : vector<8x32xf32>
    %145 = arith.mulf %140, %144 : vector<8x32xf32>
    %146 = arith.index_cast %c1_i32 : i32 to index
    %c0_46 = arith.constant 0 : index
    %c0_47 = arith.constant 0 : index
    %147 = vector.load %arg15[%146, %c0_46, %c0_47] : memref<8x8x32xf32, #tpu.memory_space<vmem>>, vector<1x8x32xf32>
    %148 = vector.shape_cast %147 : vector<1x8x32xf32> to vector<8x32xf32>
    %149 = vector.shape_cast %120 : vector<8x32xf32> to vector<1x8x32xf32>
    tpu.vector_store %arg15[%146, %c0_46, %c0_47], %149 {strides = array<i32>} : memref<8x8x32xf32, #tpu.memory_space<vmem>>, vector<1x8x32xf32>,
    %150 = arith.index_cast %85 : i32 to index
    %c0_48 = arith.constant 0 : index
    %c0_49 = arith.constant 0 : index
    %151 = vector.load %arg16[%150, %c0_48, %c0_49] : memref<8x8x32xf32, #tpu.memory_space<vmem>>, vector<1x8x32xf32>
    %152 = vector.shape_cast %151 : vector<1x8x32xf32> to vector<8x32xf32>
    %153 = vector.shape_cast %145 : vector<8x32xf32> to vector<1x8x32xf32>
    tpu.vector_store %arg16[%150, %c0_48, %c0_49], %153 {strides = array<i32>} : memref<8x8x32xf32, #tpu.memory_space<vmem>>, vector<1x8x32xf32>,
    %c2_i32 = arith.constant 2 : i32
    %c7_i32_50 = arith.constant 7 : i32
    %154 = arith.subi %c7_i32_50, %c2_i32 : i32
    %155 = arith.index_cast %c2_i32 : i32 to index
    %c0_51 = arith.constant 0 : index
    %c0_52 = arith.constant 0 : index
    %156 = vector.load %arg13[%155, %c0_51, %c0_52] : memref<8x8x128xf32, #tpu.memory_space<vmem>>, vector<1x8x128xf32>
    %157 = vector.shape_cast %156 : vector<1x8x128xf32> to vector<8x128xf32>
    %cst_53 = arith.constant dense<0.000000e+00> : vector<8x128xf32>
    %158 = tpu.matmul %120, %13, %cst_53 {dimension_numbers = #tpu.dot_dimension_numbers<[1], [0], [0], [1], [0, 0, 1, 1], [], []>} : vector<8x32xf32>, vector<32x128xf32>, vector<8x128xf32> -> vector<8x128xf32>
    %159 = arith.addf %157, %158 : vector<8x128xf32>
    %160 = arith.index_cast %154 : i32 to index
    %c0_54 = arith.constant 0 : index
    %c0_55 = arith.constant 0 : index
    %161 = vector.load %arg14[%160, %c0_54, %c0_55] : memref<8x8x128xf32, #tpu.memory_space<vmem>>, vector<1x8x128xf32>
    %162 = vector.shape_cast %161 : vector<1x8x128xf32> to vector<8x128xf32>
    %cst_56 = arith.constant dense<0.000000e+00> : vector<8x128xf32>
    %163 = tpu.matmul %145, %14, %cst_56 {dimension_numbers = #tpu.dot_dimension_numbers<[1], [0], [0], [1], [0, 0, 1, 1], [], []>} : vector<8x32xf32>, vector<32x128xf32>, vector<8x128xf32> -> vector<8x128xf32>
    %164 = arith.addf %162, %163 : vector<8x128xf32>
    %165 = vector.extract_strided_slice %159 {offsets = [0, 0], sizes = [8, 32], strides = [1, 1]} : vector<8x128xf32> to vector<8x32xf32>
    %166 = arith.negf %165 : vector<8x32xf32>
    %167 = math.exp %166 : vector<8x32xf32>
    %cst_57 = arith.constant 1.000000e+00 : f32
    %168 = vector.broadcast %cst_57 : f32 to vector<8x32xf32>
    %169 = arith.addf %168, %167 : vector<8x32xf32>
    %170 = arith.divf %168, %169 : vector<8x32xf32>
    %171 = vector.extract_strided_slice %159 {offsets = [0, 32], sizes = [8, 32], strides = [1, 1]} : vector<8x128xf32> to vector<8x32xf32>
    %172 = arith.negf %171 : vector<8x32xf32>
    %173 = math.exp %172 : vector<8x32xf32>
    %cst_58 = arith.constant 1.000000e+00 : f32
    %174 = vector.broadcast %cst_58 : f32 to vector<8x32xf32>
    %175 = arith.addf %174, %173 : vector<8x32xf32>
    %176 = arith.divf %174, %175 : vector<8x32xf32>
    %177 = vector.extract_strided_slice %159 {offsets = [0, 64], sizes = [8, 32], strides = [1, 1]} : vector<8x128xf32> to vector<8x32xf32>
    %178 = math.tanh %177 : vector<8x32xf32>
    %179 = vector.extract_strided_slice %159 {offsets = [0, 96], sizes = [8, 32], strides = [1, 1]} : vector<8x128xf32> to vector<8x32xf32>
    %180 = arith.negf %179 : vector<8x32xf32>
    %181 = math.exp %180 : vector<8x32xf32>
    %cst_59 = arith.constant 1.000000e+00 : f32
    %182 = vector.broadcast %cst_59 : f32 to vector<8x32xf32>
    %183 = arith.addf %182, %181 : vector<8x32xf32>
    %184 = arith.divf %182, %183 : vector<8x32xf32>
    %185 = arith.mulf %176, %118 : vector<8x32xf32>
    %186 = arith.mulf %170, %178 : vector<8x32xf32>
    %187 = arith.addf %185, %186 : vector<8x32xf32>
    %188 = math.tanh %187 : vector<8x32xf32>
    %189 = arith.mulf %184, %188 : vector<8x32xf32>
    %190 = vector.extract_strided_slice %164 {offsets = [0, 0], sizes = [8, 32], strides = [1, 1]} : vector<8x128xf32> to vector<8x32xf32>
    %191 = arith.negf %190 : vector<8x32xf32>
    %192 = math.exp %191 : vector<8x32xf32>
    %cst_60 = arith.constant 1.000000e+00 : f32
    %193 = vector.broadcast %cst_60 : f32 to vector<8x32xf32>
    %194 = arith.addf %193, %192 : vector<8x32xf32>
    %195 = arith.divf %193, %194 : vector<8x32xf32>
    %196 = vector.extract_strided_slice %164 {offsets = [0, 32], sizes = [8, 32], strides = [1, 1]} : vector<8x128xf32> to vector<8x32xf32>
    %197 = arith.negf %196 : vector<8x32xf32>
    %198 = math.exp %197 : vector<8x32xf32>
    %cst_61 = arith.constant 1.000000e+00 : f32
    %199 = vector.broadcast %cst_61 : f32 to vector<8x32xf32>
    %200 = arith.addf %199, %198 : vector<8x32xf32>
    %201 = arith.divf %199, %200 : vector<8x32xf32>
    %202 = vector.extract_strided_slice %164 {offsets = [0, 64], sizes = [8, 32], strides = [1, 1]} : vector<8x128xf32> to vector<8x32xf32>
    %203 = math.tanh %202 : vector<8x32xf32>
    %204 = vector.extract_strided_slice %164 {offsets = [0, 96], sizes = [8, 32], strides = [1, 1]} : vector<8x128xf32> to vector<8x32xf32>
    %205 = arith.negf %204 : vector<8x32xf32>
    %206 = math.exp %205 : vector<8x32xf32>
    %cst_62 = arith.constant 1.000000e+00 : f32
    %207 = vector.broadcast %cst_62 : f32 to vector<8x32xf32>
    %208 = arith.addf %207, %206 : vector<8x32xf32>
    %209 = arith.divf %207, %208 : vector<8x32xf32>
    %210 = arith.mulf %201, %143 : vector<8x32xf32>
    %211 = arith.mulf %195, %203 : vector<8x32xf32>
    %212 = arith.addf %210, %211 : vector<8x32xf32>
    %213 = math.tanh %212 : vector<8x32xf32>
    %214 = arith.mulf %209, %213 : vector<8x32xf32>
    %215 = arith.index_cast %c2_i32 : i32 to index
    %c0_63 = arith.constant 0 : index
    %c0_64 = arith.constant 0 : index
    %216 = vector.load %arg15[%215, %c0_63, %c0_64] : memref<8x8x32xf32, #tpu.memory_space<vmem>>, vector<1x8x32xf32>
    %217 = vector.shape_cast %216 : vector<1x8x32xf32> to vector<8x32xf32>
    %218 = vector.shape_cast %189 : vector<8x32xf32> to vector<1x8x32xf32>
    tpu.vector_store %arg15[%215, %c0_63, %c0_64], %218 {strides = array<i32>} : memref<8x8x32xf32, #tpu.memory_space<vmem>>, vector<1x8x32xf32>,
    %219 = arith.index_cast %154 : i32 to index
    %c0_65 = arith.constant 0 : index
    %c0_66 = arith.constant 0 : index
    %220 = vector.load %arg16[%219, %c0_65, %c0_66] : memref<8x8x32xf32, #tpu.memory_space<vmem>>, vector<1x8x32xf32>
    %221 = vector.shape_cast %220 : vector<1x8x32xf32> to vector<8x32xf32>
    %222 = vector.shape_cast %214 : vector<8x32xf32> to vector<1x8x32xf32>
    tpu.vector_store %arg16[%219, %c0_65, %c0_66], %222 {strides = array<i32>} : memref<8x8x32xf32, #tpu.memory_space<vmem>>, vector<1x8x32xf32>,
    %c3_i32 = arith.constant 3 : i32
    %c7_i32_67 = arith.constant 7 : i32
    %223 = arith.subi %c7_i32_67, %c3_i32 : i32
    %224 = arith.index_cast %c3_i32 : i32 to index
    %c0_68 = arith.constant 0 : index
    %c0_69 = arith.constant 0 : index
    %225 = vector.load %arg13[%224, %c0_68, %c0_69] : memref<8x8x128xf32, #tpu.memory_space<vmem>>, vector<1x8x128xf32>
    %226 = vector.shape_cast %225 : vector<1x8x128xf32> to vector<8x128xf32>
    %cst_70 = arith.constant dense<0.000000e+00> : vector<8x128xf32>
    %227 = tpu.matmul %189, %13, %cst_70 {dimension_numbers = #tpu.dot_dimension_numbers<[1], [0], [0], [1], [0, 0, 1, 1], [], []>} : vector<8x32xf32>, vector<32x128xf32>, vector<8x128xf32> -> vector<8x128xf32>
    %228 = arith.addf %226, %227 : vector<8x128xf32>
    %229 = arith.index_cast %223 : i32 to index
    %c0_71 = arith.constant 0 : index
    %c0_72 = arith.constant 0 : index
    %230 = vector.load %arg14[%229, %c0_71, %c0_72] : memref<8x8x128xf32, #tpu.memory_space<vmem>>, vector<1x8x128xf32>
    %231 = vector.shape_cast %230 : vector<1x8x128xf32> to vector<8x128xf32>
    %cst_73 = arith.constant dense<0.000000e+00> : vector<8x128xf32>
    %232 = tpu.matmul %214, %14, %cst_73 {dimension_numbers = #tpu.dot_dimension_numbers<[1], [0], [0], [1], [0, 0, 1, 1], [], []>} : vector<8x32xf32>, vector<32x128xf32>, vector<8x128xf32> -> vector<8x128xf32>
    %233 = arith.addf %231, %232 : vector<8x128xf32>
    %234 = vector.extract_strided_slice %228 {offsets = [0, 0], sizes = [8, 32], strides = [1, 1]} : vector<8x128xf32> to vector<8x32xf32>
    %235 = arith.negf %234 : vector<8x32xf32>
    %236 = math.exp %235 : vector<8x32xf32>
    %cst_74 = arith.constant 1.000000e+00 : f32
    %237 = vector.broadcast %cst_74 : f32 to vector<8x32xf32>
    %238 = arith.addf %237, %236 : vector<8x32xf32>
    %239 = arith.divf %237, %238 : vector<8x32xf32>
    %240 = vector.extract_strided_slice %228 {offsets = [0, 32], sizes = [8, 32], strides = [1, 1]} : vector<8x128xf32> to vector<8x32xf32>
    %241 = arith.negf %240 : vector<8x32xf32>
    %242 = math.exp %241 : vector<8x32xf32>
    %cst_75 = arith.constant 1.000000e+00 : f32
    %243 = vector.broadcast %cst_75 : f32 to vector<8x32xf32>
    %244 = arith.addf %243, %242 : vector<8x32xf32>
    %245 = arith.divf %243, %244 : vector<8x32xf32>
    %246 = vector.extract_strided_slice %228 {offsets = [0, 64], sizes = [8, 32], strides = [1, 1]} : vector<8x128xf32> to vector<8x32xf32>
    %247 = math.tanh %246 : vector<8x32xf32>
    %248 = vector.extract_strided_slice %228 {offsets = [0, 96], sizes = [8, 32], strides = [1, 1]} : vector<8x128xf32> to vector<8x32xf32>
    %249 = arith.negf %248 : vector<8x32xf32>
    %250 = math.exp %249 : vector<8x32xf32>
    %cst_76 = arith.constant 1.000000e+00 : f32
    %251 = vector.broadcast %cst_76 : f32 to vector<8x32xf32>
    %252 = arith.addf %251, %250 : vector<8x32xf32>
    %253 = arith.divf %251, %252 : vector<8x32xf32>
    %254 = arith.mulf %245, %187 : vector<8x32xf32>
    %255 = arith.mulf %239, %247 : vector<8x32xf32>
    %256 = arith.addf %254, %255 : vector<8x32xf32>
    %257 = math.tanh %256 : vector<8x32xf32>
    %258 = arith.mulf %253, %257 : vector<8x32xf32>
    %259 = vector.extract_strided_slice %233 {offsets = [0, 0], sizes = [8, 32], strides = [1, 1]} : vector<8x128xf32> to vector<8x32xf32>
    %260 = arith.negf %259 : vector<8x32xf32>
    %261 = math.exp %260 : vector<8x32xf32>
    %cst_77 = arith.constant 1.000000e+00 : f32
    %262 = vector.broadcast %cst_77 : f32 to vector<8x32xf32>
    %263 = arith.addf %262, %261 : vector<8x32xf32>
    %264 = arith.divf %262, %263 : vector<8x32xf32>
    %265 = vector.extract_strided_slice %233 {offsets = [0, 32], sizes = [8, 32], strides = [1, 1]} : vector<8x128xf32> to vector<8x32xf32>
    %266 = arith.negf %265 : vector<8x32xf32>
    %267 = math.exp %266 : vector<8x32xf32>
    %cst_78 = arith.constant 1.000000e+00 : f32
    %268 = vector.broadcast %cst_78 : f32 to vector<8x32xf32>
    %269 = arith.addf %268, %267 : vector<8x32xf32>
    %270 = arith.divf %268, %269 : vector<8x32xf32>
    %271 = vector.extract_strided_slice %233 {offsets = [0, 64], sizes = [8, 32], strides = [1, 1]} : vector<8x128xf32> to vector<8x32xf32>
    %272 = math.tanh %271 : vector<8x32xf32>
    %273 = vector.extract_strided_slice %233 {offsets = [0, 96], sizes = [8, 32], strides = [1, 1]} : vector<8x128xf32> to vector<8x32xf32>
    %274 = arith.negf %273 : vector<8x32xf32>
    %275 = math.exp %274 : vector<8x32xf32>
    %cst_79 = arith.constant 1.000000e+00 : f32
    %276 = vector.broadcast %cst_79 : f32 to vector<8x32xf32>
    %277 = arith.addf %276, %275 : vector<8x32xf32>
    %278 = arith.divf %276, %277 : vector<8x32xf32>
    %279 = arith.mulf %270, %212 : vector<8x32xf32>
    %280 = arith.mulf %264, %272 : vector<8x32xf32>
    %281 = arith.addf %279, %280 : vector<8x32xf32>
    %282 = math.tanh %281 : vector<8x32xf32>
    %283 = arith.mulf %278, %282 : vector<8x32xf32>
    %284 = arith.index_cast %c3_i32 : i32 to index
    %c0_80 = arith.constant 0 : index
    %c0_81 = arith.constant 0 : index
    %285 = vector.load %arg15[%284, %c0_80, %c0_81] : memref<8x8x32xf32, #tpu.memory_space<vmem>>, vector<1x8x32xf32>
    %286 = vector.shape_cast %285 : vector<1x8x32xf32> to vector<8x32xf32>
    %287 = vector.shape_cast %258 : vector<8x32xf32> to vector<1x8x32xf32>
    tpu.vector_store %arg15[%284, %c0_80, %c0_81], %287 {strides = array<i32>} : memref<8x8x32xf32, #tpu.memory_space<vmem>>, vector<1x8x32xf32>,
    %288 = arith.index_cast %223 : i32 to index
    %c0_82 = arith.constant 0 : index
    %c0_83 = arith.constant 0 : index
    %289 = vector.load %arg16[%288, %c0_82, %c0_83] : memref<8x8x32xf32, #tpu.memory_space<vmem>>, vector<1x8x32xf32>
    %290 = vector.shape_cast %289 : vector<1x8x32xf32> to vector<8x32xf32>
    %291 = vector.shape_cast %283 : vector<8x32xf32> to vector<1x8x32xf32>
    tpu.vector_store %arg16[%288, %c0_82, %c0_83], %291 {strides = array<i32>} : memref<8x8x32xf32, #tpu.memory_space<vmem>>, vector<1x8x32xf32>,
    %c4_i32 = arith.constant 4 : i32
    %c7_i32_84 = arith.constant 7 : i32
    %292 = arith.subi %c7_i32_84, %c4_i32 : i32
    %293 = arith.index_cast %c4_i32 : i32 to index
    %c0_85 = arith.constant 0 : index
    %c0_86 = arith.constant 0 : index
    %294 = vector.load %arg13[%293, %c0_85, %c0_86] : memref<8x8x128xf32, #tpu.memory_space<vmem>>, vector<1x8x128xf32>
    %295 = vector.shape_cast %294 : vector<1x8x128xf32> to vector<8x128xf32>
    %cst_87 = arith.constant dense<0.000000e+00> : vector<8x128xf32>
    %296 = tpu.matmul %258, %13, %cst_87 {dimension_numbers = #tpu.dot_dimension_numbers<[1], [0], [0], [1], [0, 0, 1, 1], [], []>} : vector<8x32xf32>, vector<32x128xf32>, vector<8x128xf32> -> vector<8x128xf32>
    %297 = arith.addf %295, %296 : vector<8x128xf32>
    %298 = arith.index_cast %292 : i32 to index
    %c0_88 = arith.constant 0 : index
    %c0_89 = arith.constant 0 : index
    %299 = vector.load %arg14[%298, %c0_88, %c0_89] : memref<8x8x128xf32, #tpu.memory_space<vmem>>, vector<1x8x128xf32>
    %300 = vector.shape_cast %299 : vector<1x8x128xf32> to vector<8x128xf32>
    %cst_90 = arith.constant dense<0.000000e+00> : vector<8x128xf32>
    %301 = tpu.matmul %283, %14, %cst_90 {dimension_numbers = #tpu.dot_dimension_numbers<[1], [0], [0], [1], [0, 0, 1, 1], [], []>} : vector<8x32xf32>, vector<32x128xf32>, vector<8x128xf32> -> vector<8x128xf32>
    %302 = arith.addf %300, %301 : vector<8x128xf32>
    %303 = vector.extract_strided_slice %297 {offsets = [0, 0], sizes = [8, 32], strides = [1, 1]} : vector<8x128xf32> to vector<8x32xf32>
    %304 = arith.negf %303 : vector<8x32xf32>
    %305 = math.exp %304 : vector<8x32xf32>
    %cst_91 = arith.constant 1.000000e+00 : f32
    %306 = vector.broadcast %cst_91 : f32 to vector<8x32xf32>
    %307 = arith.addf %306, %305 : vector<8x32xf32>
    %308 = arith.divf %306, %307 : vector<8x32xf32>
    %309 = vector.extract_strided_slice %297 {offsets = [0, 32], sizes = [8, 32], strides = [1, 1]} : vector<8x128xf32> to vector<8x32xf32>
    %310 = arith.negf %309 : vector<8x32xf32>
    %311 = math.exp %310 : vector<8x32xf32>
    %cst_92 = arith.constant 1.000000e+00 : f32
    %312 = vector.broadcast %cst_92 : f32 to vector<8x32xf32>
    %313 = arith.addf %312, %311 : vector<8x32xf32>
    %314 = arith.divf %312, %313 : vector<8x32xf32>
    %315 = vector.extract_strided_slice %297 {offsets = [0, 64], sizes = [8, 32], strides = [1, 1]} : vector<8x128xf32> to vector<8x32xf32>
    %316 = math.tanh %315 : vector<8x32xf32>
    %317 = vector.extract_strided_slice %297 {offsets = [0, 96], sizes = [8, 32], strides = [1, 1]} : vector<8x128xf32> to vector<8x32xf32>
    %318 = arith.negf %317 : vector<8x32xf32>
    %319 = math.exp %318 : vector<8x32xf32>
    %cst_93 = arith.constant 1.000000e+00 : f32
    %320 = vector.broadcast %cst_93 : f32 to vector<8x32xf32>
    %321 = arith.addf %320, %319 : vector<8x32xf32>
    %322 = arith.divf %320, %321 : vector<8x32xf32>
    %323 = arith.mulf %314, %256 : vector<8x32xf32>
    %324 = arith.mulf %308, %316 : vector<8x32xf32>
    %325 = arith.addf %323, %324 : vector<8x32xf32>
    %326 = math.tanh %325 : vector<8x32xf32>
    %327 = arith.mulf %322, %326 : vector<8x32xf32>
    %328 = vector.extract_strided_slice %302 {offsets = [0, 0], sizes = [8, 32], strides = [1, 1]} : vector<8x128xf32> to vector<8x32xf32>
    %329 = arith.negf %328 : vector<8x32xf32>
    %330 = math.exp %329 : vector<8x32xf32>
    %cst_94 = arith.constant 1.000000e+00 : f32
    %331 = vector.broadcast %cst_94 : f32 to vector<8x32xf32>
    %332 = arith.addf %331, %330 : vector<8x32xf32>
    %333 = arith.divf %331, %332 : vector<8x32xf32>
    %334 = vector.extract_strided_slice %302 {offsets = [0, 32], sizes = [8, 32], strides = [1, 1]} : vector<8x128xf32> to vector<8x32xf32>
    %335 = arith.negf %334 : vector<8x32xf32>
    %336 = math.exp %335 : vector<8x32xf32>
    %cst_95 = arith.constant 1.000000e+00 : f32
    %337 = vector.broadcast %cst_95 : f32 to vector<8x32xf32>
    %338 = arith.addf %337, %336 : vector<8x32xf32>
    %339 = arith.divf %337, %338 : vector<8x32xf32>
    %340 = vector.extract_strided_slice %302 {offsets = [0, 64], sizes = [8, 32], strides = [1, 1]} : vector<8x128xf32> to vector<8x32xf32>
    %341 = math.tanh %340 : vector<8x32xf32>
    %342 = vector.extract_strided_slice %302 {offsets = [0, 96], sizes = [8, 32], strides = [1, 1]} : vector<8x128xf32> to vector<8x32xf32>
    %343 = arith.negf %342 : vector<8x32xf32>
    %344 = math.exp %343 : vector<8x32xf32>
    %cst_96 = arith.constant 1.000000e+00 : f32
    %345 = vector.broadcast %cst_96 : f32 to vector<8x32xf32>
    %346 = arith.addf %345, %344 : vector<8x32xf32>
    %347 = arith.divf %345, %346 : vector<8x32xf32>
    %348 = arith.mulf %339, %281 : vector<8x32xf32>
    %349 = arith.mulf %333, %341 : vector<8x32xf32>
    %350 = arith.addf %348, %349 : vector<8x32xf32>
    %351 = math.tanh %350 : vector<8x32xf32>
    %352 = arith.mulf %347, %351 : vector<8x32xf32>
    %353 = arith.index_cast %c4_i32 : i32 to index
    %c0_97 = arith.constant 0 : index
    %c0_98 = arith.constant 0 : index
    %354 = vector.load %arg15[%353, %c0_97, %c0_98] : memref<8x8x32xf32, #tpu.memory_space<vmem>>, vector<1x8x32xf32>
    %355 = vector.shape_cast %354 : vector<1x8x32xf32> to vector<8x32xf32>
    %356 = vector.shape_cast %327 : vector<8x32xf32> to vector<1x8x32xf32>
    tpu.vector_store %arg15[%353, %c0_97, %c0_98], %356 {strides = array<i32>} : memref<8x8x32xf32, #tpu.memory_space<vmem>>, vector<1x8x32xf32>,
    %357 = arith.index_cast %292 : i32 to index
    %c0_99 = arith.constant 0 : index
    %c0_100 = arith.constant 0 : index
    %358 = vector.load %arg16[%357, %c0_99, %c0_100] : memref<8x8x32xf32, #tpu.memory_space<vmem>>, vector<1x8x32xf32>
    %359 = vector.shape_cast %358 : vector<1x8x32xf32> to vector<8x32xf32>
    %360 = vector.shape_cast %352 : vector<8x32xf32> to vector<1x8x32xf32>
    tpu.vector_store %arg16[%357, %c0_99, %c0_100], %360 {strides = array<i32>} : memref<8x8x32xf32, #tpu.memory_space<vmem>>, vector<1x8x32xf32>,
    %c5_i32 = arith.constant 5 : i32
    %c7_i32_101 = arith.constant 7 : i32
    %361 = arith.subi %c7_i32_101, %c5_i32 : i32
    %362 = arith.index_cast %c5_i32 : i32 to index
    %c0_102 = arith.constant 0 : index
    %c0_103 = arith.constant 0 : index
    %363 = vector.load %arg13[%362, %c0_102, %c0_103] : memref<8x8x128xf32, #tpu.memory_space<vmem>>, vector<1x8x128xf32>
    %364 = vector.shape_cast %363 : vector<1x8x128xf32> to vector<8x128xf32>
    %cst_104 = arith.constant dense<0.000000e+00> : vector<8x128xf32>
    %365 = tpu.matmul %327, %13, %cst_104 {dimension_numbers = #tpu.dot_dimension_numbers<[1], [0], [0], [1], [0, 0, 1, 1], [], []>} : vector<8x32xf32>, vector<32x128xf32>, vector<8x128xf32> -> vector<8x128xf32>
    %366 = arith.addf %364, %365 : vector<8x128xf32>
    %367 = arith.index_cast %361 : i32 to index
    %c0_105 = arith.constant 0 : index
    %c0_106 = arith.constant 0 : index
    %368 = vector.load %arg14[%367, %c0_105, %c0_106] : memref<8x8x128xf32, #tpu.memory_space<vmem>>, vector<1x8x128xf32>
    %369 = vector.shape_cast %368 : vector<1x8x128xf32> to vector<8x128xf32>
    %cst_107 = arith.constant dense<0.000000e+00> : vector<8x128xf32>
    %370 = tpu.matmul %352, %14, %cst_107 {dimension_numbers = #tpu.dot_dimension_numbers<[1], [0], [0], [1], [0, 0, 1, 1], [], []>} : vector<8x32xf32>, vector<32x128xf32>, vector<8x128xf32> -> vector<8x128xf32>
    %371 = arith.addf %369, %370 : vector<8x128xf32>
    %372 = vector.extract_strided_slice %366 {offsets = [0, 0], sizes = [8, 32], strides = [1, 1]} : vector<8x128xf32> to vector<8x32xf32>
    %373 = arith.negf %372 : vector<8x32xf32>
    %374 = math.exp %373 : vector<8x32xf32>
    %cst_108 = arith.constant 1.000000e+00 : f32
    %375 = vector.broadcast %cst_108 : f32 to vector<8x32xf32>
    %376 = arith.addf %375, %374 : vector<8x32xf32>
    %377 = arith.divf %375, %376 : vector<8x32xf32>
    %378 = vector.extract_strided_slice %366 {offsets = [0, 32], sizes = [8, 32], strides = [1, 1]} : vector<8x128xf32> to vector<8x32xf32>
    %379 = arith.negf %378 : vector<8x32xf32>
    %380 = math.exp %379 : vector<8x32xf32>
    %cst_109 = arith.constant 1.000000e+00 : f32
    %381 = vector.broadcast %cst_109 : f32 to vector<8x32xf32>
    %382 = arith.addf %381, %380 : vector<8x32xf32>
    %383 = arith.divf %381, %382 : vector<8x32xf32>
    %384 = vector.extract_strided_slice %366 {offsets = [0, 64], sizes = [8, 32], strides = [1, 1]} : vector<8x128xf32> to vector<8x32xf32>
    %385 = math.tanh %384 : vector<8x32xf32>
    %386 = vector.extract_strided_slice %366 {offsets = [0, 96], sizes = [8, 32], strides = [1, 1]} : vector<8x128xf32> to vector<8x32xf32>
    %387 = arith.negf %386 : vector<8x32xf32>
    %388 = math.exp %387 : vector<8x32xf32>
    %cst_110 = arith.constant 1.000000e+00 : f32
    %389 = vector.broadcast %cst_110 : f32 to vector<8x32xf32>
    %390 = arith.addf %389, %388 : vector<8x32xf32>
    %391 = arith.divf %389, %390 : vector<8x32xf32>
    %392 = arith.mulf %383, %325 : vector<8x32xf32>
    %393 = arith.mulf %377, %385 : vector<8x32xf32>
    %394 = arith.addf %392, %393 : vector<8x32xf32>
    %395 = math.tanh %394 : vector<8x32xf32>
    %396 = arith.mulf %391, %395 : vector<8x32xf32>
    %397 = vector.extract_strided_slice %371 {offsets = [0, 0], sizes = [8, 32], strides = [1, 1]} : vector<8x128xf32> to vector<8x32xf32>
    %398 = arith.negf %397 : vector<8x32xf32>
    %399 = math.exp %398 : vector<8x32xf32>
    %cst_111 = arith.constant 1.000000e+00 : f32
    %400 = vector.broadcast %cst_111 : f32 to vector<8x32xf32>
    %401 = arith.addf %400, %399 : vector<8x32xf32>
    %402 = arith.divf %400, %401 : vector<8x32xf32>
    %403 = vector.extract_strided_slice %371 {offsets = [0, 32], sizes = [8, 32], strides = [1, 1]} : vector<8x128xf32> to vector<8x32xf32>
    %404 = arith.negf %403 : vector<8x32xf32>
    %405 = math.exp %404 : vector<8x32xf32>
    %cst_112 = arith.constant 1.000000e+00 : f32
    %406 = vector.broadcast %cst_112 : f32 to vector<8x32xf32>
    %407 = arith.addf %406, %405 : vector<8x32xf32>
    %408 = arith.divf %406, %407 : vector<8x32xf32>
    %409 = vector.extract_strided_slice %371 {offsets = [0, 64], sizes = [8, 32], strides = [1, 1]} : vector<8x128xf32> to vector<8x32xf32>
    %410 = math.tanh %409 : vector<8x32xf32>
    %411 = vector.extract_strided_slice %371 {offsets = [0, 96], sizes = [8, 32], strides = [1, 1]} : vector<8x128xf32> to vector<8x32xf32>
    %412 = arith.negf %411 : vector<8x32xf32>
    %413 = math.exp %412 : vector<8x32xf32>
    %cst_113 = arith.constant 1.000000e+00 : f32
    %414 = vector.broadcast %cst_113 : f32 to vector<8x32xf32>
    %415 = arith.addf %414, %413 : vector<8x32xf32>
    %416 = arith.divf %414, %415 : vector<8x32xf32>
    %417 = arith.mulf %408, %350 : vector<8x32xf32>
    %418 = arith.mulf %402, %410 : vector<8x32xf32>
    %419 = arith.addf %417, %418 : vector<8x32xf32>
    %420 = math.tanh %419 : vector<8x32xf32>
    %421 = arith.mulf %416, %420 : vector<8x32xf32>
    %422 = arith.index_cast %c5_i32 : i32 to index
    %c0_114 = arith.constant 0 : index
    %c0_115 = arith.constant 0 : index
    %423 = vector.load %arg15[%422, %c0_114, %c0_115] : memref<8x8x32xf32, #tpu.memory_space<vmem>>, vector<1x8x32xf32>
    %424 = vector.shape_cast %423 : vector<1x8x32xf32> to vector<8x32xf32>
    %425 = vector.shape_cast %396 : vector<8x32xf32> to vector<1x8x32xf32>
    tpu.vector_store %arg15[%422, %c0_114, %c0_115], %425 {strides = array<i32>} : memref<8x8x32xf32, #tpu.memory_space<vmem>>, vector<1x8x32xf32>,
    %426 = arith.index_cast %361 : i32 to index
    %c0_116 = arith.constant 0 : index
    %c0_117 = arith.constant 0 : index
    %427 = vector.load %arg16[%426, %c0_116, %c0_117] : memref<8x8x32xf32, #tpu.memory_space<vmem>>, vector<1x8x32xf32>
    %428 = vector.shape_cast %427 : vector<1x8x32xf32> to vector<8x32xf32>
    %429 = vector.shape_cast %421 : vector<8x32xf32> to vector<1x8x32xf32>
    tpu.vector_store %arg16[%426, %c0_116, %c0_117], %429 {strides = array<i32>} : memref<8x8x32xf32, #tpu.memory_space<vmem>>, vector<1x8x32xf32>,
    %c6_i32 = arith.constant 6 : i32
    %c7_i32_118 = arith.constant 7 : i32
    %430 = arith.subi %c7_i32_118, %c6_i32 : i32
    %431 = arith.index_cast %c6_i32 : i32 to index
    %c0_119 = arith.constant 0 : index
    %c0_120 = arith.constant 0 : index
    %432 = vector.load %arg13[%431, %c0_119, %c0_120] : memref<8x8x128xf32, #tpu.memory_space<vmem>>, vector<1x8x128xf32>
    %433 = vector.shape_cast %432 : vector<1x8x128xf32> to vector<8x128xf32>
    %cst_121 = arith.constant dense<0.000000e+00> : vector<8x128xf32>
    %434 = tpu.matmul %396, %13, %cst_121 {dimension_numbers = #tpu.dot_dimension_numbers<[1], [0], [0], [1], [0, 0, 1, 1], [], []>} : vector<8x32xf32>, vector<32x128xf32>, vector<8x128xf32> -> vector<8x128xf32>
    %435 = arith.addf %433, %434 : vector<8x128xf32>
    %436 = arith.index_cast %430 : i32 to index
    %c0_122 = arith.constant 0 : index
    %c0_123 = arith.constant 0 : index
    %437 = vector.load %arg14[%436, %c0_122, %c0_123] : memref<8x8x128xf32, #tpu.memory_space<vmem>>, vector<1x8x128xf32>
    %438 = vector.shape_cast %437 : vector<1x8x128xf32> to vector<8x128xf32>
    %cst_124 = arith.constant dense<0.000000e+00> : vector<8x128xf32>
    %439 = tpu.matmul %421, %14, %cst_124 {dimension_numbers = #tpu.dot_dimension_numbers<[1], [0], [0], [1], [0, 0, 1, 1], [], []>} : vector<8x32xf32>, vector<32x128xf32>, vector<8x128xf32> -> vector<8x128xf32>
    %440 = arith.addf %438, %439 : vector<8x128xf32>
    %441 = vector.extract_strided_slice %435 {offsets = [0, 0], sizes = [8, 32], strides = [1, 1]} : vector<8x128xf32> to vector<8x32xf32>
    %442 = arith.negf %441 : vector<8x32xf32>
    %443 = math.exp %442 : vector<8x32xf32>
    %cst_125 = arith.constant 1.000000e+00 : f32
    %444 = vector.broadcast %cst_125 : f32 to vector<8x32xf32>
    %445 = arith.addf %444, %443 : vector<8x32xf32>
    %446 = arith.divf %444, %445 : vector<8x32xf32>
    %447 = vector.extract_strided_slice %435 {offsets = [0, 32], sizes = [8, 32], strides = [1, 1]} : vector<8x128xf32> to vector<8x32xf32>
    %448 = arith.negf %447 : vector<8x32xf32>
    %449 = math.exp %448 : vector<8x32xf32>
    %cst_126 = arith.constant 1.000000e+00 : f32
    %450 = vector.broadcast %cst_126 : f32 to vector<8x32xf32>
    %451 = arith.addf %450, %449 : vector<8x32xf32>
    %452 = arith.divf %450, %451 : vector<8x32xf32>
    %453 = vector.extract_strided_slice %435 {offsets = [0, 64], sizes = [8, 32], strides = [1, 1]} : vector<8x128xf32> to vector<8x32xf32>
    %454 = math.tanh %453 : vector<8x32xf32>
    %455 = vector.extract_strided_slice %435 {offsets = [0, 96], sizes = [8, 32], strides = [1, 1]} : vector<8x128xf32> to vector<8x32xf32>
    %456 = arith.negf %455 : vector<8x32xf32>
    %457 = math.exp %456 : vector<8x32xf32>
    %cst_127 = arith.constant 1.000000e+00 : f32
    %458 = vector.broadcast %cst_127 : f32 to vector<8x32xf32>
    %459 = arith.addf %458, %457 : vector<8x32xf32>
    %460 = arith.divf %458, %459 : vector<8x32xf32>
    %461 = arith.mulf %452, %394 : vector<8x32xf32>
    %462 = arith.mulf %446, %454 : vector<8x32xf32>
    %463 = arith.addf %461, %462 : vector<8x32xf32>
    %464 = math.tanh %463 : vector<8x32xf32>
    %465 = arith.mulf %460, %464 : vector<8x32xf32>
    %466 = vector.extract_strided_slice %440 {offsets = [0, 0], sizes = [8, 32], strides = [1, 1]} : vector<8x128xf32> to vector<8x32xf32>
    %467 = arith.negf %466 : vector<8x32xf32>
    %468 = math.exp %467 : vector<8x32xf32>
    %cst_128 = arith.constant 1.000000e+00 : f32
    %469 = vector.broadcast %cst_128 : f32 to vector<8x32xf32>
    %470 = arith.addf %469, %468 : vector<8x32xf32>
    %471 = arith.divf %469, %470 : vector<8x32xf32>
    %472 = vector.extract_strided_slice %440 {offsets = [0, 32], sizes = [8, 32], strides = [1, 1]} : vector<8x128xf32> to vector<8x32xf32>
    %473 = arith.negf %472 : vector<8x32xf32>
    %474 = math.exp %473 : vector<8x32xf32>
    %cst_129 = arith.constant 1.000000e+00 : f32
    %475 = vector.broadcast %cst_129 : f32 to vector<8x32xf32>
    %476 = arith.addf %475, %474 : vector<8x32xf32>
    %477 = arith.divf %475, %476 : vector<8x32xf32>
    %478 = vector.extract_strided_slice %440 {offsets = [0, 64], sizes = [8, 32], strides = [1, 1]} : vector<8x128xf32> to vector<8x32xf32>
    %479 = math.tanh %478 : vector<8x32xf32>
    %480 = vector.extract_strided_slice %440 {offsets = [0, 96], sizes = [8, 32], strides = [1, 1]} : vector<8x128xf32> to vector<8x32xf32>
    %481 = arith.negf %480 : vector<8x32xf32>
    %482 = math.exp %481 : vector<8x32xf32>
    %cst_130 = arith.constant 1.000000e+00 : f32
    %483 = vector.broadcast %cst_130 : f32 to vector<8x32xf32>
    %484 = arith.addf %483, %482 : vector<8x32xf32>
    %485 = arith.divf %483, %484 : vector<8x32xf32>
    %486 = arith.mulf %477, %419 : vector<8x32xf32>
    %487 = arith.mulf %471, %479 : vector<8x32xf32>
    %488 = arith.addf %486, %487 : vector<8x32xf32>
    %489 = math.tanh %488 : vector<8x32xf32>
    %490 = arith.mulf %485, %489 : vector<8x32xf32>
    %491 = arith.index_cast %c6_i32 : i32 to index
    %c0_131 = arith.constant 0 : index
    %c0_132 = arith.constant 0 : index
    %492 = vector.load %arg15[%491, %c0_131, %c0_132] : memref<8x8x32xf32, #tpu.memory_space<vmem>>, vector<1x8x32xf32>
    %493 = vector.shape_cast %492 : vector<1x8x32xf32> to vector<8x32xf32>
    %494 = vector.shape_cast %465 : vector<8x32xf32> to vector<1x8x32xf32>
    tpu.vector_store %arg15[%491, %c0_131, %c0_132], %494 {strides = array<i32>} : memref<8x8x32xf32, #tpu.memory_space<vmem>>, vector<1x8x32xf32>,
    %495 = arith.index_cast %430 : i32 to index
    %c0_133 = arith.constant 0 : index
    %c0_134 = arith.constant 0 : index
    %496 = vector.load %arg16[%495, %c0_133, %c0_134] : memref<8x8x32xf32, #tpu.memory_space<vmem>>, vector<1x8x32xf32>
    %497 = vector.shape_cast %496 : vector<1x8x32xf32> to vector<8x32xf32>
    %498 = vector.shape_cast %490 : vector<8x32xf32> to vector<1x8x32xf32>
    tpu.vector_store %arg16[%495, %c0_133, %c0_134], %498 {strides = array<i32>} : memref<8x8x32xf32, #tpu.memory_space<vmem>>, vector<1x8x32xf32>,
    %c7_i32_135 = arith.constant 7 : i32
    %c7_i32_136 = arith.constant 7 : i32
    %499 = arith.subi %c7_i32_136, %c7_i32_135 : i32
    %500 = arith.index_cast %c7_i32_135 : i32 to index
    %c0_137 = arith.constant 0 : index
    %c0_138 = arith.constant 0 : index
    %501 = vector.load %arg13[%500, %c0_137, %c0_138] : memref<8x8x128xf32, #tpu.memory_space<vmem>>, vector<1x8x128xf32>
    %502 = vector.shape_cast %501 : vector<1x8x128xf32> to vector<8x128xf32>
    %cst_139 = arith.constant dense<0.000000e+00> : vector<8x128xf32>
    %503 = tpu.matmul %465, %13, %cst_139 {dimension_numbers = #tpu.dot_dimension_numbers<[1], [0], [0], [1], [0, 0, 1, 1], [], []>} : vector<8x32xf32>, vector<32x128xf32>, vector<8x128xf32> -> vector<8x128xf32>
    %504 = arith.addf %502, %503 : vector<8x128xf32>
    %505 = arith.index_cast %499 : i32 to index
    %c0_140 = arith.constant 0 : index
    %c0_141 = arith.constant 0 : index
    %506 = vector.load %arg14[%505, %c0_140, %c0_141] : memref<8x8x128xf32, #tpu.memory_space<vmem>>, vector<1x8x128xf32>
    %507 = vector.shape_cast %506 : vector<1x8x128xf32> to vector<8x128xf32>
    %cst_142 = arith.constant dense<0.000000e+00> : vector<8x128xf32>
    %508 = tpu.matmul %490, %14, %cst_142 {dimension_numbers = #tpu.dot_dimension_numbers<[1], [0], [0], [1], [0, 0, 1, 1], [], []>} : vector<8x32xf32>, vector<32x128xf32>, vector<8x128xf32> -> vector<8x128xf32>
    %509 = arith.addf %507, %508 : vector<8x128xf32>
    %510 = vector.extract_strided_slice %504 {offsets = [0, 0], sizes = [8, 32], strides = [1, 1]} : vector<8x128xf32> to vector<8x32xf32>
    %511 = arith.negf %510 : vector<8x32xf32>
    %512 = math.exp %511 : vector<8x32xf32>
    %cst_143 = arith.constant 1.000000e+00 : f32
    %513 = vector.broadcast %cst_143 : f32 to vector<8x32xf32>
    %514 = arith.addf %513, %512 : vector<8x32xf32>
    %515 = arith.divf %513, %514 : vector<8x32xf32>
    %516 = vector.extract_strided_slice %504 {offsets = [0, 32], sizes = [8, 32], strides = [1, 1]} : vector<8x128xf32> to vector<8x32xf32>
    %517 = arith.negf %516 : vector<8x32xf32>
    %518 = math.exp %517 : vector<8x32xf32>
    %cst_144 = arith.constant 1.000000e+00 : f32
    %519 = vector.broadcast %cst_144 : f32 to vector<8x32xf32>
    %520 = arith.addf %519, %518 : vector<8x32xf32>
    %521 = arith.divf %519, %520 : vector<8x32xf32>
    %522 = vector.extract_strided_slice %504 {offsets = [0, 64], sizes = [8, 32], strides = [1, 1]} : vector<8x128xf32> to vector<8x32xf32>
    %523 = math.tanh %522 : vector<8x32xf32>
    %524 = vector.extract_strided_slice %504 {offsets = [0, 96], sizes = [8, 32], strides = [1, 1]} : vector<8x128xf32> to vector<8x32xf32>
    %525 = arith.negf %524 : vector<8x32xf32>
    %526 = math.exp %525 : vector<8x32xf32>
    %cst_145 = arith.constant 1.000000e+00 : f32
    %527 = vector.broadcast %cst_145 : f32 to vector<8x32xf32>
    %528 = arith.addf %527, %526 : vector<8x32xf32>
    %529 = arith.divf %527, %528 : vector<8x32xf32>
    %530 = arith.mulf %521, %463 : vector<8x32xf32>
    %531 = arith.mulf %515, %523 : vector<8x32xf32>
    %532 = arith.addf %530, %531 : vector<8x32xf32>
    %533 = math.tanh %532 : vector<8x32xf32>
    %534 = arith.mulf %529, %533 : vector<8x32xf32>
    %535 = vector.extract_strided_slice %509 {offsets = [0, 0], sizes = [8, 32], strides = [1, 1]} : vector<8x128xf32> to vector<8x32xf32>
    %536 = arith.negf %535 : vector<8x32xf32>
    %537 = math.exp %536 : vector<8x32xf32>
    %cst_146 = arith.constant 1.000000e+00 : f32
    %538 = vector.broadcast %cst_146 : f32 to vector<8x32xf32>
    %539 = arith.addf %538, %537 : vector<8x32xf32>
    %540 = arith.divf %538, %539 : vector<8x32xf32>
    %541 = vector.extract_strided_slice %509 {offsets = [0, 32], sizes = [8, 32], strides = [1, 1]} : vector<8x128xf32> to vector<8x32xf32>
    %542 = arith.negf %541 : vector<8x32xf32>
    %543 = math.exp %542 : vector<8x32xf32>
    %cst_147 = arith.constant 1.000000e+00 : f32
    %544 = vector.broadcast %cst_147 : f32 to vector<8x32xf32>
    %545 = arith.addf %544, %543 : vector<8x32xf32>
    %546 = arith.divf %544, %545 : vector<8x32xf32>
    %547 = vector.extract_strided_slice %509 {offsets = [0, 64], sizes = [8, 32], strides = [1, 1]} : vector<8x128xf32> to vector<8x32xf32>
    %548 = math.tanh %547 : vector<8x32xf32>
    %549 = vector.extract_strided_slice %509 {offsets = [0, 96], sizes = [8, 32], strides = [1, 1]} : vector<8x128xf32> to vector<8x32xf32>
    %550 = arith.negf %549 : vector<8x32xf32>
    %551 = math.exp %550 : vector<8x32xf32>
    %cst_148 = arith.constant 1.000000e+00 : f32
    %552 = vector.broadcast %cst_148 : f32 to vector<8x32xf32>
    %553 = arith.addf %552, %551 : vector<8x32xf32>
    %554 = arith.divf %552, %553 : vector<8x32xf32>
    %555 = arith.mulf %546, %488 : vector<8x32xf32>
    %556 = arith.mulf %540, %548 : vector<8x32xf32>
    %557 = arith.addf %555, %556 : vector<8x32xf32>
    %558 = math.tanh %557 : vector<8x32xf32>
    %559 = arith.mulf %554, %558 : vector<8x32xf32>
    %560 = arith.index_cast %c7_i32_135 : i32 to index
    %c0_149 = arith.constant 0 : index
    %c0_150 = arith.constant 0 : index
    %561 = vector.load %arg15[%560, %c0_149, %c0_150] : memref<8x8x32xf32, #tpu.memory_space<vmem>>, vector<1x8x32xf32>
    %562 = vector.shape_cast %561 : vector<1x8x32xf32> to vector<8x32xf32>
    %563 = vector.shape_cast %534 : vector<8x32xf32> to vector<1x8x32xf32>
    tpu.vector_store %arg15[%560, %c0_149, %c0_150], %563 {strides = array<i32>} : memref<8x8x32xf32, #tpu.memory_space<vmem>>, vector<1x8x32xf32>,
    %564 = arith.index_cast %499 : i32 to index
    %c0_151 = arith.constant 0 : index
    %c0_152 = arith.constant 0 : index
    %565 = vector.load %arg16[%564, %c0_151, %c0_152] : memref<8x8x32xf32, #tpu.memory_space<vmem>>, vector<1x8x32xf32>
    %566 = vector.shape_cast %565 : vector<1x8x32xf32> to vector<8x32xf32>
    %567 = vector.shape_cast %559 : vector<8x32xf32> to vector<1x8x32xf32>
    tpu.vector_store %arg16[%564, %c0_151, %c0_152], %567 {strides = array<i32>} : memref<8x8x32xf32, #tpu.memory_space<vmem>>, vector<1x8x32xf32>,
    %c8_i32 = arith.constant 8 : i32
    %c0_153 = arith.constant 0 : index
    %c0_154 = arith.constant 0 : index
    %568 = vector.load %arg7[%c0_153, %c0_154] : memref<1x256xf32, #tpu.memory_space<vmem>>, vector<1x256xf32>
    %c0_155 = arith.constant 0 : index
    %c0_156 = arith.constant 0 : index
    %c0_157 = arith.constant 0 : index
    %569 = vector.load %arg15[%c0_155, %c0_156, %c0_157] : memref<8x8x32xf32, #tpu.memory_space<vmem>>, vector<8x8x32xf32>
    %570 = vector.shape_cast %569 : vector<8x8x32xf32> to vector<64x32xf32>
    %c0_158 = arith.constant 0 : index
    %c0_159 = arith.constant 0 : index
    %c0_160 = arith.constant 0 : index
    %571 = vector.load %arg16[%c0_158, %c0_159, %c0_160] : memref<8x8x32xf32, #tpu.memory_space<vmem>>, vector<8x8x32xf32>
    %572 = vector.shape_cast %571 : vector<8x8x32xf32> to vector<64x32xf32>
    %c0_161 = arith.constant 0 : index
    %c0_162 = arith.constant 0 : index
    %573 = vector.load %arg6[%c0_161, %c0_162] : memref<64x256xf32, #tpu.memory_space<vmem>>, vector<32x256xf32>
    %cst_163 = arith.constant dense<0.000000e+00> : vector<64x256xf32>
    %574 = tpu.matmul %570, %573, %cst_163 {dimension_numbers = #tpu.dot_dimension_numbers<[1], [0], [0], [1], [0, 0, 1, 1], [], []>} : vector<64x32xf32>, vector<32x256xf32>, vector<64x256xf32> -> vector<64x256xf32>
    %c32 = arith.constant 32 : index
    %c0_164 = arith.constant 0 : index
    %575 = vector.load %arg6[%c32, %c0_164] : memref<64x256xf32, #tpu.memory_space<vmem>>, vector<32x256xf32>
    %cst_165 = arith.constant dense<0.000000e+00> : vector<64x256xf32>
    %576 = tpu.matmul %572, %575, %cst_165 {dimension_numbers = #tpu.dot_dimension_numbers<[1], [0], [0], [1], [0, 0, 1, 1], [], []>} : vector<64x32xf32>, vector<32x256xf32>, vector<64x256xf32> -> vector<64x256xf32>
    %577 = arith.addf %574, %576 : vector<64x256xf32>
    %578 = vector.broadcast %568 : vector<1x256xf32> to vector<64x256xf32>
    %579 = arith.addf %577, %578 : vector<64x256xf32>
    %580 = vector.extract_strided_slice %579 {offsets = [0, 0], sizes = [64, 128], strides = [1, 1]} : vector<64x256xf32> to vector<64x128xf32>
    %581 = vector.shape_cast %580 : vector<64x128xf32> to vector<8x8x128xf32>
    %c0_166 = arith.constant 0 : index
    %c0_167 = arith.constant 0 : index
    %c0_168 = arith.constant 0 : index
    %582 = vector.load %arg13[%c0_166, %c0_167, %c0_168] : memref<8x8x128xf32, #tpu.memory_space<vmem>>, vector<8x8x128xf32>
    tpu.vector_store %arg13[%c0_166, %c0_167, %c0_168], %581 {strides = array<i32>} : memref<8x8x128xf32, #tpu.memory_space<vmem>>, vector<8x8x128xf32>,
    %583 = vector.extract_strided_slice %579 {offsets = [0, 128], sizes = [64, 128], strides = [1, 1]} : vector<64x256xf32> to vector<64x128xf32>
    %584 = vector.shape_cast %583 : vector<64x128xf32> to vector<8x8x128xf32>
    %c0_169 = arith.constant 0 : index
    %c0_170 = arith.constant 0 : index
    %c0_171 = arith.constant 0 : index
    %585 = vector.load %arg14[%c0_169, %c0_170, %c0_171] : memref<8x8x128xf32, #tpu.memory_space<vmem>>, vector<8x8x128xf32>
    tpu.vector_store %arg14[%c0_169, %c0_170, %c0_171], %584 {strides = array<i32>} : memref<8x8x128xf32, #tpu.memory_space<vmem>>, vector<8x8x128xf32>,
    %c0_172 = arith.constant 0 : index
    %c0_173 = arith.constant 0 : index
    %586 = vector.load %arg8[%c0_172, %c0_173] : memref<32x128xf32, #tpu.memory_space<vmem>>, vector<32x128xf32>
    %c0_174 = arith.constant 0 : index
    %c0_175 = arith.constant 0 : index
    %587 = vector.load %arg9[%c0_174, %c0_175] : memref<32x128xf32, #tpu.memory_space<vmem>>, vector<32x128xf32>
    %cst_176 = arith.constant 0.000000e+00 : f32
    %588 = vector.broadcast %cst_176 : f32 to vector<8x32xf32>
    %c0_i32_177 = arith.constant 0 : i32
    %c7_i32_178 = arith.constant 7 : i32
    %589 = arith.subi %c7_i32_178, %c0_i32_177 : i32
    %590 = arith.index_cast %c0_i32_177 : i32 to index
    %c0_179 = arith.constant 0 : index
    %c0_180 = arith.constant 0 : index
    %591 = vector.load %arg13[%590, %c0_179, %c0_180] : memref<8x8x128xf32, #tpu.memory_space<vmem>>, vector<1x8x128xf32>
    %592 = vector.shape_cast %591 : vector<1x8x128xf32> to vector<8x128xf32>
    %cst_181 = arith.constant dense<0.000000e+00> : vector<8x128xf32>
    %593 = tpu.matmul %588, %586, %cst_181 {dimension_numbers = #tpu.dot_dimension_numbers<[1], [0], [0], [1], [0, 0, 1, 1], [], []>} : vector<8x32xf32>, vector<32x128xf32>, vector<8x128xf32> -> vector<8x128xf32>
    %594 = arith.addf %592, %593 : vector<8x128xf32>
    %595 = arith.index_cast %589 : i32 to index
    %c0_182 = arith.constant 0 : index
    %c0_183 = arith.constant 0 : index
    %596 = vector.load %arg14[%595, %c0_182, %c0_183] : memref<8x8x128xf32, #tpu.memory_space<vmem>>, vector<1x8x128xf32>
    %597 = vector.shape_cast %596 : vector<1x8x128xf32> to vector<8x128xf32>
    %cst_184 = arith.constant dense<0.000000e+00> : vector<8x128xf32>
    %598 = tpu.matmul %588, %587, %cst_184 {dimension_numbers = #tpu.dot_dimension_numbers<[1], [0], [0], [1], [0, 0, 1, 1], [], []>} : vector<8x32xf32>, vector<32x128xf32>, vector<8x128xf32> -> vector<8x128xf32>
    %599 = arith.addf %597, %598 : vector<8x128xf32>
    %600 = vector.extract_strided_slice %594 {offsets = [0, 0], sizes = [8, 32], strides = [1, 1]} : vector<8x128xf32> to vector<8x32xf32>
    %601 = arith.negf %600 : vector<8x32xf32>
    %602 = math.exp %601 : vector<8x32xf32>
    %cst_185 = arith.constant 1.000000e+00 : f32
    %603 = vector.broadcast %cst_185 : f32 to vector<8x32xf32>
    %604 = arith.addf %603, %602 : vector<8x32xf32>
    %605 = arith.divf %603, %604 : vector<8x32xf32>
    %606 = vector.extract_strided_slice %594 {offsets = [0, 32], sizes = [8, 32], strides = [1, 1]} : vector<8x128xf32> to vector<8x32xf32>
    %607 = arith.negf %606 : vector<8x32xf32>
    %608 = math.exp %607 : vector<8x32xf32>
    %cst_186 = arith.constant 1.000000e+00 : f32
    %609 = vector.broadcast %cst_186 : f32 to vector<8x32xf32>
    %610 = arith.addf %609, %608 : vector<8x32xf32>
    %611 = arith.divf %609, %610 : vector<8x32xf32>
    %612 = vector.extract_strided_slice %594 {offsets = [0, 64], sizes = [8, 32], strides = [1, 1]} : vector<8x128xf32> to vector<8x32xf32>
    %613 = math.tanh %612 : vector<8x32xf32>
    %614 = vector.extract_strided_slice %594 {offsets = [0, 96], sizes = [8, 32], strides = [1, 1]} : vector<8x128xf32> to vector<8x32xf32>
    %615 = arith.negf %614 : vector<8x32xf32>
    %616 = math.exp %615 : vector<8x32xf32>
    %cst_187 = arith.constant 1.000000e+00 : f32
    %617 = vector.broadcast %cst_187 : f32 to vector<8x32xf32>
    %618 = arith.addf %617, %616 : vector<8x32xf32>
    %619 = arith.divf %617, %618 : vector<8x32xf32>
    %620 = arith.mulf %611, %588 : vector<8x32xf32>
    %621 = arith.mulf %605, %613 : vector<8x32xf32>
    %622 = arith.addf %620, %621 : vector<8x32xf32>
    %623 = math.tanh %622 : vector<8x32xf32>
    %624 = arith.mulf %619, %623 : vector<8x32xf32>
    %625 = vector.extract_strided_slice %599 {offsets = [0, 0], sizes = [8, 32], strides = [1, 1]} : vector<8x128xf32> to vector<8x32xf32>
    %626 = arith.negf %625 : vector<8x32xf32>
    %627 = math.exp %626 : vector<8x32xf32>
    %cst_188 = arith.constant 1.000000e+00 : f32
    %628 = vector.broadcast %cst_188 : f32 to vector<8x32xf32>
    %629 = arith.addf %628, %627 : vector<8x32xf32>
    %630 = arith.divf %628, %629 : vector<8x32xf32>
    %631 = vector.extract_strided_slice %599 {offsets = [0, 32], sizes = [8, 32], strides = [1, 1]} : vector<8x128xf32> to vector<8x32xf32>
    %632 = arith.negf %631 : vector<8x32xf32>
    %633 = math.exp %632 : vector<8x32xf32>
    %cst_189 = arith.constant 1.000000e+00 : f32
    %634 = vector.broadcast %cst_189 : f32 to vector<8x32xf32>
    %635 = arith.addf %634, %633 : vector<8x32xf32>
    %636 = arith.divf %634, %635 : vector<8x32xf32>
    %637 = vector.extract_strided_slice %599 {offsets = [0, 64], sizes = [8, 32], strides = [1, 1]} : vector<8x128xf32> to vector<8x32xf32>
    %638 = math.tanh %637 : vector<8x32xf32>
    %639 = vector.extract_strided_slice %599 {offsets = [0, 96], sizes = [8, 32], strides = [1, 1]} : vector<8x128xf32> to vector<8x32xf32>
    %640 = arith.negf %639 : vector<8x32xf32>
    %641 = math.exp %640 : vector<8x32xf32>
    %cst_190 = arith.constant 1.000000e+00 : f32
    %642 = vector.broadcast %cst_190 : f32 to vector<8x32xf32>
    %643 = arith.addf %642, %641 : vector<8x32xf32>
    %644 = arith.divf %642, %643 : vector<8x32xf32>
    %645 = arith.mulf %636, %588 : vector<8x32xf32>
    %646 = arith.mulf %630, %638 : vector<8x32xf32>
    %647 = arith.addf %645, %646 : vector<8x32xf32>
    %648 = math.tanh %647 : vector<8x32xf32>
    %649 = arith.mulf %644, %648 : vector<8x32xf32>
    %650 = arith.index_cast %c0_i32_177 : i32 to index
    %c0_191 = arith.constant 0 : index
    %c0_192 = arith.constant 0 : index
    %651 = vector.load %arg15[%650, %c0_191, %c0_192] : memref<8x8x32xf32, #tpu.memory_space<vmem>>, vector<1x8x32xf32>
    %652 = vector.shape_cast %651 : vector<1x8x32xf32> to vector<8x32xf32>
    %653 = vector.shape_cast %624 : vector<8x32xf32> to vector<1x8x32xf32>
    tpu.vector_store %arg15[%650, %c0_191, %c0_192], %653 {strides = array<i32>} : memref<8x8x32xf32, #tpu.memory_space<vmem>>, vector<1x8x32xf32>,
    %654 = arith.index_cast %589 : i32 to index
    %c0_193 = arith.constant 0 : index
    %c0_194 = arith.constant 0 : index
    %655 = vector.load %arg16[%654, %c0_193, %c0_194] : memref<8x8x32xf32, #tpu.memory_space<vmem>>, vector<1x8x32xf32>
    %656 = vector.shape_cast %655 : vector<1x8x32xf32> to vector<8x32xf32>
    %657 = vector.shape_cast %649 : vector<8x32xf32> to vector<1x8x32xf32>
    tpu.vector_store %arg16[%654, %c0_193, %c0_194], %657 {strides = array<i32>} : memref<8x8x32xf32, #tpu.memory_space<vmem>>, vector<1x8x32xf32>,
    %c1_i32_195 = arith.constant 1 : i32
    %c7_i32_196 = arith.constant 7 : i32
    %658 = arith.subi %c7_i32_196, %c1_i32_195 : i32
    %659 = arith.index_cast %c1_i32_195 : i32 to index
    %c0_197 = arith.constant 0 : index
    %c0_198 = arith.constant 0 : index
    %660 = vector.load %arg13[%659, %c0_197, %c0_198] : memref<8x8x128xf32, #tpu.memory_space<vmem>>, vector<1x8x128xf32>
    %661 = vector.shape_cast %660 : vector<1x8x128xf32> to vector<8x128xf32>
    %cst_199 = arith.constant dense<0.000000e+00> : vector<8x128xf32>
    %662 = tpu.matmul %624, %586, %cst_199 {dimension_numbers = #tpu.dot_dimension_numbers<[1], [0], [0], [1], [0, 0, 1, 1], [], []>} : vector<8x32xf32>, vector<32x128xf32>, vector<8x128xf32> -> vector<8x128xf32>
    %663 = arith.addf %661, %662 : vector<8x128xf32>
    %664 = arith.index_cast %658 : i32 to index
    %c0_200 = arith.constant 0 : index
    %c0_201 = arith.constant 0 : index
    %665 = vector.load %arg14[%664, %c0_200, %c0_201] : memref<8x8x128xf32, #tpu.memory_space<vmem>>, vector<1x8x128xf32>
    %666 = vector.shape_cast %665 : vector<1x8x128xf32> to vector<8x128xf32>
    %cst_202 = arith.constant dense<0.000000e+00> : vector<8x128xf32>
    %667 = tpu.matmul %649, %587, %cst_202 {dimension_numbers = #tpu.dot_dimension_numbers<[1], [0], [0], [1], [0, 0, 1, 1], [], []>} : vector<8x32xf32>, vector<32x128xf32>, vector<8x128xf32> -> vector<8x128xf32>
    %668 = arith.addf %666, %667 : vector<8x128xf32>
    %669 = vector.extract_strided_slice %663 {offsets = [0, 0], sizes = [8, 32], strides = [1, 1]} : vector<8x128xf32> to vector<8x32xf32>
    %670 = arith.negf %669 : vector<8x32xf32>
    %671 = math.exp %670 : vector<8x32xf32>
    %cst_203 = arith.constant 1.000000e+00 : f32
    %672 = vector.broadcast %cst_203 : f32 to vector<8x32xf32>
    %673 = arith.addf %672, %671 : vector<8x32xf32>
    %674 = arith.divf %672, %673 : vector<8x32xf32>
    %675 = vector.extract_strided_slice %663 {offsets = [0, 32], sizes = [8, 32], strides = [1, 1]} : vector<8x128xf32> to vector<8x32xf32>
    %676 = arith.negf %675 : vector<8x32xf32>
    %677 = math.exp %676 : vector<8x32xf32>
    %cst_204 = arith.constant 1.000000e+00 : f32
    %678 = vector.broadcast %cst_204 : f32 to vector<8x32xf32>
    %679 = arith.addf %678, %677 : vector<8x32xf32>
    %680 = arith.divf %678, %679 : vector<8x32xf32>
    %681 = vector.extract_strided_slice %663 {offsets = [0, 64], sizes = [8, 32], strides = [1, 1]} : vector<8x128xf32> to vector<8x32xf32>
    %682 = math.tanh %681 : vector<8x32xf32>
    %683 = vector.extract_strided_slice %663 {offsets = [0, 96], sizes = [8, 32], strides = [1, 1]} : vector<8x128xf32> to vector<8x32xf32>
    %684 = arith.negf %683 : vector<8x32xf32>
    %685 = math.exp %684 : vector<8x32xf32>
    %cst_205 = arith.constant 1.000000e+00 : f32
    %686 = vector.broadcast %cst_205 : f32 to vector<8x32xf32>
    %687 = arith.addf %686, %685 : vector<8x32xf32>
    %688 = arith.divf %686, %687 : vector<8x32xf32>
    %689 = arith.mulf %680, %622 : vector<8x32xf32>
    %690 = arith.mulf %674, %682 : vector<8x32xf32>
    %691 = arith.addf %689, %690 : vector<8x32xf32>
    %692 = math.tanh %691 : vector<8x32xf32>
    %693 = arith.mulf %688, %692 : vector<8x32xf32>
    %694 = vector.extract_strided_slice %668 {offsets = [0, 0], sizes = [8, 32], strides = [1, 1]} : vector<8x128xf32> to vector<8x32xf32>
    %695 = arith.negf %694 : vector<8x32xf32>
    %696 = math.exp %695 : vector<8x32xf32>
    %cst_206 = arith.constant 1.000000e+00 : f32
    %697 = vector.broadcast %cst_206 : f32 to vector<8x32xf32>
    %698 = arith.addf %697, %696 : vector<8x32xf32>
    %699 = arith.divf %697, %698 : vector<8x32xf32>
    %700 = vector.extract_strided_slice %668 {offsets = [0, 32], sizes = [8, 32], strides = [1, 1]} : vector<8x128xf32> to vector<8x32xf32>
    %701 = arith.negf %700 : vector<8x32xf32>
    %702 = math.exp %701 : vector<8x32xf32>
    %cst_207 = arith.constant 1.000000e+00 : f32
    %703 = vector.broadcast %cst_207 : f32 to vector<8x32xf32>
    %704 = arith.addf %703, %702 : vector<8x32xf32>
    %705 = arith.divf %703, %704 : vector<8x32xf32>
    %706 = vector.extract_strided_slice %668 {offsets = [0, 64], sizes = [8, 32], strides = [1, 1]} : vector<8x128xf32> to vector<8x32xf32>
    %707 = math.tanh %706 : vector<8x32xf32>
    %708 = vector.extract_strided_slice %668 {offsets = [0, 96], sizes = [8, 32], strides = [1, 1]} : vector<8x128xf32> to vector<8x32xf32>
    %709 = arith.negf %708 : vector<8x32xf32>
    %710 = math.exp %709 : vector<8x32xf32>
    %cst_208 = arith.constant 1.000000e+00 : f32
    %711 = vector.broadcast %cst_208 : f32 to vector<8x32xf32>
    %712 = arith.addf %711, %710 : vector<8x32xf32>
    %713 = arith.divf %711, %712 : vector<8x32xf32>
    %714 = arith.mulf %705, %647 : vector<8x32xf32>
    %715 = arith.mulf %699, %707 : vector<8x32xf32>
    %716 = arith.addf %714, %715 : vector<8x32xf32>
    %717 = math.tanh %716 : vector<8x32xf32>
    %718 = arith.mulf %713, %717 : vector<8x32xf32>
    %719 = arith.index_cast %c1_i32_195 : i32 to index
    %c0_209 = arith.constant 0 : index
    %c0_210 = arith.constant 0 : index
    %720 = vector.load %arg15[%719, %c0_209, %c0_210] : memref<8x8x32xf32, #tpu.memory_space<vmem>>, vector<1x8x32xf32>
    %721 = vector.shape_cast %720 : vector<1x8x32xf32> to vector<8x32xf32>
    %722 = vector.shape_cast %693 : vector<8x32xf32> to vector<1x8x32xf32>
    tpu.vector_store %arg15[%719, %c0_209, %c0_210], %722 {strides = array<i32>} : memref<8x8x32xf32, #tpu.memory_space<vmem>>, vector<1x8x32xf32>,
    %723 = arith.index_cast %658 : i32 to index
    %c0_211 = arith.constant 0 : index
    %c0_212 = arith.constant 0 : index
    %724 = vector.load %arg16[%723, %c0_211, %c0_212] : memref<8x8x32xf32, #tpu.memory_space<vmem>>, vector<1x8x32xf32>
    %725 = vector.shape_cast %724 : vector<1x8x32xf32> to vector<8x32xf32>
    %726 = vector.shape_cast %718 : vector<8x32xf32> to vector<1x8x32xf32>
    tpu.vector_store %arg16[%723, %c0_211, %c0_212], %726 {strides = array<i32>} : memref<8x8x32xf32, #tpu.memory_space<vmem>>, vector<1x8x32xf32>,
    %c2_i32_213 = arith.constant 2 : i32
    %c7_i32_214 = arith.constant 7 : i32
    %727 = arith.subi %c7_i32_214, %c2_i32_213 : i32
    %728 = arith.index_cast %c2_i32_213 : i32 to index
    %c0_215 = arith.constant 0 : index
    %c0_216 = arith.constant 0 : index
    %729 = vector.load %arg13[%728, %c0_215, %c0_216] : memref<8x8x128xf32, #tpu.memory_space<vmem>>, vector<1x8x128xf32>
    %730 = vector.shape_cast %729 : vector<1x8x128xf32> to vector<8x128xf32>
    %cst_217 = arith.constant dense<0.000000e+00> : vector<8x128xf32>
    %731 = tpu.matmul %693, %586, %cst_217 {dimension_numbers = #tpu.dot_dimension_numbers<[1], [0], [0], [1], [0, 0, 1, 1], [], []>} : vector<8x32xf32>, vector<32x128xf32>, vector<8x128xf32> -> vector<8x128xf32>
    %732 = arith.addf %730, %731 : vector<8x128xf32>
    %733 = arith.index_cast %727 : i32 to index
    %c0_218 = arith.constant 0 : index
    %c0_219 = arith.constant 0 : index
    %734 = vector.load %arg14[%733, %c0_218, %c0_219] : memref<8x8x128xf32, #tpu.memory_space<vmem>>, vector<1x8x128xf32>
    %735 = vector.shape_cast %734 : vector<1x8x128xf32> to vector<8x128xf32>
    %cst_220 = arith.constant dense<0.000000e+00> : vector<8x128xf32>
    %736 = tpu.matmul %718, %587, %cst_220 {dimension_numbers = #tpu.dot_dimension_numbers<[1], [0], [0], [1], [0, 0, 1, 1], [], []>} : vector<8x32xf32>, vector<32x128xf32>, vector<8x128xf32> -> vector<8x128xf32>
    %737 = arith.addf %735, %736 : vector<8x128xf32>
    %738 = vector.extract_strided_slice %732 {offsets = [0, 0], sizes = [8, 32], strides = [1, 1]} : vector<8x128xf32> to vector<8x32xf32>
    %739 = arith.negf %738 : vector<8x32xf32>
    %740 = math.exp %739 : vector<8x32xf32>
    %cst_221 = arith.constant 1.000000e+00 : f32
    %741 = vector.broadcast %cst_221 : f32 to vector<8x32xf32>
    %742 = arith.addf %741, %740 : vector<8x32xf32>
    %743 = arith.divf %741, %742 : vector<8x32xf32>
    %744 = vector.extract_strided_slice %732 {offsets = [0, 32], sizes = [8, 32], strides = [1, 1]} : vector<8x128xf32> to vector<8x32xf32>
    %745 = arith.negf %744 : vector<8x32xf32>
    %746 = math.exp %745 : vector<8x32xf32>
    %cst_222 = arith.constant 1.000000e+00 : f32
    %747 = vector.broadcast %cst_222 : f32 to vector<8x32xf32>
    %748 = arith.addf %747, %746 : vector<8x32xf32>
    %749 = arith.divf %747, %748 : vector<8x32xf32>
    %750 = vector.extract_strided_slice %732 {offsets = [0, 64], sizes = [8, 32], strides = [1, 1]} : vector<8x128xf32> to vector<8x32xf32>
    %751 = math.tanh %750 : vector<8x32xf32>
    %752 = vector.extract_strided_slice %732 {offsets = [0, 96], sizes = [8, 32], strides = [1, 1]} : vector<8x128xf32> to vector<8x32xf32>
    %753 = arith.negf %752 : vector<8x32xf32>
    %754 = math.exp %753 : vector<8x32xf32>
    %cst_223 = arith.constant 1.000000e+00 : f32
    %755 = vector.broadcast %cst_223 : f32 to vector<8x32xf32>
    %756 = arith.addf %755, %754 : vector<8x32xf32>
    %757 = arith.divf %755, %756 : vector<8x32xf32>
    %758 = arith.mulf %749, %691 : vector<8x32xf32>
    %759 = arith.mulf %743, %751 : vector<8x32xf32>
    %760 = arith.addf %758, %759 : vector<8x32xf32>
    %761 = math.tanh %760 : vector<8x32xf32>
    %762 = arith.mulf %757, %761 : vector<8x32xf32>
    %763 = vector.extract_strided_slice %737 {offsets = [0, 0], sizes = [8, 32], strides = [1, 1]} : vector<8x128xf32> to vector<8x32xf32>
    %764 = arith.negf %763 : vector<8x32xf32>
    %765 = math.exp %764 : vector<8x32xf32>
    %cst_224 = arith.constant 1.000000e+00 : f32
    %766 = vector.broadcast %cst_224 : f32 to vector<8x32xf32>
    %767 = arith.addf %766, %765 : vector<8x32xf32>
    %768 = arith.divf %766, %767 : vector<8x32xf32>
    %769 = vector.extract_strided_slice %737 {offsets = [0, 32], sizes = [8, 32], strides = [1, 1]} : vector<8x128xf32> to vector<8x32xf32>
    %770 = arith.negf %769 : vector<8x32xf32>
    %771 = math.exp %770 : vector<8x32xf32>
    %cst_225 = arith.constant 1.000000e+00 : f32
    %772 = vector.broadcast %cst_225 : f32 to vector<8x32xf32>
    %773 = arith.addf %772, %771 : vector<8x32xf32>
    %774 = arith.divf %772, %773 : vector<8x32xf32>
    %775 = vector.extract_strided_slice %737 {offsets = [0, 64], sizes = [8, 32], strides = [1, 1]} : vector<8x128xf32> to vector<8x32xf32>
    %776 = math.tanh %775 : vector<8x32xf32>
    %777 = vector.extract_strided_slice %737 {offsets = [0, 96], sizes = [8, 32], strides = [1, 1]} : vector<8x128xf32> to vector<8x32xf32>
    %778 = arith.negf %777 : vector<8x32xf32>
    %779 = math.exp %778 : vector<8x32xf32>
    %cst_226 = arith.constant 1.000000e+00 : f32
    %780 = vector.broadcast %cst_226 : f32 to vector<8x32xf32>
    %781 = arith.addf %780, %779 : vector<8x32xf32>
    %782 = arith.divf %780, %781 : vector<8x32xf32>
    %783 = arith.mulf %774, %716 : vector<8x32xf32>
    %784 = arith.mulf %768, %776 : vector<8x32xf32>
    %785 = arith.addf %783, %784 : vector<8x32xf32>
    %786 = math.tanh %785 : vector<8x32xf32>
    %787 = arith.mulf %782, %786 : vector<8x32xf32>
    %788 = arith.index_cast %c2_i32_213 : i32 to index
    %c0_227 = arith.constant 0 : index
    %c0_228 = arith.constant 0 : index
    %789 = vector.load %arg15[%788, %c0_227, %c0_228] : memref<8x8x32xf32, #tpu.memory_space<vmem>>, vector<1x8x32xf32>
    %790 = vector.shape_cast %789 : vector<1x8x32xf32> to vector<8x32xf32>
    %791 = vector.shape_cast %762 : vector<8x32xf32> to vector<1x8x32xf32>
    tpu.vector_store %arg15[%788, %c0_227, %c0_228], %791 {strides = array<i32>} : memref<8x8x32xf32, #tpu.memory_space<vmem>>, vector<1x8x32xf32>,
    %792 = arith.index_cast %727 : i32 to index
    %c0_229 = arith.constant 0 : index
    %c0_230 = arith.constant 0 : index
    %793 = vector.load %arg16[%792, %c0_229, %c0_230] : memref<8x8x32xf32, #tpu.memory_space<vmem>>, vector<1x8x32xf32>
    %794 = vector.shape_cast %793 : vector<1x8x32xf32> to vector<8x32xf32>
    %795 = vector.shape_cast %787 : vector<8x32xf32> to vector<1x8x32xf32>
    tpu.vector_store %arg16[%792, %c0_229, %c0_230], %795 {strides = array<i32>} : memref<8x8x32xf32, #tpu.memory_space<vmem>>, vector<1x8x32xf32>,
    %c3_i32_231 = arith.constant 3 : i32
    %c7_i32_232 = arith.constant 7 : i32
    %796 = arith.subi %c7_i32_232, %c3_i32_231 : i32
    %797 = arith.index_cast %c3_i32_231 : i32 to index
    %c0_233 = arith.constant 0 : index
    %c0_234 = arith.constant 0 : index
    %798 = vector.load %arg13[%797, %c0_233, %c0_234] : memref<8x8x128xf32, #tpu.memory_space<vmem>>, vector<1x8x128xf32>
    %799 = vector.shape_cast %798 : vector<1x8x128xf32> to vector<8x128xf32>
    %cst_235 = arith.constant dense<0.000000e+00> : vector<8x128xf32>
    %800 = tpu.matmul %762, %586, %cst_235 {dimension_numbers = #tpu.dot_dimension_numbers<[1], [0], [0], [1], [0, 0, 1, 1], [], []>} : vector<8x32xf32>, vector<32x128xf32>, vector<8x128xf32> -> vector<8x128xf32>
    %801 = arith.addf %799, %800 : vector<8x128xf32>
    %802 = arith.index_cast %796 : i32 to index
    %c0_236 = arith.constant 0 : index
    %c0_237 = arith.constant 0 : index
    %803 = vector.load %arg14[%802, %c0_236, %c0_237] : memref<8x8x128xf32, #tpu.memory_space<vmem>>, vector<1x8x128xf32>
    %804 = vector.shape_cast %803 : vector<1x8x128xf32> to vector<8x128xf32>
    %cst_238 = arith.constant dense<0.000000e+00> : vector<8x128xf32>
    %805 = tpu.matmul %787, %587, %cst_238 {dimension_numbers = #tpu.dot_dimension_numbers<[1], [0], [0], [1], [0, 0, 1, 1], [], []>} : vector<8x32xf32>, vector<32x128xf32>, vector<8x128xf32> -> vector<8x128xf32>
    %806 = arith.addf %804, %805 : vector<8x128xf32>
    %807 = vector.extract_strided_slice %801 {offsets = [0, 0], sizes = [8, 32], strides = [1, 1]} : vector<8x128xf32> to vector<8x32xf32>
    %808 = arith.negf %807 : vector<8x32xf32>
    %809 = math.exp %808 : vector<8x32xf32>
    %cst_239 = arith.constant 1.000000e+00 : f32
    %810 = vector.broadcast %cst_239 : f32 to vector<8x32xf32>
    %811 = arith.addf %810, %809 : vector<8x32xf32>
    %812 = arith.divf %810, %811 : vector<8x32xf32>
    %813 = vector.extract_strided_slice %801 {offsets = [0, 32], sizes = [8, 32], strides = [1, 1]} : vector<8x128xf32> to vector<8x32xf32>
    %814 = arith.negf %813 : vector<8x32xf32>
    %815 = math.exp %814 : vector<8x32xf32>
    %cst_240 = arith.constant 1.000000e+00 : f32
    %816 = vector.broadcast %cst_240 : f32 to vector<8x32xf32>
    %817 = arith.addf %816, %815 : vector<8x32xf32>
    %818 = arith.divf %816, %817 : vector<8x32xf32>
    %819 = vector.extract_strided_slice %801 {offsets = [0, 64], sizes = [8, 32], strides = [1, 1]} : vector<8x128xf32> to vector<8x32xf32>
    %820 = math.tanh %819 : vector<8x32xf32>
    %821 = vector.extract_strided_slice %801 {offsets = [0, 96], sizes = [8, 32], strides = [1, 1]} : vector<8x128xf32> to vector<8x32xf32>
    %822 = arith.negf %821 : vector<8x32xf32>
    %823 = math.exp %822 : vector<8x32xf32>
    %cst_241 = arith.constant 1.000000e+00 : f32
    %824 = vector.broadcast %cst_241 : f32 to vector<8x32xf32>
    %825 = arith.addf %824, %823 : vector<8x32xf32>
    %826 = arith.divf %824, %825 : vector<8x32xf32>
    %827 = arith.mulf %818, %760 : vector<8x32xf32>
    %828 = arith.mulf %812, %820 : vector<8x32xf32>
    %829 = arith.addf %827, %828 : vector<8x32xf32>
    %830 = math.tanh %829 : vector<8x32xf32>
    %831 = arith.mulf %826, %830 : vector<8x32xf32>
    %832 = vector.extract_strided_slice %806 {offsets = [0, 0], sizes = [8, 32], strides = [1, 1]} : vector<8x128xf32> to vector<8x32xf32>
    %833 = arith.negf %832 : vector<8x32xf32>
    %834 = math.exp %833 : vector<8x32xf32>
    %cst_242 = arith.constant 1.000000e+00 : f32
    %835 = vector.broadcast %cst_242 : f32 to vector<8x32xf32>
    %836 = arith.addf %835, %834 : vector<8x32xf32>
    %837 = arith.divf %835, %836 : vector<8x32xf32>
    %838 = vector.extract_strided_slice %806 {offsets = [0, 32], sizes = [8, 32], strides = [1, 1]} : vector<8x128xf32> to vector<8x32xf32>
    %839 = arith.negf %838 : vector<8x32xf32>
    %840 = math.exp %839 : vector<8x32xf32>
    %cst_243 = arith.constant 1.000000e+00 : f32
    %841 = vector.broadcast %cst_243 : f32 to vector<8x32xf32>
    %842 = arith.addf %841, %840 : vector<8x32xf32>
    %843 = arith.divf %841, %842 : vector<8x32xf32>
    %844 = vector.extract_strided_slice %806 {offsets = [0, 64], sizes = [8, 32], strides = [1, 1]} : vector<8x128xf32> to vector<8x32xf32>
    %845 = math.tanh %844 : vector<8x32xf32>
    %846 = vector.extract_strided_slice %806 {offsets = [0, 96], sizes = [8, 32], strides = [1, 1]} : vector<8x128xf32> to vector<8x32xf32>
    %847 = arith.negf %846 : vector<8x32xf32>
    %848 = math.exp %847 : vector<8x32xf32>
    %cst_244 = arith.constant 1.000000e+00 : f32
    %849 = vector.broadcast %cst_244 : f32 to vector<8x32xf32>
    %850 = arith.addf %849, %848 : vector<8x32xf32>
    %851 = arith.divf %849, %850 : vector<8x32xf32>
    %852 = arith.mulf %843, %785 : vector<8x32xf32>
    %853 = arith.mulf %837, %845 : vector<8x32xf32>
    %854 = arith.addf %852, %853 : vector<8x32xf32>
    %855 = math.tanh %854 : vector<8x32xf32>
    %856 = arith.mulf %851, %855 : vector<8x32xf32>
    %857 = arith.index_cast %c3_i32_231 : i32 to index
    %c0_245 = arith.constant 0 : index
    %c0_246 = arith.constant 0 : index
    %858 = vector.load %arg15[%857, %c0_245, %c0_246] : memref<8x8x32xf32, #tpu.memory_space<vmem>>, vector<1x8x32xf32>
    %859 = vector.shape_cast %858 : vector<1x8x32xf32> to vector<8x32xf32>
    %860 = vector.shape_cast %831 : vector<8x32xf32> to vector<1x8x32xf32>
    tpu.vector_store %arg15[%857, %c0_245, %c0_246], %860 {strides = array<i32>} : memref<8x8x32xf32, #tpu.memory_space<vmem>>, vector<1x8x32xf32>,
    %861 = arith.index_cast %796 : i32 to index
    %c0_247 = arith.constant 0 : index
    %c0_248 = arith.constant 0 : index
    %862 = vector.load %arg16[%861, %c0_247, %c0_248] : memref<8x8x32xf32, #tpu.memory_space<vmem>>, vector<1x8x32xf32>
    %863 = vector.shape_cast %862 : vector<1x8x32xf32> to vector<8x32xf32>
    %864 = vector.shape_cast %856 : vector<8x32xf32> to vector<1x8x32xf32>
    tpu.vector_store %arg16[%861, %c0_247, %c0_248], %864 {strides = array<i32>} : memref<8x8x32xf32, #tpu.memory_space<vmem>>, vector<1x8x32xf32>,
    %c4_i32_249 = arith.constant 4 : i32
    %c7_i32_250 = arith.constant 7 : i32
    %865 = arith.subi %c7_i32_250, %c4_i32_249 : i32
    %866 = arith.index_cast %c4_i32_249 : i32 to index
    %c0_251 = arith.constant 0 : index
    %c0_252 = arith.constant 0 : index
    %867 = vector.load %arg13[%866, %c0_251, %c0_252] : memref<8x8x128xf32, #tpu.memory_space<vmem>>, vector<1x8x128xf32>
    %868 = vector.shape_cast %867 : vector<1x8x128xf32> to vector<8x128xf32>
    %cst_253 = arith.constant dense<0.000000e+00> : vector<8x128xf32>
    %869 = tpu.matmul %831, %586, %cst_253 {dimension_numbers = #tpu.dot_dimension_numbers<[1], [0], [0], [1], [0, 0, 1, 1], [], []>} : vector<8x32xf32>, vector<32x128xf32>, vector<8x128xf32> -> vector<8x128xf32>
    %870 = arith.addf %868, %869 : vector<8x128xf32>
    %871 = arith.index_cast %865 : i32 to index
    %c0_254 = arith.constant 0 : index
    %c0_255 = arith.constant 0 : index
    %872 = vector.load %arg14[%871, %c0_254, %c0_255] : memref<8x8x128xf32, #tpu.memory_space<vmem>>, vector<1x8x128xf32>
    %873 = vector.shape_cast %872 : vector<1x8x128xf32> to vector<8x128xf32>
    %cst_256 = arith.constant dense<0.000000e+00> : vector<8x128xf32>
    %874 = tpu.matmul %856, %587, %cst_256 {dimension_numbers = #tpu.dot_dimension_numbers<[1], [0], [0], [1], [0, 0, 1, 1], [], []>} : vector<8x32xf32>, vector<32x128xf32>, vector<8x128xf32> -> vector<8x128xf32>
    %875 = arith.addf %873, %874 : vector<8x128xf32>
    %876 = vector.extract_strided_slice %870 {offsets = [0, 0], sizes = [8, 32], strides = [1, 1]} : vector<8x128xf32> to vector<8x32xf32>
    %877 = arith.negf %876 : vector<8x32xf32>
    %878 = math.exp %877 : vector<8x32xf32>
    %cst_257 = arith.constant 1.000000e+00 : f32
    %879 = vector.broadcast %cst_257 : f32 to vector<8x32xf32>
    %880 = arith.addf %879, %878 : vector<8x32xf32>
    %881 = arith.divf %879, %880 : vector<8x32xf32>
    %882 = vector.extract_strided_slice %870 {offsets = [0, 32], sizes = [8, 32], strides = [1, 1]} : vector<8x128xf32> to vector<8x32xf32>
    %883 = arith.negf %882 : vector<8x32xf32>
    %884 = math.exp %883 : vector<8x32xf32>
    %cst_258 = arith.constant 1.000000e+00 : f32
    %885 = vector.broadcast %cst_258 : f32 to vector<8x32xf32>
    %886 = arith.addf %885, %884 : vector<8x32xf32>
    %887 = arith.divf %885, %886 : vector<8x32xf32>
    %888 = vector.extract_strided_slice %870 {offsets = [0, 64], sizes = [8, 32], strides = [1, 1]} : vector<8x128xf32> to vector<8x32xf32>
    %889 = math.tanh %888 : vector<8x32xf32>
    %890 = vector.extract_strided_slice %870 {offsets = [0, 96], sizes = [8, 32], strides = [1, 1]} : vector<8x128xf32> to vector<8x32xf32>
    %891 = arith.negf %890 : vector<8x32xf32>
    %892 = math.exp %891 : vector<8x32xf32>
    %cst_259 = arith.constant 1.000000e+00 : f32
    %893 = vector.broadcast %cst_259 : f32 to vector<8x32xf32>
    %894 = arith.addf %893, %892 : vector<8x32xf32>
    %895 = arith.divf %893, %894 : vector<8x32xf32>
    %896 = arith.mulf %887, %829 : vector<8x32xf32>
    %897 = arith.mulf %881, %889 : vector<8x32xf32>
    %898 = arith.addf %896, %897 : vector<8x32xf32>
    %899 = math.tanh %898 : vector<8x32xf32>
    %900 = arith.mulf %895, %899 : vector<8x32xf32>
    %901 = vector.extract_strided_slice %875 {offsets = [0, 0], sizes = [8, 32], strides = [1, 1]} : vector<8x128xf32> to vector<8x32xf32>
    %902 = arith.negf %901 : vector<8x32xf32>
    %903 = math.exp %902 : vector<8x32xf32>
    %cst_260 = arith.constant 1.000000e+00 : f32
    %904 = vector.broadcast %cst_260 : f32 to vector<8x32xf32>
    %905 = arith.addf %904, %903 : vector<8x32xf32>
    %906 = arith.divf %904, %905 : vector<8x32xf32>
    %907 = vector.extract_strided_slice %875 {offsets = [0, 32], sizes = [8, 32], strides = [1, 1]} : vector<8x128xf32> to vector<8x32xf32>
    %908 = arith.negf %907 : vector<8x32xf32>
    %909 = math.exp %908 : vector<8x32xf32>
    %cst_261 = arith.constant 1.000000e+00 : f32
    %910 = vector.broadcast %cst_261 : f32 to vector<8x32xf32>
    %911 = arith.addf %910, %909 : vector<8x32xf32>
    %912 = arith.divf %910, %911 : vector<8x32xf32>
    %913 = vector.extract_strided_slice %875 {offsets = [0, 64], sizes = [8, 32], strides = [1, 1]} : vector<8x128xf32> to vector<8x32xf32>
    %914 = math.tanh %913 : vector<8x32xf32>
    %915 = vector.extract_strided_slice %875 {offsets = [0, 96], sizes = [8, 32], strides = [1, 1]} : vector<8x128xf32> to vector<8x32xf32>
    %916 = arith.negf %915 : vector<8x32xf32>
    %917 = math.exp %916 : vector<8x32xf32>
    %cst_262 = arith.constant 1.000000e+00 : f32
    %918 = vector.broadcast %cst_262 : f32 to vector<8x32xf32>
    %919 = arith.addf %918, %917 : vector<8x32xf32>
    %920 = arith.divf %918, %919 : vector<8x32xf32>
    %921 = arith.mulf %912, %854 : vector<8x32xf32>
    %922 = arith.mulf %906, %914 : vector<8x32xf32>
    %923 = arith.addf %921, %922 : vector<8x32xf32>
    %924 = math.tanh %923 : vector<8x32xf32>
    %925 = arith.mulf %920, %924 : vector<8x32xf32>
    %926 = arith.index_cast %c4_i32_249 : i32 to index
    %c0_263 = arith.constant 0 : index
    %c0_264 = arith.constant 0 : index
    %927 = vector.load %arg15[%926, %c0_263, %c0_264] : memref<8x8x32xf32, #tpu.memory_space<vmem>>, vector<1x8x32xf32>
    %928 = vector.shape_cast %927 : vector<1x8x32xf32> to vector<8x32xf32>
    %929 = vector.shape_cast %900 : vector<8x32xf32> to vector<1x8x32xf32>
    tpu.vector_store %arg15[%926, %c0_263, %c0_264], %929 {strides = array<i32>} : memref<8x8x32xf32, #tpu.memory_space<vmem>>, vector<1x8x32xf32>,
    %930 = arith.index_cast %865 : i32 to index
    %c0_265 = arith.constant 0 : index
    %c0_266 = arith.constant 0 : index
    %931 = vector.load %arg16[%930, %c0_265, %c0_266] : memref<8x8x32xf32, #tpu.memory_space<vmem>>, vector<1x8x32xf32>
    %932 = vector.shape_cast %931 : vector<1x8x32xf32> to vector<8x32xf32>
    %933 = vector.shape_cast %925 : vector<8x32xf32> to vector<1x8x32xf32>
    tpu.vector_store %arg16[%930, %c0_265, %c0_266], %933 {strides = array<i32>} : memref<8x8x32xf32, #tpu.memory_space<vmem>>, vector<1x8x32xf32>,
    %c5_i32_267 = arith.constant 5 : i32
    %c7_i32_268 = arith.constant 7 : i32
    %934 = arith.subi %c7_i32_268, %c5_i32_267 : i32
    %935 = arith.index_cast %c5_i32_267 : i32 to index
    %c0_269 = arith.constant 0 : index
    %c0_270 = arith.constant 0 : index
    %936 = vector.load %arg13[%935, %c0_269, %c0_270] : memref<8x8x128xf32, #tpu.memory_space<vmem>>, vector<1x8x128xf32>
    %937 = vector.shape_cast %936 : vector<1x8x128xf32> to vector<8x128xf32>
    %cst_271 = arith.constant dense<0.000000e+00> : vector<8x128xf32>
    %938 = tpu.matmul %900, %586, %cst_271 {dimension_numbers = #tpu.dot_dimension_numbers<[1], [0], [0], [1], [0, 0, 1, 1], [], []>} : vector<8x32xf32>, vector<32x128xf32>, vector<8x128xf32> -> vector<8x128xf32>
    %939 = arith.addf %937, %938 : vector<8x128xf32>
    %940 = arith.index_cast %934 : i32 to index
    %c0_272 = arith.constant 0 : index
    %c0_273 = arith.constant 0 : index
    %941 = vector.load %arg14[%940, %c0_272, %c0_273] : memref<8x8x128xf32, #tpu.memory_space<vmem>>, vector<1x8x128xf32>
    %942 = vector.shape_cast %941 : vector<1x8x128xf32> to vector<8x128xf32>
    %cst_274 = arith.constant dense<0.000000e+00> : vector<8x128xf32>
    %943 = tpu.matmul %925, %587, %cst_274 {dimension_numbers = #tpu.dot_dimension_numbers<[1], [0], [0], [1], [0, 0, 1, 1], [], []>} : vector<8x32xf32>, vector<32x128xf32>, vector<8x128xf32> -> vector<8x128xf32>
    %944 = arith.addf %942, %943 : vector<8x128xf32>
    %945 = vector.extract_strided_slice %939 {offsets = [0, 0], sizes = [8, 32], strides = [1, 1]} : vector<8x128xf32> to vector<8x32xf32>
    %946 = arith.negf %945 : vector<8x32xf32>
    %947 = math.exp %946 : vector<8x32xf32>
    %cst_275 = arith.constant 1.000000e+00 : f32
    %948 = vector.broadcast %cst_275 : f32 to vector<8x32xf32>
    %949 = arith.addf %948, %947 : vector<8x32xf32>
    %950 = arith.divf %948, %949 : vector<8x32xf32>
    %951 = vector.extract_strided_slice %939 {offsets = [0, 32], sizes = [8, 32], strides = [1, 1]} : vector<8x128xf32> to vector<8x32xf32>
    %952 = arith.negf %951 : vector<8x32xf32>
    %953 = math.exp %952 : vector<8x32xf32>
    %cst_276 = arith.constant 1.000000e+00 : f32
    %954 = vector.broadcast %cst_276 : f32 to vector<8x32xf32>
    %955 = arith.addf %954, %953 : vector<8x32xf32>
    %956 = arith.divf %954, %955 : vector<8x32xf32>
    %957 = vector.extract_strided_slice %939 {offsets = [0, 64], sizes = [8, 32], strides = [1, 1]} : vector<8x128xf32> to vector<8x32xf32>
    %958 = math.tanh %957 : vector<8x32xf32>
    %959 = vector.extract_strided_slice %939 {offsets = [0, 96], sizes = [8, 32], strides = [1, 1]} : vector<8x128xf32> to vector<8x32xf32>
    %960 = arith.negf %959 : vector<8x32xf32>
    %961 = math.exp %960 : vector<8x32xf32>
    %cst_277 = arith.constant 1.000000e+00 : f32
    %962 = vector.broadcast %cst_277 : f32 to vector<8x32xf32>
    %963 = arith.addf %962, %961 : vector<8x32xf32>
    %964 = arith.divf %962, %963 : vector<8x32xf32>
    %965 = arith.mulf %956, %898 : vector<8x32xf32>
    %966 = arith.mulf %950, %958 : vector<8x32xf32>
    %967 = arith.addf %965, %966 : vector<8x32xf32>
    %968 = math.tanh %967 : vector<8x32xf32>
    %969 = arith.mulf %964, %968 : vector<8x32xf32>
    %970 = vector.extract_strided_slice %944 {offsets = [0, 0], sizes = [8, 32], strides = [1, 1]} : vector<8x128xf32> to vector<8x32xf32>
    %971 = arith.negf %970 : vector<8x32xf32>
    %972 = math.exp %971 : vector<8x32xf32>
    %cst_278 = arith.constant 1.000000e+00 : f32
    %973 = vector.broadcast %cst_278 : f32 to vector<8x32xf32>
    %974 = arith.addf %973, %972 : vector<8x32xf32>
    %975 = arith.divf %973, %974 : vector<8x32xf32>
    %976 = vector.extract_strided_slice %944 {offsets = [0, 32], sizes = [8, 32], strides = [1, 1]} : vector<8x128xf32> to vector<8x32xf32>
    %977 = arith.negf %976 : vector<8x32xf32>
    %978 = math.exp %977 : vector<8x32xf32>
    %cst_279 = arith.constant 1.000000e+00 : f32
    %979 = vector.broadcast %cst_279 : f32 to vector<8x32xf32>
    %980 = arith.addf %979, %978 : vector<8x32xf32>
    %981 = arith.divf %979, %980 : vector<8x32xf32>
    %982 = vector.extract_strided_slice %944 {offsets = [0, 64], sizes = [8, 32], strides = [1, 1]} : vector<8x128xf32> to vector<8x32xf32>
    %983 = math.tanh %982 : vector<8x32xf32>
    %984 = vector.extract_strided_slice %944 {offsets = [0, 96], sizes = [8, 32], strides = [1, 1]} : vector<8x128xf32> to vector<8x32xf32>
    %985 = arith.negf %984 : vector<8x32xf32>
    %986 = math.exp %985 : vector<8x32xf32>
    %cst_280 = arith.constant 1.000000e+00 : f32
    %987 = vector.broadcast %cst_280 : f32 to vector<8x32xf32>
    %988 = arith.addf %987, %986 : vector<8x32xf32>
    %989 = arith.divf %987, %988 : vector<8x32xf32>
    %990 = arith.mulf %981, %923 : vector<8x32xf32>
    %991 = arith.mulf %975, %983 : vector<8x32xf32>
    %992 = arith.addf %990, %991 : vector<8x32xf32>
    %993 = math.tanh %992 : vector<8x32xf32>
    %994 = arith.mulf %989, %993 : vector<8x32xf32>
    %995 = arith.index_cast %c5_i32_267 : i32 to index
    %c0_281 = arith.constant 0 : index
    %c0_282 = arith.constant 0 : index
    %996 = vector.load %arg15[%995, %c0_281, %c0_282] : memref<8x8x32xf32, #tpu.memory_space<vmem>>, vector<1x8x32xf32>
    %997 = vector.shape_cast %996 : vector<1x8x32xf32> to vector<8x32xf32>
    %998 = vector.shape_cast %969 : vector<8x32xf32> to vector<1x8x32xf32>
    tpu.vector_store %arg15[%995, %c0_281, %c0_282], %998 {strides = array<i32>} : memref<8x8x32xf32, #tpu.memory_space<vmem>>, vector<1x8x32xf32>,
    %999 = arith.index_cast %934 : i32 to index
    %c0_283 = arith.constant 0 : index
    %c0_284 = arith.constant 0 : index
    %1000 = vector.load %arg16[%999, %c0_283, %c0_284] : memref<8x8x32xf32, #tpu.memory_space<vmem>>, vector<1x8x32xf32>
    %1001 = vector.shape_cast %1000 : vector<1x8x32xf32> to vector<8x32xf32>
    %1002 = vector.shape_cast %994 : vector<8x32xf32> to vector<1x8x32xf32>
    tpu.vector_store %arg16[%999, %c0_283, %c0_284], %1002 {strides = array<i32>} : memref<8x8x32xf32, #tpu.memory_space<vmem>>, vector<1x8x32xf32>,
    %c6_i32_285 = arith.constant 6 : i32
    %c7_i32_286 = arith.constant 7 : i32
    %1003 = arith.subi %c7_i32_286, %c6_i32_285 : i32
    %1004 = arith.index_cast %c6_i32_285 : i32 to index
    %c0_287 = arith.constant 0 : index
    %c0_288 = arith.constant 0 : index
    %1005 = vector.load %arg13[%1004, %c0_287, %c0_288] : memref<8x8x128xf32, #tpu.memory_space<vmem>>, vector<1x8x128xf32>
    %1006 = vector.shape_cast %1005 : vector<1x8x128xf32> to vector<8x128xf32>
    %cst_289 = arith.constant dense<0.000000e+00> : vector<8x128xf32>
    %1007 = tpu.matmul %969, %586, %cst_289 {dimension_numbers = #tpu.dot_dimension_numbers<[1], [0], [0], [1], [0, 0, 1, 1], [], []>} : vector<8x32xf32>, vector<32x128xf32>, vector<8x128xf32> -> vector<8x128xf32>
    %1008 = arith.addf %1006, %1007 : vector<8x128xf32>
    %1009 = arith.index_cast %1003 : i32 to index
    %c0_290 = arith.constant 0 : index
    %c0_291 = arith.constant 0 : index
    %1010 = vector.load %arg14[%1009, %c0_290, %c0_291] : memref<8x8x128xf32, #tpu.memory_space<vmem>>, vector<1x8x128xf32>
    %1011 = vector.shape_cast %1010 : vector<1x8x128xf32> to vector<8x128xf32>
    %cst_292 = arith.constant dense<0.000000e+00> : vector<8x128xf32>
    %1012 = tpu.matmul %994, %587, %cst_292 {dimension_numbers = #tpu.dot_dimension_numbers<[1], [0], [0], [1], [0, 0, 1, 1], [], []>} : vector<8x32xf32>, vector<32x128xf32>, vector<8x128xf32> -> vector<8x128xf32>
    %1013 = arith.addf %1011, %1012 : vector<8x128xf32>
    %1014 = vector.extract_strided_slice %1008 {offsets = [0, 0], sizes = [8, 32], strides = [1, 1]} : vector<8x128xf32> to vector<8x32xf32>
    %1015 = arith.negf %1014 : vector<8x32xf32>
    %1016 = math.exp %1015 : vector<8x32xf32>
    %cst_293 = arith.constant 1.000000e+00 : f32
    %1017 = vector.broadcast %cst_293 : f32 to vector<8x32xf32>
    %1018 = arith.addf %1017, %1016 : vector<8x32xf32>
    %1019 = arith.divf %1017, %1018 : vector<8x32xf32>
    %1020 = vector.extract_strided_slice %1008 {offsets = [0, 32], sizes = [8, 32], strides = [1, 1]} : vector<8x128xf32> to vector<8x32xf32>
    %1021 = arith.negf %1020 : vector<8x32xf32>
    %1022 = math.exp %1021 : vector<8x32xf32>
    %cst_294 = arith.constant 1.000000e+00 : f32
    %1023 = vector.broadcast %cst_294 : f32 to vector<8x32xf32>
    %1024 = arith.addf %1023, %1022 : vector<8x32xf32>
    %1025 = arith.divf %1023, %1024 : vector<8x32xf32>
    %1026 = vector.extract_strided_slice %1008 {offsets = [0, 64], sizes = [8, 32], strides = [1, 1]} : vector<8x128xf32> to vector<8x32xf32>
    %1027 = math.tanh %1026 : vector<8x32xf32>
    %1028 = vector.extract_strided_slice %1008 {offsets = [0, 96], sizes = [8, 32], strides = [1, 1]} : vector<8x128xf32> to vector<8x32xf32>
    %1029 = arith.negf %1028 : vector<8x32xf32>
    %1030 = math.exp %1029 : vector<8x32xf32>
    %cst_295 = arith.constant 1.000000e+00 : f32
    %1031 = vector.broadcast %cst_295 : f32 to vector<8x32xf32>
    %1032 = arith.addf %1031, %1030 : vector<8x32xf32>
    %1033 = arith.divf %1031, %1032 : vector<8x32xf32>
    %1034 = arith.mulf %1025, %967 : vector<8x32xf32>
    %1035 = arith.mulf %1019, %1027 : vector<8x32xf32>
    %1036 = arith.addf %1034, %1035 : vector<8x32xf32>
    %1037 = math.tanh %1036 : vector<8x32xf32>
    %1038 = arith.mulf %1033, %1037 : vector<8x32xf32>
    %1039 = vector.extract_strided_slice %1013 {offsets = [0, 0], sizes = [8, 32], strides = [1, 1]} : vector<8x128xf32> to vector<8x32xf32>
    %1040 = arith.negf %1039 : vector<8x32xf32>
    %1041 = math.exp %1040 : vector<8x32xf32>
    %cst_296 = arith.constant 1.000000e+00 : f32
    %1042 = vector.broadcast %cst_296 : f32 to vector<8x32xf32>
    %1043 = arith.addf %1042, %1041 : vector<8x32xf32>
    %1044 = arith.divf %1042, %1043 : vector<8x32xf32>
    %1045 = vector.extract_strided_slice %1013 {offsets = [0, 32], sizes = [8, 32], strides = [1, 1]} : vector<8x128xf32> to vector<8x32xf32>
    %1046 = arith.negf %1045 : vector<8x32xf32>
    %1047 = math.exp %1046 : vector<8x32xf32>
    %cst_297 = arith.constant 1.000000e+00 : f32
    %1048 = vector.broadcast %cst_297 : f32 to vector<8x32xf32>
    %1049 = arith.addf %1048, %1047 : vector<8x32xf32>
    %1050 = arith.divf %1048, %1049 : vector<8x32xf32>
    %1051 = vector.extract_strided_slice %1013 {offsets = [0, 64], sizes = [8, 32], strides = [1, 1]} : vector<8x128xf32> to vector<8x32xf32>
    %1052 = math.tanh %1051 : vector<8x32xf32>
    %1053 = vector.extract_strided_slice %1013 {offsets = [0, 96], sizes = [8, 32], strides = [1, 1]} : vector<8x128xf32> to vector<8x32xf32>
    %1054 = arith.negf %1053 : vector<8x32xf32>
    %1055 = math.exp %1054 : vector<8x32xf32>
    %cst_298 = arith.constant 1.000000e+00 : f32
    %1056 = vector.broadcast %cst_298 : f32 to vector<8x32xf32>
    %1057 = arith.addf %1056, %1055 : vector<8x32xf32>
    %1058 = arith.divf %1056, %1057 : vector<8x32xf32>
    %1059 = arith.mulf %1050, %992 : vector<8x32xf32>
    %1060 = arith.mulf %1044, %1052 : vector<8x32xf32>
    %1061 = arith.addf %1059, %1060 : vector<8x32xf32>
    %1062 = math.tanh %1061 : vector<8x32xf32>
    %1063 = arith.mulf %1058, %1062 : vector<8x32xf32>
    %1064 = arith.index_cast %c6_i32_285 : i32 to index
    %c0_299 = arith.constant 0 : index
    %c0_300 = arith.constant 0 : index
    %1065 = vector.load %arg15[%1064, %c0_299, %c0_300] : memref<8x8x32xf32, #tpu.memory_space<vmem>>, vector<1x8x32xf32>
    %1066 = vector.shape_cast %1065 : vector<1x8x32xf32> to vector<8x32xf32>
    %1067 = vector.shape_cast %1038 : vector<8x32xf32> to vector<1x8x32xf32>
    tpu.vector_store %arg15[%1064, %c0_299, %c0_300], %1067 {strides = array<i32>} : memref<8x8x32xf32, #tpu.memory_space<vmem>>, vector<1x8x32xf32>,
    %1068 = arith.index_cast %1003 : i32 to index
    %c0_301 = arith.constant 0 : index
    %c0_302 = arith.constant 0 : index
    %1069 = vector.load %arg16[%1068, %c0_301, %c0_302] : memref<8x8x32xf32, #tpu.memory_space<vmem>>, vector<1x8x32xf32>
    %1070 = vector.shape_cast %1069 : vector<1x8x32xf32> to vector<8x32xf32>
    %1071 = vector.shape_cast %1063 : vector<8x32xf32> to vector<1x8x32xf32>
    tpu.vector_store %arg16[%1068, %c0_301, %c0_302], %1071 {strides = array<i32>} : memref<8x8x32xf32, #tpu.memory_space<vmem>>, vector<1x8x32xf32>,
    %c7_i32_303 = arith.constant 7 : i32
    %c7_i32_304 = arith.constant 7 : i32
    %1072 = arith.subi %c7_i32_304, %c7_i32_303 : i32
    %1073 = arith.index_cast %c7_i32_303 : i32 to index
    %c0_305 = arith.constant 0 : index
    %c0_306 = arith.constant 0 : index
    %1074 = vector.load %arg13[%1073, %c0_305, %c0_306] : memref<8x8x128xf32, #tpu.memory_space<vmem>>, vector<1x8x128xf32>
    %1075 = vector.shape_cast %1074 : vector<1x8x128xf32> to vector<8x128xf32>
    %cst_307 = arith.constant dense<0.000000e+00> : vector<8x128xf32>
    %1076 = tpu.matmul %1038, %586, %cst_307 {dimension_numbers = #tpu.dot_dimension_numbers<[1], [0], [0], [1], [0, 0, 1, 1], [], []>} : vector<8x32xf32>, vector<32x128xf32>, vector<8x128xf32> -> vector<8x128xf32>
    %1077 = arith.addf %1075, %1076 : vector<8x128xf32>
    %1078 = arith.index_cast %1072 : i32 to index
    %c0_308 = arith.constant 0 : index
    %c0_309 = arith.constant 0 : index
    %1079 = vector.load %arg14[%1078, %c0_308, %c0_309] : memref<8x8x128xf32, #tpu.memory_space<vmem>>, vector<1x8x128xf32>
    %1080 = vector.shape_cast %1079 : vector<1x8x128xf32> to vector<8x128xf32>
    %cst_310 = arith.constant dense<0.000000e+00> : vector<8x128xf32>
    %1081 = tpu.matmul %1063, %587, %cst_310 {dimension_numbers = #tpu.dot_dimension_numbers<[1], [0], [0], [1], [0, 0, 1, 1], [], []>} : vector<8x32xf32>, vector<32x128xf32>, vector<8x128xf32> -> vector<8x128xf32>
    %1082 = arith.addf %1080, %1081 : vector<8x128xf32>
    %1083 = vector.extract_strided_slice %1077 {offsets = [0, 0], sizes = [8, 32], strides = [1, 1]} : vector<8x128xf32> to vector<8x32xf32>
    %1084 = arith.negf %1083 : vector<8x32xf32>
    %1085 = math.exp %1084 : vector<8x32xf32>
    %cst_311 = arith.constant 1.000000e+00 : f32
    %1086 = vector.broadcast %cst_311 : f32 to vector<8x32xf32>
    %1087 = arith.addf %1086, %1085 : vector<8x32xf32>
    %1088 = arith.divf %1086, %1087 : vector<8x32xf32>
    %1089 = vector.extract_strided_slice %1077 {offsets = [0, 32], sizes = [8, 32], strides = [1, 1]} : vector<8x128xf32> to vector<8x32xf32>
    %1090 = arith.negf %1089 : vector<8x32xf32>
    %1091 = math.exp %1090 : vector<8x32xf32>
    %cst_312 = arith.constant 1.000000e+00 : f32
    %1092 = vector.broadcast %cst_312 : f32 to vector<8x32xf32>
    %1093 = arith.addf %1092, %1091 : vector<8x32xf32>
    %1094 = arith.divf %1092, %1093 : vector<8x32xf32>
    %1095 = vector.extract_strided_slice %1077 {offsets = [0, 64], sizes = [8, 32], strides = [1, 1]} : vector<8x128xf32> to vector<8x32xf32>
    %1096 = math.tanh %1095 : vector<8x32xf32>
    %1097 = vector.extract_strided_slice %1077 {offsets = [0, 96], sizes = [8, 32], strides = [1, 1]} : vector<8x128xf32> to vector<8x32xf32>
    %1098 = arith.negf %1097 : vector<8x32xf32>
    %1099 = math.exp %1098 : vector<8x32xf32>
    %cst_313 = arith.constant 1.000000e+00 : f32
    %1100 = vector.broadcast %cst_313 : f32 to vector<8x32xf32>
    %1101 = arith.addf %1100, %1099 : vector<8x32xf32>
    %1102 = arith.divf %1100, %1101 : vector<8x32xf32>
    %1103 = arith.mulf %1094, %1036 : vector<8x32xf32>
    %1104 = arith.mulf %1088, %1096 : vector<8x32xf32>
    %1105 = arith.addf %1103, %1104 : vector<8x32xf32>
    %1106 = math.tanh %1105 : vector<8x32xf32>
    %1107 = arith.mulf %1102, %1106 : vector<8x32xf32>
    %1108 = vector.extract_strided_slice %1082 {offsets = [0, 0], sizes = [8, 32], strides = [1, 1]} : vector<8x128xf32> to vector<8x32xf32>
    %1109 = arith.negf %1108 : vector<8x32xf32>
    %1110 = math.exp %1109 : vector<8x32xf32>
    %cst_314 = arith.constant 1.000000e+00 : f32
    %1111 = vector.broadcast %cst_314 : f32 to vector<8x32xf32>
    %1112 = arith.addf %1111, %1110 : vector<8x32xf32>
    %1113 = arith.divf %1111, %1112 : vector<8x32xf32>
    %1114 = vector.extract_strided_slice %1082 {offsets = [0, 32], sizes = [8, 32], strides = [1, 1]} : vector<8x128xf32> to vector<8x32xf32>
    %1115 = arith.negf %1114 : vector<8x32xf32>
    %1116 = math.exp %1115 : vector<8x32xf32>
    %cst_315 = arith.constant 1.000000e+00 : f32
    %1117 = vector.broadcast %cst_315 : f32 to vector<8x32xf32>
    %1118 = arith.addf %1117, %1116 : vector<8x32xf32>
    %1119 = arith.divf %1117, %1118 : vector<8x32xf32>
    %1120 = vector.extract_strided_slice %1082 {offsets = [0, 64], sizes = [8, 32], strides = [1, 1]} : vector<8x128xf32> to vector<8x32xf32>
    %1121 = math.tanh %1120 : vector<8x32xf32>
    %1122 = vector.extract_strided_slice %1082 {offsets = [0, 96], sizes = [8, 32], strides = [1, 1]} : vector<8x128xf32> to vector<8x32xf32>
    %1123 = arith.negf %1122 : vector<8x32xf32>
    %1124 = math.exp %1123 : vector<8x32xf32>
    %cst_316 = arith.constant 1.000000e+00 : f32
    %1125 = vector.broadcast %cst_316 : f32 to vector<8x32xf32>
    %1126 = arith.addf %1125, %1124 : vector<8x32xf32>
    %1127 = arith.divf %1125, %1126 : vector<8x32xf32>
    %1128 = arith.mulf %1119, %1061 : vector<8x32xf32>
    %1129 = arith.mulf %1113, %1121 : vector<8x32xf32>
    %1130 = arith.addf %1128, %1129 : vector<8x32xf32>
    %1131 = math.tanh %1130 : vector<8x32xf32>
    %1132 = arith.mulf %1127, %1131 : vector<8x32xf32>
    %1133 = arith.index_cast %c7_i32_303 : i32 to index
    %c0_317 = arith.constant 0 : index
    %c0_318 = arith.constant 0 : index
    %1134 = vector.load %arg15[%1133, %c0_317, %c0_318] : memref<8x8x32xf32, #tpu.memory_space<vmem>>, vector<1x8x32xf32>
    %1135 = vector.shape_cast %1134 : vector<1x8x32xf32> to vector<8x32xf32>
    %1136 = vector.shape_cast %1107 : vector<8x32xf32> to vector<1x8x32xf32>
    tpu.vector_store %arg15[%1133, %c0_317, %c0_318], %1136 {strides = array<i32>} : memref<8x8x32xf32, #tpu.memory_space<vmem>>, vector<1x8x32xf32>,
    %1137 = arith.index_cast %1072 : i32 to index
    %c0_319 = arith.constant 0 : index
    %c0_320 = arith.constant 0 : index
    %1138 = vector.load %arg16[%1137, %c0_319, %c0_320] : memref<8x8x32xf32, #tpu.memory_space<vmem>>, vector<1x8x32xf32>
    %1139 = vector.shape_cast %1138 : vector<1x8x32xf32> to vector<8x32xf32>
    %1140 = vector.shape_cast %1132 : vector<8x32xf32> to vector<1x8x32xf32>
    tpu.vector_store %arg16[%1137, %c0_319, %c0_320], %1140 {strides = array<i32>} : memref<8x8x32xf32, #tpu.memory_space<vmem>>, vector<1x8x32xf32>,
    %c8_i32_321 = arith.constant 8 : i32
    %c7 = arith.constant 7 : index
    %c0_322 = arith.constant 0 : index
    %c0_323 = arith.constant 0 : index
    %1141 = vector.load %arg15[%c7, %c0_322, %c0_323] : memref<8x8x32xf32, #tpu.memory_space<vmem>>, vector<1x8x32xf32>
    %1142 = vector.shape_cast %1141 : vector<1x8x32xf32> to vector<8x32xf32>
    %c7_324 = arith.constant 7 : index
    %c0_325 = arith.constant 0 : index
    %c0_326 = arith.constant 0 : index
    %1143 = vector.load %arg16[%c7_324, %c0_325, %c0_326] : memref<8x8x32xf32, #tpu.memory_space<vmem>>, vector<1x8x32xf32>
    %1144 = vector.shape_cast %1143 : vector<1x8x32xf32> to vector<8x32xf32>
    %c0_327 = arith.constant 0 : index
    %c0_328 = arith.constant 0 : index
    %1145 = vector.load %arg10[%c0_327, %c0_328] : memref<64x1xf32, #tpu.memory_space<vmem>>, vector<32x1xf32>
    %cst_329 = arith.constant dense<0.000000e+00> : vector<8x1xf32>
    %1146 = tpu.matmul %1142, %1145, %cst_329 {dimension_numbers = #tpu.dot_dimension_numbers<[1], [0], [0], [1], [0, 0, 1, 1], [], []>} : vector<8x32xf32>, vector<32x1xf32>, vector<8x1xf32> -> vector<8x1xf32>
    %c32_330 = arith.constant 32 : index
    %c0_331 = arith.constant 0 : index
    %1147 = vector.load %arg10[%c32_330, %c0_331] : memref<64x1xf32, #tpu.memory_space<vmem>>, vector<32x1xf32>
    %cst_332 = arith.constant dense<0.000000e+00> : vector<8x1xf32>
    %1148 = tpu.matmul %1144, %1147, %cst_332 {dimension_numbers = #tpu.dot_dimension_numbers<[1], [0], [0], [1], [0, 0, 1, 1], [], []>} : vector<8x32xf32>, vector<32x1xf32>, vector<8x1xf32> -> vector<8x1xf32>
    %1149 = arith.addf %1146, %1148 : vector<8x1xf32>
    %c0_333 = arith.constant 0 : index
    %c0_334 = arith.constant 0 : index
    %1150 = vector.load %arg11[%c0_333, %c0_334] : memref<1x1xf32, #tpu.memory_space<vmem>>, vector<1x1xf32>
    %1151 = vector.broadcast %1150 : vector<1x1xf32> to vector<8x1xf32>
    %1152 = arith.addf %1149, %1151 : vector<8x1xf32>
    %c0_335 = arith.constant 0 : index
    %c0_336 = arith.constant 0 : index
    %1153 = vector.load %arg12[%c0_335, %c0_336] : memref<8x1xf32, #tpu.memory_space<vmem>>, vector<8x1xf32>
    tpu.vector_store %arg12[%c0_335, %c0_336], %1152 {strides = array<i32>} : memref<8x1xf32, #tpu.memory_space<vmem>>, vector<8x1xf32>,
    return
  }
  func.func @transform_0(%arg0: i32) -> (i32, i32, i32) {
    %c0_i32 = arith.constant 0 : i32
    %c0_i32_0 = arith.constant 0 : i32
    %c0_i32_1 = arith.constant 0 : i32
    %c0_i32_2 = arith.constant 0 : i32
    return %c0_i32, %c0_i32_0, %c0_i32_1 : i32, i32, i32
  }
  func.func @transform_1(%arg0: i32) -> (i32, i32) {
    %c0_i32 = arith.constant 0 : i32
    %c0_i32_0 = arith.constant 0 : i32
    %c0_i32_1 = arith.constant 0 : i32
    return %c0_i32, %c0_i32_0 : i32, i32
  }
  func.func @transform_2(%arg0: i32) -> (i32, i32) {
    %c0_i32 = arith.constant 0 : i32
    %c0_i32_0 = arith.constant 0 : i32
    %c0_i32_1 = arith.constant 0 : i32
    return %c0_i32, %c0_i32_0 : i32, i32
  }
  func.func @transform_3(%arg0: i32) -> (i32, i32) {
    %c0_i32 = arith.constant 0 : i32
    %c0_i32_0 = arith.constant 0 : i32
    %c0_i32_1 = arith.constant 0 : i32
    return %c0_i32, %c0_i32_0 : i32, i32
  }
  func.func @transform_4(%arg0: i32) -> (i32, i32) {
    %c0_i32 = arith.constant 0 : i32
    %c0_i32_0 = arith.constant 0 : i32
    %c0_i32_1 = arith.constant 0 : i32
    return %c0_i32, %c0_i32_0 : i32, i32
  }
  func.func @transform_5(%arg0: i32) -> (i32, i32) {
    %c0_i32 = arith.constant 0 : i32
    %c0_i32_0 = arith.constant 0 : i32
    %c0_i32_1 = arith.constant 0 : i32
    return %c0_i32, %c0_i32_0 : i32, i32
  }
  func.func @transform_6(%arg0: i32) -> (i32, i32) {
    %c0_i32 = arith.constant 0 : i32
    %c0_i32_0 = arith.constant 0 : i32
    %c0_i32_1 = arith.constant 0 : i32
    return %c0_i32, %c0_i32_0 : i32, i32
  }
  func.func @transform_7(%arg0: i32) -> (i32, i32) {
    %c0_i32 = arith.constant 0 : i32
    %c0_i32_0 = arith.constant 0 : i32
    %c0_i32_1 = arith.constant 0 : i32
    return %c0_i32, %c0_i32_0 : i32, i32
  }
  func.func @transform_8(%arg0: i32) -> (i32, i32) {
    %c0_i32 = arith.constant 0 : i32
    %c0_i32_0 = arith.constant 0 : i32
    %c0_i32_1 = arith.constant 0 : i32
    return %c0_i32, %c0_i32_0 : i32, i32
  }
  func.func @transform_9(%arg0: i32) -> (i32, i32) {
    %c0_i32 = arith.constant 0 : i32
    %c0_i32_0 = arith.constant 0 : i32
    %c0_i32_1 = arith.constant 0 : i32
    return %c0_i32, %c0_i32_0 : i32, i32
  }
  func.func @transform_10(%arg0: i32) -> (i32, i32) {
    %c0_i32 = arith.constant 0 : i32
    %c0_i32_0 = arith.constant 0 : i32
    %c0_i32_1 = arith.constant 0 : i32
    return %c0_i32, %c0_i32_0 : i32, i32
  }
  func.func @transform_11(%arg0: i32) -> (i32, i32) {
    %c0_i32 = arith.constant 0 : i32
    %c0_i32_0 = arith.constant 0 : i32
    %c0_i32_1 = arith.constant 0 : i32
    return %c0_i32, %c0_i32_0 : i32, i32
  }
}

</mosaic_0001>

<bundles_post_ra>
// kernel: lstm_model_forward.1
= control target key start
LH: loop header
LB: loop body
LE: loop exit
PB: predicated region body
PF: predicated region fallthrough
CT: control target
= control target key end

     0   :  { %v5213_v3 = vmov 0.0|0.0   ;;  %v5214_v4 = vmov 0.0   ;;  %vm5215_vm0 = vmmov 0   ;;  %vm68_vm1 = vcmask 261120   ;;  %s6100_s1 = inlined_call_operand.vmem [shape: f32[32,256], index: 1, kind: input, shape index: {}]   ;;  %s6101_s3 = inlined_call_operand.vmem [shape: f32[32,128], index: 3, kind: input, shape index: {}]   ;;  %s6102_s4 = inlined_call_operand.vmem [shape: f32[32,128], index: 4, kind: input, shape index: {}]   ;;  %s6103_s0 = inlined_call_operand.vmem [shape: f32[8,8,32], index: 0, kind: input, shape index: {}]   ;;  %s6104_s2 = inlined_call_operand.vmem [shape: f32[1,256], index: 2, kind: input, shape index: {}]   ;;  %s6105_s5 = inlined_call_operand.vmem [shape: f32[64,256], index: 5, kind: input, shape index: {}]   ;;  %s6106_s7 = inlined_call_operand.vmem [shape: f32[32,128], index: 7, kind: input, shape index: {}]   ;;  %s6107_s8 = inlined_call_operand.vmem [shape: f32[32,128], index: 8, kind: input, shape index: {}]   ;;  %s6108_s6 = inlined_call_operand.vmem [shape: f32[1,256], index: 6, kind: input, shape index: {}]   ;;  %s6109_s9 = inlined_call_operand.vmem [shape: f32[64,1], index: 9, kind: input, shape index: {}]   ;;  %s6110_s10 = inlined_call_operand.<no memory space> [shape: f32[1,1], index: 10, kind: input, shape index: {}]   ;;  %s6111_s11 = inlined_call_operand.vmem [shape: f32[8,1], index: 11, kind: output, shape index: {}]  }
   0x1   :  { %v50_v0 = vld [vmem:[%s6100_s1 + $0x8] sm:$0xff]  ;;  %v52_v1 = vld [vmem:[%s6100_s1 + $0x18] sm:$0xff]  ;;  %v49_v2 = vld [vmem:[%s6100_s1] sm:$0xff]  ;;  %4716 = vmatprep.subr.bf16.mxu1 %v5213_v3  ;;  %157 = vmatprep.mubr.f32.mxu0 %v5214_v4  ;;  %v58_v34 = vlaneseq  ;;  %vm4071_vm2 = vcmask 7168  }
   0x2   :  { %v4708_v5 = vpack.c.bf16 %v52_v1, %v50_v0  ;;  %v51_v6 = vld [vmem:[%s6100_s1 + $0x10] sm:$0xff]  ;;  %v222_v7 = vld [vmem:[%s6101_s3] sm:$0xff]  ;;  %v223_v8 = vld [vmem:[%s6101_s3 + $0x8] sm:$0xff]  ;;  %4342 = vmatprep.mubr.msk.f32.mxu1 %vm5215_vm0, %v5214_v4 }
   0x3   :  { %v4710_v9 = vpack.c.bf16 %v51_v6, %v49_v2  ;;  %v5300_v10 = vpack.c.bf16 %v223_v8, %v222_v7  ;;  %v54_v11 = vld [vmem:[%s6100_s1 + $0x28] sm:$0xff]  ;;  %v56_v12 = vld [vmem:[%s6100_s1 + $0x38] sm:$0xff]  ;;  %v53_v13 = vld [vmem:[%s6100_s1 + $0x20] sm:$0xff]  ;;  %v5402_v35 = vshrl.u32 %v58_v34, 7 }
   0x4   :  { %4709 = vmatprep.subr.bf16.mxu0 %v4708_v5  ;;  %v4712_v14 = vpack.c.bf16 %v56_v12, %v54_v11  ;;  %v55_v15 = vld [vmem:[%s6100_s1 + $0x30] sm:$0xff]  ;;  %v225_v17 = vld [vmem:[%s6101_s3 + $0x18] sm:$0xff]  ;;  %v226_v20 = vld [vmem:[%s6102_s4] sm:$0xff] }
   0x5   :  { %v224_v16 = vld [vmem:[%s6101_s3 + $0x10] sm:$0xff]  ;;  %4711 = vmatpush1.bf16.msra.mxu0 %v4710_v9  ;;  %4718 = vmatpush3.bf16.msra.mxu1 %v5300_v10  ;;  %v4714_v18 = vpack.c.bf16 %v55_v15, %v53_v13  ;;  %v227_v21 = vld [vmem:[%s6102_s4 + $0x8] sm:$0xff]  ;;  %v41_v22 = vld [vmem:[%s6103_s0] sm:$0xff]  ;;  %v60_v36 = vsub.s32 0, %v5402_v35  ;;  %v64_v38 = vsub.s32 1, %v5402_v35 }
   0x6   :  { %v5321_v19 = vpack.c.bf16 %v225_v17, %v224_v16  ;;  %4713 = vmatprep.subr.bf16.mxu0 %v4712_v14  ;;  %4719 = vmatprep.subr.bf16.mxu1 %v5213_v3  ;;  %v5334_v23 = vpack.c.bf16 %v227_v21, %v226_v20  ;;  %v228_v24 = vld [vmem:[%s6102_s4 + $0x10] sm:$0xff]  ;;  %v229_v25 = vld [vmem:[%s6102_s4 + $0x18] sm:$0xff]  ;;  %v42_v26 = vld [vmem:[%s6103_s0 + $0x8] sm:$0xff] }
   0x7   :  { %v5351_v27 = vpack.c.bf16 %v229_v25, %v228_v24  ;;  %v43_v28 = vld [vmem:[%s6103_s0 + $0x10] sm:$0xff]  ;;  %v44_v29 = vld [vmem:[%s6103_s0 + $0x18] sm:$0xff]  ;;  %v45_v30 = vld [vmem:[%s6103_s0 + $0x20] sm:$0xff] }
   0x8   :  { %v46_v31 = vld [vmem:[%s6103_s0 + $0x28] sm:$0xff]  ;;  %v47_v32 = vld [vmem:[%s6103_s0 + $0x30] sm:$0xff]  ;;  %v48_v33 = vld [vmem:[%s6103_s0 + $0x38] sm:$0xff]  ;;  %s5216_s0 = smov 64  }
   0x9   :  { %4715 = vmatpush1.bf16.msra.mxu0 %v4714_v18  ;;  %4721 = vmatpush3.bf16.msra.mxu1 %v5321_v19  ;;  %v40_v37 = vld [vmem:[%s6104_s2] sm:$0x3]  ;;  %s5217_s2 = smov 32  }
   0xa   :  { %4722 = vmatprep.subr.bf16.mxu1 %v5213_v3  ;;  %4740 = vmatprep.subr.bf16.mxu0 %v5213_v3  ;;  %v61_v39 = vrot.slane %v40_v37, %v60_v36  ;;  %v65_v40 = vrot.slane %v40_v37, %v64_v38 }
   0xc   :  { %4077 = vmatmul.mubr.msk.f32.vlgmr.msra.gmra.mrb[0].mxu0 %vm68_vm1, %v41_v22  ;;  %4343 = vmatmul.mubr.f32.vlgmr.msra.gmra.mrb[0].mxu1 %v5214_v4 }
   0xd   :  { %163 = vmatprep.mubr.f32.mxu0 %v5214_v4  ;;  %4724 = vmatpush3.bf16.msra.mxu1 %v5334_v23 }
   0xe   :  { %4725 = vmatprep.subr.bf16.mxu1 %v5213_v3  ;;  %4353 = vmatprep.mubr.msk.f32.mxu1 %vm5215_vm0, %v5214_v4 }
   0xf   :  { %4742 = vmatpush3.bf16.msra.mxu0 %v5300_v10 }
  0x10   :  { %4078 = vmatmul.mubr.msk.f32.gmra.mrb[2].mxu0 %vm68_vm1, %v42_v26  ;;  %4743 = vmatprep.subr.bf16.mxu0 %v5213_v3 }
  0x11   :  { %169 = vmatprep.mubr.f32.mxu0 %v5214_v4  ;;  %4727 = vmatpush3.bf16.msra.mxu1 %v5351_v27 }
  0x12   :  { %4728 = vmatprep.subr.bf16.mxu1 %v5213_v3 }
  0x13   :  { %4745 = vmatpush3.bf16.msra.mxu0 %v5321_v19 }
  0x14   :  { %4079 = vmatmul.mubr.msk.f32.gmra.mrb[4].mxu0 %vm68_vm1, %v43_v28  ;;  %4354 = vmatmul.mubr.f32.vlgmr.msra.gmra.mrb[2].mxu1 %v5214_v4 }
  0x15   :  { %175 = vmatprep.mubr.f32.mxu0 %v5214_v4  ;;  %4730 = vmatpush3.bf16.msra.mxu1 %v5300_v10 }
  0x16   :  { %4731 = vmatprep.subr.bf16.mxu1 %v5213_v3  ;;  %4364 = vmatprep.mubr.msk.f32.mxu1 %vm5215_vm0, %v5214_v4 }
  0x17   :  { %4752 = vmatprep.subr.bf16.mxu0 %v5213_v3 }
  0x18   :  { %4080 = vmatmul.mubr.msk.f32.gmra.mrb[6].mxu0 %vm68_vm1, %v44_v29 }
  0x19   :  { %181 = vmatprep.mubr.f32.mxu0 %v5214_v4  ;;  %4733 = vmatpush3.bf16.msra.mxu1 %v5321_v19 }
  0x1a   :  { %4734 = vmatprep.subr.bf16.mxu1 %v5213_v3 }
  0x1c   :  { %4081 = vmatmul.mubr.msk.f32.gmra.mrb[8].mxu0 %vm68_vm1, %v45_v30 }
  0x1d   :  { %187 = vmatprep.mubr.f32.mxu0 %v5214_v4 }
  0x20   :  { %4082 = vmatmul.mubr.msk.f32.gmra.mrb[10].mxu0 %vm68_vm1, %v46_v31 }
  0x21   :  { %193 = vmatprep.mubr.f32.mxu0 %v5214_v4 }
  0x24   :  { %4083 = vmatmul.mubr.msk.f32.gmra.mrb[12].mxu0 %vm68_vm1, %v47_v32 }
  0x25   :  { %199 = vmatprep.mubr.f32.mxu0 %v5214_v4 }
  0x28   :  { %4084 = vmatmul.mubr.msk.f32.gmra.mrb[14].mxu0 %vm68_vm1, %v48_v33 }
  0x29   :  { %4386 = vmatprep.mubr.msk.f32.mxu0 %vm5215_vm0, %v5214_v4 }
  0xdf   :  { %v159_v41 = vpop.f32.mrb[0].mxu0  ;;  %v300_v42 = vpop.f32.mrb[0].mxu1 }
  0xe0   :  { %v160_v43 = vadd.f32 %v159_v41, %v61_v39  ;;  %v161_v44 = vpop.f32.mrb[1].mxu0  ;;  %v4344_v45 = vpop.f32.mrb[1].mxu1 }
  0xe1   :  { %v5413_v46 = vadd.f32 %v161_v44, %v65_v40 }
  0xe2   :  { %v304_v47 = vadd.f32 %v300_v42, %v160_v43 }
  0xe3   :  { %v165_v48 = vpop.f32.mrb[2].mxu0 }
  0xe4   :  { %4957 = vtanh.f32 %v304_v47  ;;  %v5415_v49 = vadd.f32 %v165_v48, %v61_v39  ;;  %v167_v50 = vpop.f32.mrb[3].mxu0  ;;  %v4085_v21 = vmul.f32 -1.442695, %v304_v47 }
  0xe5   :  { %v5417_v51 = vadd.f32 %v167_v50, %v65_v40 }
  0xe7   :  { %v171_v52 = vpop.f32.mrb[4].mxu0  ;;  %v373_v53 = vpop.f32.mrb[2].mxu1 }
  0xe8   :  { %v5419_v54 = vadd.f32 %v171_v52, %v61_v39  ;;  %v173_v55 = vpop.f32.mrb[5].mxu0  ;;  %v4355_v56 = vpop.f32.mrb[3].mxu1 }
  0xe9   :  { %v5421_v57 = vadd.f32 %v173_v55, %v65_v40 }
  0xeb   :  { %v177_v58 = vpop.f32.mrb[6].mxu0 }
  0xec   :  { %v5423_v59 = vadd.f32 %v177_v58, %v61_v39  ;;  %v179_v60 = vpop.f32.mrb[7].mxu0 }
  0xed   :  { %v5425_v61 = vadd.f32 %v179_v60, %v65_v40 }
  0xee   :  { %v4958_v62 = vpop.eup %4957 }
  0xef   :  { %v183_v63 = vpop.f32.mrb[8].mxu0  ;;  %387 = vrot.lane.b32.xlu0 %v4958_v62, %s5216_s0 }
  0xf0   :  { %v5428_v0 = vadd.f32 %v183_v63, %v61_v39  ;;  %v185_v1 = vpop.f32.mrb[9].mxu0 }
  0xf1   :  { %v5430_v2 = vadd.f32 %v185_v1, %v65_v40 }
  0xf3   :  { %v189_v5 = vpop.f32.mrb[10].mxu0 }
  0xf4   :  { %v5432_v6 = vadd.f32 %v189_v5, %v61_v39  ;;  %v191_v7 = vpop.f32.mrb[11].mxu0 }
  0xf5   :  { %v5434_v8 = vadd.f32 %v191_v7, %v65_v40 }
  0xf7   :  { %v195_v9 = vpop.f32.mrb[12].mxu0 }
  0xf8   :  { %v5436_v11 = vadd.f32 %v195_v9, %v61_v39  ;;  %v197_v12 = vpop.f32.mrb[13].mxu0 }
  0xf9   :  { %v5438_v13 = vadd.f32 %v197_v12, %v65_v40 }
  0xfb   :  { %v201_v14 = vpop.f32.mrb[14].mxu0 }
  0xfc   :  { %v5440_v15 = vadd.f32 %v201_v14, %v61_v39  ;;  %v203_v16 = vpop.f32.mrb[15].mxu0 }
  0xfd   :  { %v204_v17 = vadd.f32 %v203_v16, %v65_v40 }
  0xff   :  { %v377_v18 = vadd.f32 %v373_v53, %v204_v17 }
 0x101   :  { %4959 = vtanh.f32 %v377_v18  ;;  %v4086_v25 = vmul.f32 -1.442695, %v377_v18 }
 0x102   :  { %4961 = vpow2.f32 %v4085_v21 }
 0x10b   :  { %v4960_v20 = vpop.eup %4959 }
 0x10c   :  { %411 = vrot.lane.b32.xlu0 %v4960_v20, %s5216_s0  ;;  %v4962_v22 = vpop.eup %4961 }
 0x10d   :  { %v381_v24 = vadd.f32 1.0, %v4962_v22 }
 0x10f   :  { %4963 = vrcp.f32 %v381_v24 }
 0x110   :  { %4965 = vpow2.f32 %v4086_v25 }
 0x119   :  { %v4964_v26 = vpop.eup %4963 }
 0x11a   :  { %v4966_v30 = vpop.eup %4965  ;;  %v385_v37 = vmul.f32 0.0, %v4964_v26 }
 0x11b   :  { %v405_v31 = vadd.f32 1.0, %v4966_v30 }
 0x11d   :  { %4967 = vrcp.f32 %v405_v31 }
 0x127   :  { %v4968_v32 = vpop.eup %4967 }
 0x128   :  { %v409_v42 = vmul.f32 0.0, %v4968_v32 }
 0x161   :  { %v388_v28 = vpop.permute.xlu0 %387 }
 0x162   :  { %v390_v29 = vmul.f32 %v4964_v26, %v388_v28 }
 0x164   :  { %392 = vrot.lane.b32.xlu1 %v390_v29, %s5217_s2 }
 0x17e   :  { %v412_v33 = vpop.permute.xlu0 %411 }
 0x17f   :  { %v414_v34 = vmul.f32 %v4968_v32, %v412_v33 }
 0x181   :  { %416 = vrot.lane.b32.xlu1 %v414_v34, %s5217_s2 }
 0x1d6   :  { %v393_v39 = vpop.permute.xlu1 %392 }
 0x1d7   :  { %v5445_v40 = vadd.f32 %v393_v39, %v385_v37 }
 0x1d9   :  { %4969 = vtanh.f32 %v5445_v40 }
 0x1e3   :  { %v4970_v41 = vpop.eup %4969 }
 0x1e4   :  { %398 = vrot.lane.b32.xlu0 %v4970_v41, %s5216_s0 }
 0x1f3   :  { %v417_v43 = vpop.permute.xlu1 %416 }
 0x1f4   :  { %v419_v44 = vadd.f32 %v417_v43, %v409_v42 }
 0x1f6   :  { %4971 = vtanh.f32 %v419_v44 }
 0x200   :  { %v4972_v45 = vpop.eup %4971 }
 0x201   :  { %422 = vrot.lane.b32.xlu1 %v4972_v45, %s5216_s0 }
 0x256   :  { %v399_v47 = vpop.permute.xlu0 %398 }
 0x257   :  { %v401_v48 = vmul.f32 %v4964_v26, %v399_v47 }
 0x259   :  { %427 = vrot.lane.b32.xlu0 %v401_v48, %s5217_s2 }
 0x273   :  { %v423_v50 = vpop.permute.xlu1 %422 }
 0x274   :  { %v425_v52 = vmul.f32 %v4968_v32, %v423_v50 }
 0x276   :  { %432 = vrot.lane.b32.xlu1 %v425_v52, %s5217_s2 }
 0x2cb   :  { %v428_v53 = vpop.permute.xlu0 %427 }
 0x2cc   :  { %430 = vst.msk [vmem:[#allocation4] sm:$0xff] %vm68_vm1, %v428_v53  ;;  %4365 = vmatmul.mubr.msk.f32.vlgmr.msra.gmra.mrb[4].mxu1 %vm68_vm1, %v428_v53 }
 0x2cd   :  { %4736 = vmatpush3.bf16.msra.mxu1 %v5334_v23  ;;  %4375 = vmatprep.mubr.msk.f32.mxu1 %vm5215_vm0, %v5214_v4 }
 0x2ce   :  { %4737 = vmatprep.subr.bf16.mxu1 %v5213_v3 }
 0x2d1   :  { %4739 = vmatpush3.bf16.msra.mxu1 %v5351_v27 }
 0x2d2   :  { %4746 = vmatprep.subr.bf16.mxu1 %v5213_v3 }
 0x2e8   :  { %v433_v55 = vpop.permute.xlu1 %432 }
 0x2e9   :  { %436 = vst.msk [vmem:[#allocation5 + $0x38] sm:$0xff] %vm68_vm1, %v433_v55  ;;  %4376 = vmatmul.mubr.msk.f32.vlgmr.msra.gmra.mrb[6].mxu1 %vm68_vm1, %v433_v55 }
 0x2ea   :  { %4748 = vmatpush3.bf16.msra.mxu1 %v5334_v23  ;;  %4397 = vmatprep.mubr.msk.f32.mxu1 %vm5215_vm0, %v5214_v4 }
 0x2eb   :  { %4749 = vmatprep.subr.bf16.mxu1 %v5213_v3 }
 0x2ee   :  { %4751 = vmatpush3.bf16.msra.mxu1 %v5351_v27 }
 0x2ef   :  { %4758 = vmatprep.subr.bf16.mxu1 %v5213_v3 }
 0x39f   :  { %v507_v56 = vpop.f32.mrb[4].mxu1 }
 0x3a0   :  { %v511_v58 = vadd.f32 %v507_v56, %v5415_v49  ;;  %v4366_v60 = vpop.f32.mrb[5].mxu1 }
 0x3a2   :  { %v4089_v22 = vmul.f32 -1.442695, %v511_v58 }
 0x3bc   :  { %v582_v62 = vpop.f32.mrb[6].mxu1 }
 0x3bd   :  { %v586_v63 = vadd.f32 %v582_v62, %v5438_v13  ;;  %v4377_v1 = vpop.f32.mrb[7].mxu1 }
 0x3bf   :  { %4973 = vtanh.f32 %v586_v63  ;;  %v4090_v7 = vmul.f32 -1.442695, %v586_v63 }
 0x3c1   :  { %4975 = vpow2.f32 %v4090_v7 }
 0x3c9   :  { %v4974_v5 = vpop.eup %4973 }
 0x3ca   :  { %620 = vrot.lane.b32.xlu0 %v4974_v5, %s5216_s0 }
 0x3cb   :  { %v4976_v9 = vpop.eup %4975 }
 0x3cc   :  { %v614_v12 = vadd.f32 1.0, %v4976_v9 }
 0x3ce   :  { %4977 = vrcp.f32 %v614_v12 }
 0x3d8   :  { %v4978_v14 = vpop.eup %4977 }
 0x3d9   :  { %v618_v49 = vmul.f32 %v4978_v14, %v419_v44 }
 0x43c   :  { %v621_v16 = vpop.permute.xlu0 %620 }
 0x43d   :  { %v623_v17 = vmul.f32 %v4978_v14, %v621_v16 }
 0x43f   :  { %625 = vrot.lane.b32.xlu1 %v623_v17, %s5217_s2 }
 0x4b1   :  { %v626_v18 = vpop.permute.xlu1 %625 }
 0x4b2   :  { %v628_v20 = vadd.f32 %v626_v18, %v618_v49 }
 0x4b4   :  { %4979 = vtanh.f32 %v628_v20 }
 0x4b5   :  { %4981 = vtanh.f32 %v511_v58 }
 0x4b6   :  { %4983 = vpow2.f32 %v4089_v22 }
 0x4be   :  { %v4980_v13 = vpop.eup %4979 }
 0x4bf   :  { %631 = vrot.lane.b32.xlu0 %v4980_v13, %s5216_s0  ;;  %v4982_v21 = vpop.eup %4981 }
 0x4c0   :  { %v4984_v24 = vpop.eup %4983 }
 0x4c1   :  { %v590_v25 = vadd.f32 1.0, %v4984_v24 }
 0x4c3   :  { %596 = vrot.lane.b32.xlu0 %v4982_v21, %s5216_s0  ;;  %4985 = vrcp.f32 %v590_v25 }
 0x4cd   :  { %v4986_v29 = vpop.eup %4985 }
 0x4ce   :  { %v594_v33 = vmul.f32 %v4986_v29, %v5445_v40 }
 0x531   :  { %v632_v26 = vpop.permute.xlu0 %631 }
 0x532   :  { %v634_v28 = vmul.f32 %v4978_v14, %v632_v26 }
 0x534   :  { %642 = vrot.lane.b32.xlu1 %v634_v28, %s5217_s2 }
 0x535   :  { %v597_v30 = vpop.permute.xlu0 %596 }
 0x536   :  { %v599_v31 = vmul.f32 %v4986_v29, %v597_v30 }
 0x538   :  { %601 = vrot.lane.b32.xlu1 %v599_v31, %s5217_s2 }
 0x5a6   :  { %v643_v32 = vpop.permute.xlu1 %642 }
 0x5a7   :  { %646 = vst.msk [vmem:[#allocation5 + $0x30] sm:$0xff] %vm68_vm1, %v643_v32  ;;  %4398 = vmatmul.mubr.msk.f32.vlgmr.msra.gmra.mrb[8].mxu1 %vm68_vm1, %v643_v32 }
 0x5a8   :  { %4760 = vmatpush3.bf16.msra.mxu1 %v5334_v23  ;;  %4419 = vmatprep.mubr.msk.f32.mxu1 %vm5215_vm0, %v5214_v4 }
 0x5a9   :  { %4761 = vmatprep.subr.bf16.mxu1 %v5213_v3 }
 0x5aa   :  { %v602_v34 = vpop.permute.xlu1 %601 }
 0x5ab   :  { %v604_v37 = vadd.f32 %v602_v34, %v594_v33 }
 0x5ac   :  { %4763 = vmatpush3.bf16.msra.mxu1 %v5351_v27 }
 0x5ad   :  { %4987 = vtanh.f32 %v604_v37  ;;  %4770 = vmatprep.subr.bf16.mxu1 %v5213_v3 }
 0x5b7   :  { %v4988_v39 = vpop.eup %4987 }
 0x5b8   :  { %607 = vrot.lane.b32.xlu0 %v4988_v39, %s5216_s0 }
 0x62a   :  { %v608_v41 = vpop.permute.xlu0 %607 }
 0x62b   :  { %v610_v42 = vmul.f32 %v4986_v29, %v608_v41 }
 0x62d   :  { %636 = vrot.lane.b32.xlu1 %v610_v42, %s5217_s2 }
 0x67a   :  { %v792_v43 = vpop.f32.mrb[8].mxu1 }
 0x67b   :  { %v796_v44 = vadd.f32 %v792_v43, %v5434_v8  ;;  %v4399_v40 = vpop.f32.mrb[9].mxu1 }
 0x67d   :  { %4989 = vtanh.f32 %v796_v44  ;;  %v4094_v8 = vmul.f32 -1.442695, %v796_v44 }
 0x67f   :  { %4991 = vpow2.f32 %v4094_v8 }
 0x687   :  { %v4990_v45 = vpop.eup %4989 }
 0x688   :  { %830 = vrot.lane.b32.xlu0 %v4990_v45, %s5216_s0 }
 0x689   :  { %v4992_v48 = vpop.eup %4991 }
 0x68a   :  { %v824_v50 = vadd.f32 1.0, %v4992_v48 }
 0x68c   :  { %4993 = vrcp.f32 %v824_v50 }
 0x696   :  { %v4994_v52 = vpop.eup %4993 }
 0x697   :  { %v828_v56 = vmul.f32 %v4994_v52, %v628_v20 }
 0x69f   :  { %v637_v47 = vpop.permute.xlu1 %636 }
 0x6a0   :  { %640 = vst.msk [vmem:[#allocation4 + $0x8] sm:$0xff] %vm68_vm1, %v637_v47  ;;  %4387 = vmatmul.mubr.msk.f32.vlgmr.msra.gmra.mrb[16].mxu0 %vm68_vm1, %v637_v47 }
 0x6a1   :  { %4754 = vmatpush3.bf16.msra.mxu0 %v5300_v10  ;;  %4408 = vmatprep.mubr.msk.f32.mxu0 %vm5215_vm0, %v5214_v4 }
 0x6a2   :  { %4755 = vmatprep.subr.bf16.mxu0 %v5213_v3 }
 0x6a5   :  { %4757 = vmatpush3.bf16.msra.mxu0 %v5321_v19 }
 0x6a6   :  { %4764 = vmatprep.subr.bf16.mxu0 %v5213_v3 }
 0x6fa   :  { %v831_v53 = vpop.permute.xlu0 %830 }
 0x6fb   :  { %v833_v55 = vmul.f32 %v4994_v52, %v831_v53 }
 0x6fd   :  { %835 = vrot.lane.b32.xlu1 %v833_v55, %s5217_s2 }
 0x76f   :  { %v836_v58 = vpop.permute.xlu1 %835 }
 0x770   :  { %v838_v60 = vadd.f32 %v836_v58, %v828_v56 }
 0x772   :  { %4995 = vtanh.f32 %v838_v60 }
 0x773   :  { %v717_v62 = vpop.f32.mrb[16].mxu0 }
 0x774   :  { %v721_v63 = vadd.f32 %v717_v62, %v5419_v54  ;;  %v4388_v1 = vpop.f32.mrb[17].mxu0 }
 0x776   :  { %4997 = vtanh.f32 %v721_v63  ;;  %v4093_v9 = vmul.f32 -1.442695, %v721_v63 }
 0x778   :  { %4999 = vpow2.f32 %v4093_v9 }
 0x77c   :  { %v4996_v5 = vpop.eup %4995 }
 0x77d   :  { %841 = vrot.lane.b32.xlu0 %v4996_v5, %s5216_s0 }
 0x780   :  { %v4998_v7 = vpop.eup %4997 }
 0x781   :  { %806 = vrot.lane.b32.xlu0 %v4998_v7, %s5216_s0 }
 0x782   :  { %v5000_v12 = vpop.eup %4999 }
 0x783   :  { %v800_v14 = vadd.f32 1.0, %v5000_v12 }
 0x785   :  { %5001 = vrcp.f32 %v800_v14 }
 0x78f   :  { %v5002_v49 = vpop.eup %5001 }
 0x790   :  { %v804_v13 = vmul.f32 %v5002_v49, %v604_v37 }
 0x7ef   :  { %v842_v16 = vpop.permute.xlu0 %841 }
 0x7f0   :  { %v844_v17 = vmul.f32 %v4994_v52, %v842_v16 }
 0x7f2   :  { %852 = vrot.lane.b32.xlu1 %v844_v17, %s5217_s2 }
 0x7f3   :  { %v807_v18 = vpop.permute.xlu0 %806 }
 0x7f4   :  { %v809_v54 = vmul.f32 %v5002_v49, %v807_v18 }
 0x7f6   :  { %811 = vrot.lane.b32.xlu1 %v809_v54, %s5217_s2 }
 0x864   :  { %v853_v20 = vpop.permute.xlu1 %852 }
 0x865   :  { %856 = vst.msk [vmem:[#allocation5 + $0x28] sm:$0xff] %vm68_vm1, %v853_v20  ;;  %4420 = vmatmul.mubr.msk.f32.vlgmr.msra.gmra.mrb[10].mxu1 %vm68_vm1, %v853_v20 }
 0x866   :  { %4772 = vmatpush3.bf16.msra.mxu1 %v5334_v23  ;;  %4441 = vmatprep.mubr.msk.f32.mxu1 %vm5215_vm0, %v5214_v4 }
 0x867   :  { %4773 = vmatprep.subr.bf16.mxu1 %v5213_v3 }
 0x868   :  { %v812_v21 = vpop.permute.xlu1 %811 }
 0x869   :  { %v814_v22 = vadd.f32 %v812_v21, %v804_v13 }
 0x86a   :  { %4775 = vmatpush3.bf16.msra.mxu1 %v5351_v27 }
 0x86b   :  { %5003 = vtanh.f32 %v814_v22  ;;  %4782 = vmatprep.subr.bf16.mxu1 %v5213_v3 }
 0x875   :  { %v5004_v24 = vpop.eup %5003 }
 0x876   :  { %817 = vrot.lane.b32.xlu0 %v5004_v24, %s5216_s0 }
 0x8e8   :  { %v818_v25 = vpop.permute.xlu0 %817 }
 0x8e9   :  { %v820_v26 = vmul.f32 %v5002_v49, %v818_v25 }
 0x8eb   :  { %846 = vrot.lane.b32.xlu1 %v820_v26, %s5217_s2 }
 0x938   :  { %v1002_v28 = vpop.f32.mrb[10].mxu1 }
 0x939   :  { %v1006_v29 = vadd.f32 %v1002_v28, %v5430_v2  ;;  %v4421_v30 = vpop.f32.mrb[11].mxu1 }
 0x93b   :  { %5005 = vtanh.f32 %v1006_v29  ;;  %v4098_v2 = vmul.f32 -1.442695, %v1006_v29 }
 0x93d   :  { %5007 = vpow2.f32 %v4098_v2 }
 0x945   :  { %v5006_v31 = vpop.eup %5005 }
 0x946   :  { %1040 = vrot.lane.b32.xlu0 %v5006_v31, %s5216_s0 }
 0x947   :  { %v5008_v33 = vpop.eup %5007 }
 0x948   :  { %v1034_v34 = vadd.f32 1.0, %v5008_v33 }
 0x94a   :  { %5009 = vrcp.f32 %v1034_v34 }
 0x954   :  { %v5010_v37 = vpop.eup %5009 }
 0x955   :  { %v1038_v42 = vmul.f32 %v5010_v37, %v838_v60 }
 0x95d   :  { %v847_v32 = vpop.permute.xlu1 %846 }
 0x95e   :  { %850 = vst.msk [vmem:[#allocation4 + $0x10] sm:$0xff] %vm68_vm1, %v847_v32  ;;  %4409 = vmatmul.mubr.msk.f32.vlgmr.msra.gmra.mrb[18].mxu0 %vm68_vm1, %v847_v32 }
 0x95f   :  { %4766 = vmatpush3.bf16.msra.mxu0 %v5300_v10  ;;  %4430 = vmatprep.mubr.msk.f32.mxu0 %vm5215_vm0, %v5214_v4 }
 0x960   :  { %4767 = vmatprep.subr.bf16.mxu0 %v5213_v3 }
 0x963   :  { %4769 = vmatpush3.bf16.msra.mxu0 %v5321_v19 }
 0x964   :  { %4776 = vmatprep.subr.bf16.mxu0 %v5213_v3 }
 0x9b8   :  { %v1041_v39 = vpop.permute.xlu0 %1040 }
 0x9b9   :  { %v1043_v41 = vmul.f32 %v5010_v37, %v1041_v39 }
 0x9bb   :  { %1045 = vrot.lane.b32.xlu1 %v1043_v41, %s5217_s2 }
 0xa2d   :  { %v1046_v43 = vpop.permute.xlu1 %1045 }
 0xa2e   :  { %v1048_v44 = vadd.f32 %v1046_v43, %v1038_v42 }
 0xa30   :  { %5011 = vtanh.f32 %v1048_v44 }
 0xa31   :  { %v927_v40 = vpop.f32.mrb[18].mxu0 }
 0xa32   :  { %v931_v45 = vadd.f32 %v927_v40, %v5423_v59  ;;  %v4410_v47 = vpop.f32.mrb[19].mxu0 }
 0xa34   :  { %5013 = vtanh.f32 %v931_v45  ;;  %v4097_v50 = vmul.f32 -1.442695, %v931_v45 }
 0xa36   :  { %5015 = vpow2.f32 %v4097_v50 }
 0xa3a   :  { %v5012_v8 = vpop.eup %5011 }
 0xa3b   :  { %1051 = vrot.lane.b32.xlu0 %v5012_v8, %s5216_s0 }
 0xa3e   :  { %v5014_v48 = vpop.eup %5013 }
 0xa3f   :  { %1016 = vrot.lane.b32.xlu0 %v5014_v48, %s5216_s0 }
 0xa40   :  { %v5016_v52 = vpop.eup %5015 }
 0xa41   :  { %v1010_v53 = vadd.f32 1.0, %v5016_v52 }
 0xa43   :  { %5017 = vrcp.f32 %v1010_v53 }
 0xa4d   :  { %v5018_v58 = vpop.eup %5017 }
 0xa4e   :  { %v1014_v63 = vmul.f32 %v5018_v58, %v814_v22 }
 0xaad   :  { %v1052_v55 = vpop.permute.xlu0 %1051 }
 0xaae   :  { %v1054_v56 = vmul.f32 %v5010_v37, %v1052_v55 }
 0xab0   :  { %1062 = vrot.lane.b32.xlu1 %v1054_v56, %s5217_s2 }
 0xab1   :  { %v1017_v60 = vpop.permute.xlu0 %1016 }
 0xab2   :  { %v1019_v59 = vmul.f32 %v5018_v58, %v1017_v60 }
 0xab4   :  { %1021 = vrot.lane.b32.xlu1 %v1019_v59, %s5217_s2 }
 0xb22   :  { %v1063_v62 = vpop.permute.xlu1 %1062 }
 0xb23   :  { %1066 = vst.msk [vmem:[#allocation5 + $0x20] sm:$0xff] %vm68_vm1, %v1063_v62  ;;  %4442 = vmatmul.mubr.msk.f32.vlgmr.msra.gmra.mrb[12].mxu1 %vm68_vm1, %v1063_v62 }
 0xb24   :  { %4784 = vmatpush3.bf16.msra.mxu1 %v5334_v23  ;;  %4463 = vmatprep.mubr.msk.f32.mxu1 %vm5215_vm0, %v5214_v4 }
 0xb25   :  { %4785 = vmatprep.subr.bf16.mxu1 %v5213_v3 }
 0xb26   :  { %v1022_v1 = vpop.permute.xlu1 %1021 }
 0xb27   :  { %v1024_v5 = vadd.f32 %v1022_v1, %v1014_v63 }
 0xb28   :  { %4787 = vmatpush3.bf16.msra.mxu1 %v5351_v27 }
 0xb29   :  { %5019 = vtanh.f32 %v1024_v5  ;;  %4794 = vmatprep.subr.bf16.mxu1 %v5213_v3 }
 0xb33   :  { %v5020_v7 = vpop.eup %5019 }
 0xb34   :  { %1027 = vrot.lane.b32.xlu0 %v5020_v7, %s5216_s0 }
 0xba6   :  { %v1028_v9 = vpop.permute.xlu0 %1027 }
 0xba7   :  { %v1030_v12 = vmul.f32 %v5018_v58, %v1028_v9 }
 0xba9   :  { %1056 = vrot.lane.b32.xlu1 %v1030_v12, %s5217_s2 }
 0xbf6   :  { %v1212_v14 = vpop.f32.mrb[12].mxu1 }
 0xbf7   :  { %v1216_v16 = vadd.f32 %v1212_v14, %v5425_v61  ;;  %v4443_v17 = vpop.f32.mrb[13].mxu1 }
 0xbf9   :  { %5021 = vtanh.f32 %v1216_v16  ;;  %v4102_v61 = vmul.f32 -1.442695, %v1216_v16 }
 0xbfb   :  { %5023 = vpow2.f32 %v4102_v61 }
 0xc03   :  { %v5022_v49 = vpop.eup %5021 }
 0xc04   :  { %1250 = vrot.lane.b32.xlu0 %v5022_v49, %s5216_s0 }
 0xc05   :  { %v5024_v54 = vpop.eup %5023 }
 0xc06   :  { %v1244_v20 = vadd.f32 1.0, %v5024_v54 }
 0xc08   :  { %5025 = vrcp.f32 %v1244_v20 }
 0xc12   :  { %v5026_v13 = vpop.eup %5025 }
 0xc13   :  { %v1248_v24 = vmul.f32 %v5026_v13, %v1048_v44 }
 0xc1b   :  { %v1057_v18 = vpop.permute.xlu1 %1056 }
 0xc1c   :  { %1060 = vst.msk [vmem:[#allocation4 + $0x18] sm:$0xff] %vm68_vm1, %v1057_v18  ;;  %4431 = vmatmul.mubr.msk.f32.vlgmr.msra.gmra.mrb[20].mxu0 %vm68_vm1, %v1057_v18 }
 0xc1d   :  { %4778 = vmatpush3.bf16.msra.mxu0 %v5300_v10  ;;  %4452 = vmatprep.mubr.msk.f32.mxu0 %vm5215_vm0, %v5214_v4 }
 0xc1e   :  { %4779 = vmatprep.subr.bf16.mxu0 %v5213_v3 }
 0xc21   :  { %4781 = vmatpush3.bf16.msra.mxu0 %v5321_v19 }
 0xc22   :  { %4788 = vmatprep.subr.bf16.mxu0 %v5213_v3 }
 0xc76   :  { %v1251_v21 = vpop.permute.xlu0 %1250 }
 0xc77   :  { %v1253_v22 = vmul.f32 %v5026_v13, %v1251_v21 }
 0xc79   :  { %1255 = vrot.lane.b32.xlu1 %v1253_v22, %s5217_s2 }
 0xceb   :  { %v1256_v25 = vpop.permute.xlu1 %1255 }
 0xcec   :  { %v1258_v26 = vadd.f32 %v1256_v25, %v1248_v24 }
 0xcee   :  { %5027 = vtanh.f32 %v1258_v26 }
 0xcef   :  { %v1137_v28 = vpop.f32.mrb[20].mxu0 }
 0xcf0   :  { %v1141_v29 = vadd.f32 %v1137_v28, %v5428_v0  ;;  %v4432_v30 = vpop.f32.mrb[21].mxu0 }
 0xcf2   :  { %5029 = vtanh.f32 %v1141_v29  ;;  %v4101_v2 = vmul.f32 -1.442695, %v1141_v29 }
 0xcf4   :  { %5031 = vpow2.f32 %v4101_v2 }
 0xcf8   :  { %v5028_v31 = vpop.eup %5027 }
 0xcf9   :  { %1261 = vrot.lane.b32.xlu0 %v5028_v31, %s5216_s0 }
 0xcfc   :  { %v5030_v32 = vpop.eup %5029 }
 0xcfd   :  { %1226 = vrot.lane.b32.xlu0 %v5030_v32, %s5216_s0 }
 0xcfe   :  { %v5032_v33 = vpop.eup %5031 }
 0xcff   :  { %v1220_v34 = vadd.f32 1.0, %v5032_v33 }
 0xd01   :  { %5033 = vrcp.f32 %v1220_v34 }
 0xd0b   :  { %v5034_v41 = vpop.eup %5033 }
 0xd0c   :  { %v1224_v44 = vmul.f32 %v5034_v41, %v1024_v5 }
 0xd6b   :  { %v1262_v37 = vpop.permute.xlu0 %1261 }
 0xd6c   :  { %v1264_v39 = vmul.f32 %v5026_v13, %v1262_v37 }
 0xd6e   :  { %1272 = vrot.lane.b32.xlu1 %v1264_v39, %s5217_s2 }
 0xd6f   :  { %v1227_v42 = vpop.permute.xlu0 %1226 }
 0xd70   :  { %v1229_v0 = vmul.f32 %v5034_v41, %v1227_v42 }
 0xd72   :  { %1231 = vrot.lane.b32.xlu1 %v1229_v0, %s5217_s2 }
 0xde0   :  { %v1273_v43 = vpop.permute.xlu1 %1272 }
 0xde1   :  { %1276 = vst.msk [vmem:[#allocation5 + $0x18] sm:$0xff] %vm68_vm1, %v1273_v43  ;;  %4464 = vmatmul.mubr.msk.f32.vlgmr.msra.gmra.mrb[14].mxu1 %vm68_vm1, %v1273_v43 }
 0xde2   :  { %4796 = vmatpush3.bf16.msra.mxu1 %v5334_v23  ;;  %4485 = vmatprep.mubr.msk.f32.mxu1 %vm5215_vm0, %v5214_v4 }
 0xde3   :  { %4797 = vmatprep.subr.bf16.mxu1 %v5213_v3 }
 0xde4   :  { %v1232_v40 = vpop.permute.xlu1 %1231 }
 0xde5   :  { %v1234_v45 = vadd.f32 %v1232_v40, %v1224_v44 }
 0xde6   :  { %4799 = vmatpush3.bf16.msra.mxu1 %v5351_v27 }
 0xde7   :  { %5035 = vtanh.f32 %v1234_v45  ;;  %4806 = vmatprep.subr.bf16.mxu1 %v5213_v3 }
 0xdf1   :  { %v5036_v47 = vpop.eup %5035 }
 0xdf2   :  { %1237 = vrot.lane.b32.xlu0 %v5036_v47, %s5216_s0 }
 0xe64   :  { %v1238_v8 = vpop.permute.xlu0 %1237 }
 0xe65   :  { %v1240_v48 = vmul.f32 %v5034_v41, %v1238_v8 }
 0xe67   :  { %1266 = vrot.lane.b32.xlu1 %v1240_v48, %s5217_s2 }
 0xeb4   :  { %v1422_v50 = vpop.f32.mrb[14].mxu1 }
 0xeb5   :  { %v1426_v52 = vadd.f32 %v1422_v50, %v5421_v57  ;;  %v4465_v53 = vpop.f32.mrb[15].mxu1 }
 0xeb7   :  { %5037 = vtanh.f32 %v1426_v52  ;;  %v4106_v57 = vmul.f32 -1.442695, %v1426_v52 }
 0xeb9   :  { %5039 = vpow2.f32 %v4106_v57 }
 0xec1   :  { %v5038_v55 = vpop.eup %5037 }
 0xec2   :  { %1460 = vrot.lane.b32.xlu0 %v5038_v55, %s5216_s0 }
 0xec3   :  { %v5040_v58 = vpop.eup %5039 }
 0xec4   :  { %v1454_v60 = vadd.f32 1.0, %v5040_v58 }
 0xec6   :  { %5041 = vrcp.f32 %v1454_v60 }
 0xed0   :  { %v5042_v59 = vpop.eup %5041 }
 0xed1   :  { %v1458_v1 = vmul.f32 %v5042_v59, %v1258_v26 }
 0xed9   :  { %v1267_v56 = vpop.permute.xlu1 %1266 }
 0xeda   :  { %1270 = vst.msk [vmem:[#allocation4 + $0x20] sm:$0xff] %vm68_vm1, %v1267_v56  ;;  %4453 = vmatmul.mubr.msk.f32.vlgmr.msra.gmra.mrb[22].mxu0 %vm68_vm1, %v1267_v56 }
 0xedb   :  { %4790 = vmatpush3.bf16.msra.mxu0 %v5300_v10  ;;  %4474 = vmatprep.mubr.msk.f32.mxu0 %vm5215_vm0, %v5214_v4 }
 0xedc   :  { %4791 = vmatprep.subr.bf16.mxu0 %v5213_v3 }
 0xedf   :  { %4793 = vmatpush3.bf16.msra.mxu0 %v5321_v19 }
 0xee0   :  { %4800 = vmatprep.subr.bf16.mxu0 %v5213_v3 }
 0xf34   :  { %v1461_v62 = vpop.permute.xlu0 %1460 }
 0xf35   :  { %v1463_v63 = vmul.f32 %v5042_v59, %v1461_v62 }
 0xf37   :  { %1465 = vrot.lane.b32.xlu1 %v1463_v63, %s5217_s2 }
 0xfa9   :  { %v1466_v5 = vpop.permute.xlu1 %1465 }
 0xfaa   :  { %v1468_v7 = vadd.f32 %v1466_v5, %v1458_v1 }
 0xfac   :  { %5043 = vtanh.f32 %v1468_v7 }
 0xfad   :  { %v1347_v9 = vpop.f32.mrb[22].mxu0 }
 0xfae   :  { %v1351_v12 = vadd.f32 %v1347_v9, %v5432_v6  ;;  %v4454_v14 = vpop.f32.mrb[23].mxu0 }
 0xfb0   :  { %5045 = vtanh.f32 %v1351_v12  ;;  %v4105_v49 = vmul.f32 -1.442695, %v1351_v12 }
 0xfb2   :  { %5047 = vpow2.f32 %v4105_v49 }
 0xfb6   :  { %v5044_v16 = vpop.eup %5043 }
 0xfb7   :  { %1471 = vrot.lane.b32.xlu0 %v5044_v16, %s5216_s0 }
 0xfba   :  { %v5046_v17 = vpop.eup %5045 }
 0xfbb   :  { %1436 = vrot.lane.b32.xlu0 %v5046_v17, %s5216_s0 }
 0xfbc   :  { %v5048_v18 = vpop.eup %5047 }
 0xfbd   :  { %v1430_v61 = vadd.f32 1.0, %v5048_v18 }
 0xfbf   :  { %5049 = vrcp.f32 %v1430_v61 }
 0xfc9   :  { %v5050_v13 = vpop.eup %5049 }
 0xfca   :  { %v1434_v24 = vmul.f32 %v5050_v13, %v1234_v45 }
0x1029   :  { %v1472_v54 = vpop.permute.xlu0 %1471 }
0x102a   :  { %v1474_v20 = vmul.f32 %v5042_v59, %v1472_v54 }
0x102c   :  { %1482 = vrot.lane.b32.xlu1 %v1474_v20, %s5217_s2 }
0x102d   :  { %v1437_v21 = vpop.permute.xlu0 %1436 }
0x102e   :  { %v1439_v6 = vmul.f32 %v5050_v13, %v1437_v21 }
0x1030   :  { %1441 = vrot.lane.b32.xlu1 %v1439_v6, %s5217_s2 }
0x109e   :  { %v1483_v22 = vpop.permute.xlu1 %1482 }
0x109f   :  { %1486 = vst.msk [vmem:[#allocation5 + $0x10] sm:$0xff] %vm68_vm1, %v1483_v22  ;;  %4486 = vmatmul.mubr.msk.f32.vlgmr.msra.gmra.mrb[16].mxu1 %vm68_vm1, %v1483_v22  ;;  %v1931_v22 = vld [vmem:[%s6105_s5 + $0x48] sm:$0xff] }
0x10a0   :  { %4808 = vmatpush3.bf16.msra.mxu1 %v5334_v23  ;;  %4507 = vmatprep.mubr.msk.f32.mxu1 %vm5215_vm0, %v5214_v4 }
0x10a1   :  { %4809 = vmatprep.subr.bf16.mxu1 %v5213_v3 }
0x10a2   :  { %v1442_v25 = vpop.permute.xlu1 %1441 }
0x10a3   :  { %v1444_v26 = vadd.f32 %v1442_v25, %v1434_v24  ;;  %v1933_v24 = vld [vmem:[%s6105_s5 + $0x58] sm:$0xff] }
0x10a4   :  { %4811 = vmatpush3.bf16.msra.mxu1 %v5351_v27  ;;  %v4812_v25 = vpack.c.bf16 %v1933_v24, %v1931_v22  ;;  %v2259_v24 = vld [vmem:[%s6107_s8] sm:$0xff] }
0x10a5   :  { %5051 = vtanh.f32 %v1444_v26  ;;  %4828 = vmatprep.subr.bf16.mxu1 %v5213_v3 }
0x10af   :  { %v5052_v28 = vpop.eup %5051 }
0x10b0   :  { %1447 = vrot.lane.b32.xlu0 %v5052_v28, %s5216_s0 }
0x1122   :  { %v1448_v29 = vpop.permute.xlu0 %1447 }
0x1123   :  { %v1450_v30 = vmul.f32 %v5050_v13, %v1448_v29 }
0x1125   :  { %1476 = vrot.lane.b32.xlu1 %v1450_v30, %s5217_s2  ;;  %v1930_v30 = vld [vmem:[%s6105_s5 + $0x40] sm:$0xff] }
0x1172   :  { %v1632_v23 = vpop.f32.mrb[16].mxu1 }
0x1173   :  { %v1636_v31 = vadd.f32 %v1632_v23, %v5417_v51  ;;  %v4487_v32 = vpop.f32.mrb[17].mxu1  ;;  %v1932_v23 = vld [vmem:[%s6105_s5 + $0x50] sm:$0xff] }
0x1175   :  { %5053 = vtanh.f32 %v1636_v31  ;;  %v4110_v27 = vmul.f32 -1.442695, %v1636_v31  ;;  %v4814_v31 = vpack.c.bf16 %v1932_v23, %v1930_v30  ;;  %v2262_v30 = vld [vmem:[%s6107_s8 + $0x18] sm:$0xff] }
0x1177   :  { %5055 = vpow2.f32 %v4110_v27 }
0x117f   :  { %v5054_v2 = vpop.eup %5053 }
0x1180   :  { %1670 = vrot.lane.b32.xlu0 %v5054_v2, %s5216_s0  ;;  %v1935_v2 = vld [vmem:[%s6105_s5 + $0x68] sm:$0xff] }
0x1181   :  { %v5056_v51 = vpop.eup %5055 }
0x1182   :  { %v1664_v34 = vadd.f32 1.0, %v5056_v51  ;;  %v1934_v51 = vld [vmem:[%s6105_s5 + $0x60] sm:$0xff] }
0x1184   :  { %5057 = vrcp.f32 %v1664_v34  ;;  %v1936_v34 = vld [vmem:[%s6105_s5 + $0x70] sm:$0xff] }
0x118e   :  { %v5058_v37 = vpop.eup %5057 }
0x118f   :  { %v1668_v42 = vmul.f32 %v5058_v37, %v1468_v7 }
0x1197   :  { %v1477_v33 = vpop.permute.xlu1 %1476 }
0x1198   :  { %1480 = vst.msk [vmem:[#allocation4 + $0x28] sm:$0xff] %vm68_vm1, %v1477_v33  ;;  %4475 = vmatmul.mubr.msk.f32.vlgmr.msra.gmra.mrb[24].mxu0 %vm68_vm1, %v1477_v33  ;;  %v1937_v33 = vld [vmem:[%s6105_s5 + $0x78] sm:$0xff] }
0x1199   :  { %4802 = vmatpush3.bf16.msra.mxu0 %v5300_v10  ;;  %4496 = vmatprep.mubr.msk.f32.mxu0 %vm5215_vm0, %v5214_v4  ;;  %v4816_v27 = vpack.c.bf16 %v1937_v33, %v1935_v2  ;;  %v1905_v2 = vld [vmem:[%s6108_s6] sm:$0x3] }
0x119a   :  { %4803 = vmatprep.subr.bf16.mxu0 %v5213_v3 }
0x119d   :  { %4805 = vmatpush3.bf16.msra.mxu0 %v5321_v19 }
0x119e   :  { %4813 = vmatprep.subr.bf16.mxu0 %v4812_v25  ;;  %v2260_v25 = vld [vmem:[%s6107_s8 + $0x8] sm:$0xff] }
0x11f2   :  { %v1671_v39 = vpop.permute.xlu0 %1670 }
0x11f3   :  { %v1673_v41 = vmul.f32 %v5058_v37, %v1671_v39  ;;  %v1923_v39 = vld [vmem:[%s6105_s5 + $0x8] sm:$0xff] }
0x11f5   :  { %1675 = vrot.lane.b32.xlu1 %v1673_v41, %s5217_s2  ;;  %v1925_v41 = vld [vmem:[%s6105_s5 + $0x18] sm:$0xff] }
0x1267   :  { %v1676_v0 = vpop.permute.xlu1 %1675 }
0x1268   :  { %v1678_v10 = vadd.f32 %v1676_v0, %v1668_v42  ;;  %v4820_v42 = vpack.c.bf16 %v1925_v41, %v1923_v39 }
0x126a   :  { %5059 = vtanh.f32 %v1678_v10 }
0x126b   :  { %v1557_v43 = vpop.f32.mrb[24].mxu0 }
0x126c   :  { %v1561_v44 = vadd.f32 %v1557_v43, %v5436_v11  ;;  %v4476_v40 = vpop.f32.mrb[25].mxu0 }
0x126e   :  { %5061 = vtanh.f32 %v1561_v44  ;;  %v4109_v47 = vmul.f32 -1.442695, %v1561_v44 }
0x1270   :  { %5063 = vpow2.f32 %v4109_v47 }
0x1274   :  { %v5060_v19 = vpop.eup %5059 }
0x1275   :  { %1681 = vrot.lane.b32.xlu0 %v5060_v19, %s5216_s0  ;;  %v2255_v19 = vld [vmem:[%s6106_s7] sm:$0xff] }
0x1278   :  { %v5062_v45 = vpop.eup %5061 }
0x1279   :  { %1646 = vrot.lane.b32.xlu0 %v5062_v45, %s5216_s0  ;;  %v2256_v45 = vld [vmem:[%s6106_s7 + $0x8] sm:$0xff] }
0x127a   :  { %v5064_v8 = vpop.eup %5063  ;;  %v5665_v47 = vpack.c.bf16 %v2256_v45, %v2255_v19 }
0x127b   :  { %v1640_v48 = vadd.f32 1.0, %v5064_v8  ;;  %v2257_v8 = vld [vmem:[%s6106_s7 + $0x10] sm:$0xff] }
0x127d   :  { %5065 = vrcp.f32 %v1640_v48  ;;  %v2258_v48 = vld [vmem:[%s6106_s7 + $0x18] sm:$0xff] }
0x1287   :  { %v5066_v53 = vpop.eup %5065 }
0x1288   :  { %v1644_v57 = vmul.f32 %v5066_v53, %v1444_v26 }
0x12e7   :  { %v1682_v50 = vpop.permute.xlu0 %1681 }
0x12e8   :  { %v1684_v52 = vmul.f32 %v5058_v37, %v1682_v50  ;;  %v4818_v37 = vpack.c.bf16 %v1936_v34, %v1934_v51  ;;  %v5675_v50 = vpack.c.bf16 %v2258_v48, %v2257_v8 }
0x12ea   :  { %1692 = vrot.lane.b32.xlu1 %v1684_v52, %s5217_s2 }
0x12eb   :  { %v1647_v55 = vpop.permute.xlu0 %1646 }
0x12ec   :  { %v1649_v11 = vmul.f32 %v5066_v53, %v1647_v55  ;;  %v1922_v55 = vld [vmem:[%s6105_s5] sm:$0xff] }
0x12ee   :  { %1651 = vrot.lane.b32.xlu1 %v1649_v11, %s5217_s2  ;;  %v1924_v11 = vld [vmem:[%s6105_s5 + $0x10] sm:$0xff] }
0x135c   :  { %v1693_v56 = vpop.permute.xlu1 %1692 }
0x135d   :  { %1696 = vst.msk [vmem:[#allocation5 + $0x8] sm:$0xff] %vm68_vm1, %v1693_v56  ;;  %4508 = vmatmul.mubr.msk.f32.vlgmr.msra.gmra.mrb[18].mxu1 %vm68_vm1, %v1693_v56 }
0x135e   :  { %4518 = vmatprep.mubr.msk.f32.mxu1 %vm5215_vm0, %v5214_v4  ;;  %4830 = vmatpush3.bf16.msra.mxu1 %v5665_v47 }
0x135f   :  { %4831 = vmatprep.subr.bf16.mxu1 %v5213_v3 }
0x1360   :  { %v1652_v58 = vpop.permute.xlu1 %1651 }
0x1361   :  { %v5610_v60 = vadd.f32 %v1652_v58, %v1644_v57  ;;  %v1927_v57 = vld [vmem:[%s6105_s5 + $0x28] sm:$0xff]  ;;  %v1929_v58 = vld [vmem:[%s6105_s5 + $0x38] sm:$0xff] }
0x1362   :  { %4833 = vmatpush3.bf16.msra.mxu1 %v5675_v50 }
0x1363   :  { %5067 = vtanh.f32 %v5610_v60  ;;  %4834 = vmatprep.subr.bf16.mxu1 %v5213_v3 }
0x1365   :  { %4519 = vmatmul.mubr.f32.vlgmr.msra.gmra.mrb[20].mxu1 %v5214_v4 }
0x1366   :  { %4529 = vmatprep.mubr.msk.f32.mxu1 %vm5215_vm0, %v5214_v4 }
0x136d   :  { %v5068_v59 = vpop.eup %5067 }
0x136e   :  { %1657 = vrot.lane.b32.xlu0 %v5068_v59, %s5216_s0 }
0x13e0   :  { %v1658_v62 = vpop.permute.xlu0 %1657 }
0x13e1   :  { %v1660_v63 = vmul.f32 %v5066_v53, %v1658_v62  ;;  %v4822_v62 = vpack.c.bf16 %v1924_v11, %v1922_v55 }
0x13e3   :  { %1686 = vrot.lane.b32.xlu1 %v1660_v63, %s5217_s2  ;;  %v1926_v63 = vld [vmem:[%s6105_s5 + $0x20] sm:$0xff] }
0x1430   :  { %v1841_v1 = vpop.f32.mrb[18].mxu1 }
0x1431   :  { %v1845_v5 = vadd.f32 %v1841_v1, %v5413_v46  ;;  %v4509_v7 = vpop.f32.mrb[19].mxu1  ;;  %v1928_v1 = vld [vmem:[%s6105_s5 + $0x30] sm:$0xff] }
0x1432   :  { %v4826_v7 = vpack.c.bf16 %v1928_v1, %v1926_v63  ;;  %v5810_v63 = vrot.slane %v1905_v2, %v64_v38 }
0x1433   :  { %5069 = vtanh.f32 %v1845_v5  ;;  %v4114_v14 = vmul.f32 -1.442695, %v1845_v5 }
0x1435   :  { %5071 = vpow2.f32 %v4114_v14 }
0x143d   :  { %v5070_v9 = vpop.eup %5069 }
0x143e   :  { %1879 = vrot.lane.b32.xlu0 %v5070_v9, %s5216_s0  ;;  %v1915_v9 = vld [vmem:[#allocation5 + $0x8] sm:$0xff] }
0x143f   :  { %v5072_v16 = vpop.eup %5071 }
0x1440   :  { %v1873_v17 = vadd.f32 1.0, %v5072_v16  ;;  %v1917_v16 = vld [vmem:[#allocation5 + $0x18] sm:$0xff] }
0x1442   :  { %5073 = vrcp.f32 %v1873_v17  ;;  %v1918_v17 = vld [vmem:[#allocation5 + $0x20] sm:$0xff] }
0x144c   :  { %v5074_v49 = vpop.eup %5073 }
0x144d   :  { %v1877_v61 = vmul.f32 %v5074_v49, %v1678_v10 }
0x1455   :  { %v1687_v12 = vpop.permute.xlu1 %1686 }
0x1456   :  { %1690 = vst.msk [vmem:[#allocation4 + $0x30] sm:$0xff] %vm68_vm1, %v1687_v12  ;;  %4497 = vmatmul.mubr.msk.f32.vlgmr.msra.gmra.mrb[26].mxu0 %vm68_vm1, %v1687_v12  ;;  %v1916_v12 = vld [vmem:[#allocation5 + $0x10] sm:$0xff] }
0x1457   :  { %2026 = vmatprep.mubr.f32.mxu0 %v5214_v4  ;;  %4815 = vmatpush1.bf16.msra.mxu0 %v4814_v31 }
0x1458   :  { %4817 = vmatprep.subr.bf16.mxu0 %v4816_v27  ;;  %v5773_v27 = vrot.slane %v1905_v2, %v60_v36 }
0x145b   :  { %4819 = vmatpush1.bf16.msra.mxu0 %v4818_v37 }
0x145c   :  { %4821 = vmatprep.subr.bf16.mxu0 %v4820_v42 }
0x145d   :  { %v1912_v22 = vld [vmem:[#allocation4 + $0x30] sm:$0xff] }
0x14b0   :  { %v1880_v18 = vpop.permute.xlu0 %1879 }
0x14b1   :  { %v1882_v46 = vmul.f32 %v5074_v49, %v1880_v18  ;;  %v1920_v18 = vld [vmem:[#allocation5 + $0x30] sm:$0xff] }
0x14b3   :  { %1884 = vrot.lane.b32.xlu1 %v1882_v46, %s5217_s2  ;;  %v1921_v46 = vld [vmem:[#allocation5 + $0x38] sm:$0xff] }
0x1525   :  { %v1885_v54 = vpop.permute.xlu1 %1884 }
0x1526   :  { %v1887_v20 = vadd.f32 %v1885_v54, %v1877_v61  ;;  %v1906_v61 = vld [vmem:[#allocation4] sm:$0xff]  ;;  %v1907_v54 = vld [vmem:[#allocation4 + $0x8] sm:$0xff] }
0x1528   :  { %5075 = vtanh.f32 %v1887_v20  ;;  %v1908_v20 = vld [vmem:[#allocation4 + $0x10] sm:$0xff] }
0x1529   :  { %v1767_v13 = vpop.f32.mrb[26].mxu0 }
0x152a   :  { %v1771_v21 = vadd.f32 %v1767_v13, %v5440_v15  ;;  %v4498_v6 = vpop.f32.mrb[27].mxu0  ;;  %v1909_v13 = vld [vmem:[#allocation4 + $0x18] sm:$0xff] }
0x152b   :  { %v1911_v6 = vld [vmem:[#allocation4 + $0x28] sm:$0xff] }
0x152c   :  { %5077 = vtanh.f32 %v1771_v21  ;;  %v4113_v29 = vmul.f32 -1.442695, %v1771_v21  ;;  %v1910_v21 = vld [vmem:[#allocation4 + $0x20] sm:$0xff] }
0x152e   :  { %5079 = vpow2.f32 %v4113_v29 }
0x1532   :  { %v5076_v26 = vpop.eup %5075 }
0x1533   :  { %1890 = vrot.lane.b32.xlu0 %v5076_v26, %s5216_s0  ;;  %v5745_v26 = vpack.c.bf16 %v2260_v25, %v2259_v24 }
0x1535   :  { %4836 = vmatpush3.bf16.msra.mxu1 %v5745_v26 }
0x1536   :  { %v5078_v28 = vpop.eup %5077  ;;  %4837 = vmatprep.subr.bf16.mxu1 %v5213_v3 }
0x1537   :  { %1855 = vrot.lane.b32.xlu0 %v5078_v28, %s5216_s0  ;;  %v2330_v28 = vpop.f32.mrb[20].mxu1 }
0x1538   :  { %v5080_v15 = vpop.eup %5079  ;;  %v4520_v29 = vpop.f32.mrb[21].mxu1 }
0x1539   :  { %v1849_v32 = vadd.f32 1.0, %v5080_v15  ;;  %v2261_v15 = vld [vmem:[%s6107_s8 + $0x10] sm:$0xff] }
0x153a   :  { %v5755_v23 = vpack.c.bf16 %v2262_v30, %v2261_v15 }
0x153b   :  { %5081 = vrcp.f32 %v1849_v32 }
0x153c   :  { %4839 = vmatpush3.bf16.msra.mxu1 %v5755_v23 }
0x153d   :  { %4840 = vmatprep.subr.bf16.mxu1 %v5213_v3 }
0x153f   :  { %4530 = vmatmul.mubr.f32.vlgmr.msra.gmra.mrb[22].mxu1 %v5214_v4 }
0x1540   :  { %4842 = vmatpush3.bf16.msra.mxu1 %v5665_v47  ;;  %4540 = vmatprep.mubr.msk.f32.mxu1 %vm5215_vm0, %v5214_v4 }
0x1541   :  { %4843 = vmatprep.subr.bf16.mxu1 %v5213_v3 }
0x1544   :  { %4845 = vmatpush3.bf16.msra.mxu1 %v5675_v50 }
0x1545   :  { %v5655_v43 = vpop.eup %5081  ;;  %4846 = vmatprep.subr.bf16.mxu1 %v5213_v3 }
0x1546   :  { %v1853_v53 = vmul.f32 %v5655_v43, %v5610_v60  ;;  %v4824_v60 = vpack.c.bf16 %v1929_v58, %v1927_v57 }
0x15a5   :  { %v1891_v0 = vpop.permute.xlu0 %1890 }
0x15a6   :  { %v1893_v10 = vmul.f32 %v5074_v49, %v1891_v0  ;;  %v1919_v49 = vld [vmem:[#allocation5 + $0x28] sm:$0xff] }
0x15a8   :  { %1901 = vrot.lane.b32.xlu1 %v1893_v10, %s5217_s2 }
0x15a9   :  { %v1856_v44 = vpop.permute.xlu0 %1855 }
0x15aa   :  { %v1858_v40 = vmul.f32 %v5655_v43, %v1856_v44 }
0x15ac   :  { %1860 = vrot.lane.b32.xlu1 %v1858_v40, %s5217_s2 }
0x1612   :  { %v2402_v55 = vpop.f32.mrb[22].mxu1 }
0x1613   :  { %v4531_v11 = vpop.f32.mrb[23].mxu1 }
0x161a   :  { %v1902_v52 = vpop.permute.xlu1 %1901 }
0x161b   :  { %1904 = vst.msk [vmem:[#allocation5] sm:$0xff] %vm68_vm1, %v1902_v52 }
0x161e   :  { %v1861_v56 = vpop.permute.xlu1 %1860 }
0x161f   :  { %v1863_v59 = vadd.f32 %v1861_v56, %v1853_v53 }
0x1621   :  { %5083 = vtanh.f32 %v1863_v59 }
0x1622   :  { %v1914_v5 = vld [vmem:[#allocation5] sm:$0xff] }
0x1623   :  { %4115 = vmatmul.mubr.msk.f32.vlgmr.msra.gmra.mrb[28].mxu0 %vm68_vm1, %v1914_v5 }
0x1624   :  { %4823 = vmatpush1.bf16.msra.mxu0 %v4822_v62  ;;  %2032 = vmatprep.mubr.f32.mxu0 %v5214_v4 }
0x1625   :  { %4825 = vmatprep.subr.bf16.mxu0 %v4824_v60 }
0x1627   :  { %4116 = vmatmul.mubr.msk.f32.gmra.mrb[30].mxu0 %vm68_vm1, %v1915_v9 }
0x1628   :  { %2038 = vmatprep.mubr.f32.mxu0 %v5214_v4  ;;  %4827 = vmatpush1.bf16.msra.mxu0 %v4826_v7 }
0x1629   :  { %4876 = vmatprep.subr.bf16.mxu0 %v5213_v3 }
0x162b   :  { %v5084_v14 = vpop.eup %5083  ;;  %4117 = vmatmul.mubr.msk.f32.gmra.mrb[32].mxu0 %vm68_vm1, %v1916_v12 }
0x162c   :  { %1866 = vrot.lane.b32.xlu0 %v5084_v14, %s5216_s0  ;;  %2044 = vmatprep.mubr.f32.mxu0 %v5214_v4 }
0x162f   :  { %4118 = vmatmul.mubr.msk.f32.gmra.mrb[34].mxu0 %vm68_vm1, %v1917_v16 }
0x1630   :  { %2050 = vmatprep.mubr.f32.mxu0 %v5214_v4 }
0x1633   :  { %4119 = vmatmul.mubr.msk.f32.gmra.mrb[36].mxu0 %vm68_vm1, %v1918_v17 }
0x1634   :  { %2056 = vmatprep.mubr.f32.mxu0 %v5214_v4 }
0x1637   :  { %4120 = vmatmul.mubr.msk.f32.gmra.mrb[38].mxu0 %vm68_vm1, %v1919_v49 }
0x1638   :  { %2062 = vmatprep.mubr.f32.mxu0 %v5214_v4 }
0x163b   :  { %4121 = vmatmul.mubr.msk.f32.gmra.mrb[40].mxu0 %vm68_vm1, %v1920_v18 }
0x163c   :  { %2068 = vmatprep.mubr.f32.mxu0 %v5214_v4 }
0x163f   :  { %4122 = vmatmul.mubr.msk.f32.gmra.mrb[42].mxu0 %vm68_vm1, %v1921_v46 }
0x1640   :  { %2163 = vmatprep.mubr.f32.mxu0 %v5214_v4 }
0x1643   :  { %4123 = vmatmul.mubr.msk.f32.vlgmr.msra.gmra.mrb[28].mxu0 %vm68_vm1, %v1906_v61 }
0x1644   :  { %2169 = vmatprep.mubr.f32.mxu0 %v5214_v4  ;;  %4878 = vmatpush3.bf16.msra.mxu0 %v5665_v47 }
0x1645   :  { %4879 = vmatprep.subr.bf16.mxu0 %v5213_v3 }
0x1647   :  { %4124 = vmatmul.mubr.msk.f32.gmra.mrb[30].mxu0 %vm68_vm1, %v1907_v54 }
0x1648   :  { %2175 = vmatprep.mubr.f32.mxu0 %v5214_v4  ;;  %4881 = vmatpush3.bf16.msra.mxu0 %v5675_v50 }
0x1649   :  { %4888 = vmatprep.subr.bf16.mxu0 %v5213_v3 }
0x164b   :  { %4125 = vmatmul.mubr.msk.f32.gmra.mrb[32].mxu0 %vm68_vm1, %v1908_v20 }
0x164c   :  { %2181 = vmatprep.mubr.f32.mxu0 %v5214_v4 }
0x164f   :  { %4126 = vmatmul.mubr.msk.f32.gmra.mrb[34].mxu0 %vm68_vm1, %v1909_v13 }
0x1650   :  { %2187 = vmatprep.mubr.f32.mxu0 %v5214_v4 }
0x1653   :  { %4127 = vmatmul.mubr.msk.f32.gmra.mrb[36].mxu0 %vm68_vm1, %v1910_v21 }
0x1654   :  { %2193 = vmatprep.mubr.f32.mxu0 %v5214_v4 }
0x1657   :  { %4128 = vmatmul.mubr.msk.f32.gmra.mrb[38].mxu0 %vm68_vm1, %v1911_v6 }
0x1658   :  { %2199 = vmatprep.mubr.f32.mxu0 %v5214_v4 }
0x165b   :  { %4129 = vmatmul.mubr.msk.f32.gmra.mrb[40].mxu0 %vm68_vm1, %v1912_v22 }
0x165c   :  { %2205 = vmatprep.mubr.f32.mxu0 %v5214_v4 }
0x169e   :  { %v1867_v31 = vpop.permute.xlu0 %1866 }
0x169f   :  { %v1869_v32 = vmul.f32 %v5655_v43, %v1867_v31 }
0x16a1   :  { %1895 = vrot.lane.b32.xlu1 %v1869_v32, %s5217_s2 }
0x1713   :  { %v1896_v33 = vpop.permute.xlu1 %1895 }
0x1714   :  { %1899 = vst.msk [vmem:[#allocation4 + $0x38] sm:$0xff] %vm68_vm1, %v1896_v33 }
0x1716   :  { %v2165_v51 = vpop.f32.mrb[28].mxu0 }
0x1717   :  { %v2223_v34 = vadd.f32 %v5773_v27, %v2165_v51  ;;  %v5777_v37 = vpop.f32.mrb[29].mxu0 }
0x1719   :  { %v2334_v39 = vadd.f32 %v2330_v28, %v2223_v34 }
0x171a   :  { %v5779_v41 = vpop.f32.mrb[30].mxu0 }
0x171b   :  { %5085 = vtanh.f32 %v2334_v39  ;;  %v5781_v42 = vpop.f32.mrb[31].mxu0  ;;  %v1913_v0 = vld [vmem:[#allocation4 + $0x38] sm:$0xff]  ;;  %v4131_v56 = vmul.f32 -1.442695, %v2334_v39  ;;  %v2225_v15 = vadd.f32 %v5773_v27, %v5779_v41 }
0x171c   :  { %4130 = vmatmul.mubr.msk.f32.gmra.mrb[42].mxu0 %vm68_vm1, %v1913_v0 }
0x171d   :  { %4606 = vmatprep.mubr.msk.f32.mxu0 %vm5215_vm0, %v5214_v4  ;;  %5087 = vpow2.f32 %v4131_v56 }
0x171e   :  { %v5786_v36 = vpop.f32.mrb[32].mxu0 }
0x171f   :  { %v5788_v10 = vpop.f32.mrb[33].mxu0 }
0x1722   :  { %v5790_v43 = vpop.f32.mrb[34].mxu0 }
0x1723   :  { %v5792_v44 = vpop.f32.mrb[35].mxu0 }
0x1725   :  { %v5086_v40 = vpop.eup %5085 }
0x1726   :  { %2416 = vrot.lane.b32.xlu0 %v5086_v40, %s5216_s0  ;;  %v5795_v19 = vpop.f32.mrb[36].mxu0 }
0x1727   :  { %v5797_v45 = vpop.f32.mrb[37].mxu0  ;;  %v5088_v57 = vpop.eup %5087 }
0x1728   :  { %v2410_v58 = vadd.f32 1.0, %v5088_v57 }
0x172a   :  { %v5799_v8 = vpop.f32.mrb[38].mxu0  ;;  %5089 = vrcp.f32 %v2410_v58 }
0x172b   :  { %v5801_v48 = vpop.f32.mrb[39].mxu0 }
0x172e   :  { %v5803_v52 = vpop.f32.mrb[40].mxu0 }
0x172f   :  { %v5805_v53 = vpop.f32.mrb[41].mxu0 }
0x1730   :  { %v2236_v57 = vadd.f32 %v5810_v63, %v5805_v53 }
0x1734   :  { %v5090_v59 = vpop.eup %5089 }
0x1735   :  { %v2414_v12 = vmul.f32 0.0, %v5090_v59 }
0x1798   :  { %v2417_v62 = vpop.permute.xlu0 %2416 }
0x1799   :  { %v2419_v60 = vmul.f32 %v5090_v59, %v2417_v62 }
0x179b   :  { %2421 = vrot.lane.b32.xlu1 %v2419_v60, %s5217_s2 }
0x17ef   :  { %v5812_v1 = vpop.f32.mrb[42].mxu0 }
0x17f0   :  { %v2209_v5 = vpop.f32.mrb[43].mxu0 }
0x17f1   :  { %v2238_v7 = vadd.f32 %v5810_v63, %v2209_v5 }
0x17f3   :  { %v2406_v9 = vadd.f32 %v2402_v55, %v2238_v7 }
0x17f5   :  { %v4132_v35 = vmul.f32 -1.442695, %v2406_v9 }
0x180d   :  { %v2422_v14 = vpop.permute.xlu1 %2421 }
0x180e   :  { %v2424_v16 = vadd.f32 %v2422_v14, %v2414_v12 }
0x1810   :  { %5091 = vtanh.f32 %v2424_v16 }
0x1811   :  { %5093 = vtanh.f32 %v2406_v9 }
0x1812   :  { %5095 = vpow2.f32 %v4132_v35 }
0x181a   :  { %v5092_v17 = vpop.eup %5091 }
0x181b   :  { %2427 = vrot.lane.b32.xlu0 %v5092_v17, %s5216_s0  ;;  %v5094_v49 = vpop.eup %5093 }
0x181c   :  { %v5096_v38 = vpop.eup %5095 }
0x181d   :  { %v2434_v18 = vadd.f32 1.0, %v5096_v38 }
0x181f   :  { %2440 = vrot.lane.b32.xlu0 %v5094_v49, %s5216_s0  ;;  %5097 = vrcp.f32 %v2434_v18 }
0x1829   :  { %v5098_v54 = vpop.eup %5097 }
0x182a   :  { %v2438_v6 = vmul.f32 0.0, %v5098_v54 }
0x188d   :  { %v2428_v46 = vpop.permute.xlu0 %2427 }
0x188e   :  { %v2430_v61 = vmul.f32 %v5090_v59, %v2428_v46 }
0x1890   :  { %2456 = vrot.lane.b32.xlu1 %v2430_v61, %s5217_s2 }
0x1891   :  { %v2441_v20 = vpop.permute.xlu0 %2440 }
0x1892   :  { %v2443_v13 = vmul.f32 %v5098_v54, %v2441_v20 }
0x1894   :  { %2445 = vrot.lane.b32.xlu1 %v2443_v13, %s5217_s2  ;;  %v2227_v13 = vadd.f32 %v5773_v27, %v5786_v36 }
0x1902   :  { %v2457_v21 = vpop.permute.xlu1 %2456 }
0x1903   :  { %2459 = vst.msk [vmem:[#allocation4] sm:$0xff] %vm68_vm1, %v2457_v21  ;;  %4541 = vmatmul.mubr.msk.f32.vlgmr.msra.gmra.mrb[24].mxu1 %vm68_vm1, %v2457_v21 }
0x1904   :  { %4848 = vmatpush3.bf16.msra.mxu1 %v5745_v26  ;;  %4551 = vmatprep.mubr.msk.f32.mxu1 %vm5215_vm0, %v5214_v4 }
0x1905   :  { %4849 = vmatprep.subr.bf16.mxu1 %v5213_v3 }
0x1906   :  { %v2446_v22 = vpop.permute.xlu1 %2445 }
0x1907   :  { %v5825_v24 = vadd.f32 %v2446_v22, %v2438_v6 }
0x1908   :  { %4851 = vmatpush3.bf16.msra.mxu1 %v5755_v23 }
0x1909   :  { %5099 = vtanh.f32 %v5825_v24  ;;  %4852 = vmatprep.subr.bf16.mxu1 %v5213_v3 }
0x1913   :  { %v5100_v25 = vpop.eup %5099 }
0x1914   :  { %2451 = vrot.lane.b32.xlu0 %v5100_v25, %s5216_s0 }
0x1986   :  { %v2452_v28 = vpop.permute.xlu0 %2451 }
0x1987   :  { %v2454_v29 = vmul.f32 %v5098_v54, %v2452_v28 }
0x1989   :  { %2461 = vrot.lane.b32.xlu1 %v2454_v29, %s5217_s2 }
0x19d6   :  { %v2534_v30 = vpop.f32.mrb[24].mxu1 }
0x19d7   :  { %v2538_v31 = vadd.f32 %v2534_v30, %v2225_v15  ;;  %v4542_v32 = vpop.f32.mrb[25].mxu1 }
0x19d9   :  { %5101 = vtanh.f32 %v2538_v31  ;;  %v4135_v51 = vmul.f32 -1.442695, %v2538_v31 }
0x19db   :  { %5103 = vpow2.f32 %v4135_v51  ;;  %v2234_v51 = vadd.f32 %v5810_v63, %v5801_v48 }
0x19e3   :  { %v5102_v2 = vpop.eup %5101 }
0x19e4   :  { %2622 = vrot.lane.b32.xlu0 %v5102_v2, %s5216_s0 }
0x19e5   :  { %v5104_v34 = vpop.eup %5103 }
0x19e6   :  { %v2616_v39 = vadd.f32 1.0, %v5104_v34 }
0x19e8   :  { %5105 = vrcp.f32 %v2616_v39 }
0x19f2   :  { %v5106_v41 = vpop.eup %5105 }
0x19f3   :  { %v2620_v55 = vmul.f32 %v5106_v41, %v2424_v16 }
0x19fb   :  { %v2462_v33 = vpop.permute.xlu1 %2461 }
0x19fc   :  { %2464 = vst.msk [vmem:[#allocation5 + $0x38] sm:$0xff] %vm68_vm1, %v2462_v33  ;;  %4552 = vmatmul.mubr.msk.f32.vlgmr.msra.gmra.mrb[26].mxu1 %vm68_vm1, %v2462_v33 }
0x19fd   :  { %4854 = vmatpush3.bf16.msra.mxu1 %v5665_v47  ;;  %4562 = vmatprep.mubr.msk.f32.mxu1 %vm5215_vm0, %v5214_v4 }
0x19fe   :  { %4855 = vmatprep.subr.bf16.mxu1 %v5213_v3 }
0x1a01   :  { %4857 = vmatpush3.bf16.msra.mxu1 %v5675_v50 }
0x1a02   :  { %4858 = vmatprep.subr.bf16.mxu1 %v5213_v3 }
0x1a56   :  { %v2623_v0 = vpop.permute.xlu0 %2622 }
0x1a57   :  { %v2625_v40 = vmul.f32 %v5106_v41, %v2623_v0 }
0x1a59   :  { %2627 = vrot.lane.b32.xlu1 %v2625_v40, %s5217_s2 }
0x1acb   :  { %v2628_v11 = vpop.permute.xlu1 %2627 }
0x1acc   :  { %v5844_v56 = vadd.f32 %v2628_v11, %v2620_v55 }
0x1ace   :  { %5107 = vtanh.f32 %v5844_v56 }
0x1acf   :  { %v2608_v58 = vpop.f32.mrb[26].mxu1 }
0x1ad0   :  { %v2612_v59 = vadd.f32 %v2608_v58, %v2236_v57  ;;  %v4553_v62 = vpop.f32.mrb[27].mxu1 }
0x1ad2   :  { %5109 = vtanh.f32 %v2612_v59  ;;  %v4136_v7 = vmul.f32 -1.442695, %v2612_v59 }
0x1ad4   :  { %5111 = vpow2.f32 %v4136_v7 }
0x1ad8   :  { %v5108_v60 = vpop.eup %5107 }
0x1ad9   :  { %2633 = vrot.lane.b32.xlu0 %v5108_v60, %s5216_s0 }
0x1adc   :  { %v5110_v5 = vpop.eup %5109 }
0x1add   :  { %2646 = vrot.lane.b32.xlu0 %v5110_v5, %s5216_s0 }
0x1ade   :  { %v5112_v9 = vpop.eup %5111 }
0x1adf   :  { %v2640_v12 = vadd.f32 1.0, %v5112_v9 }
0x1ae1   :  { %5113 = vrcp.f32 %v2640_v12 }
0x1aeb   :  { %v5114_v53 = vpop.eup %5113 }
0x1aec   :  { %v2644_v38 = vmul.f32 %v5114_v53, %v5825_v24 }
0x1b4b   :  { %v2634_v14 = vpop.permute.xlu0 %2633 }
0x1b4c   :  { %v2636_v16 = vmul.f32 %v5106_v41, %v2634_v14 }
0x1b4e   :  { %2662 = vrot.lane.b32.xlu1 %v2636_v16, %s5217_s2 }
0x1b4f   :  { %v2647_v17 = vpop.permute.xlu0 %2646 }
0x1b50   :  { %v2649_v49 = vmul.f32 %v5114_v53, %v2647_v17 }
0x1b52   :  { %2651 = vrot.lane.b32.xlu1 %v2649_v49, %s5217_s2 }
0x1bc0   :  { %v2663_v35 = vpop.permute.xlu1 %2662 }
0x1bc1   :  { %2665 = vst.msk [vmem:[#allocation4 + $0x8] sm:$0xff] %vm68_vm1, %v2663_v35  ;;  %4563 = vmatmul.mubr.msk.f32.vlgmr.msra.gmra.mrb[28].mxu1 %vm68_vm1, %v2663_v35 }
0x1bc2   :  { %4860 = vmatpush3.bf16.msra.mxu1 %v5745_v26  ;;  %4573 = vmatprep.mubr.msk.f32.mxu1 %vm5215_vm0, %v5214_v4 }
0x1bc3   :  { %4861 = vmatprep.subr.bf16.mxu1 %v5213_v3 }
0x1bc4   :  { %v2652_v18 = vpop.permute.xlu1 %2651 }
0x1bc5   :  { %v5860_v46 = vadd.f32 %v2652_v18, %v2644_v38 }
0x1bc6   :  { %4863 = vmatpush3.bf16.msra.mxu1 %v5755_v23 }
0x1bc7   :  { %5115 = vtanh.f32 %v5860_v46  ;;  %4864 = vmatprep.subr.bf16.mxu1 %v5213_v3 }
0x1bd1   :  { %v5116_v61 = vpop.eup %5115 }
0x1bd2   :  { %2657 = vrot.lane.b32.xlu0 %v5116_v61, %s5216_s0 }
0x1c44   :  { %v2658_v54 = vpop.permute.xlu0 %2657 }
0x1c45   :  { %v2660_v20 = vmul.f32 %v5114_v53, %v2658_v54  ;;  %v2229_v53 = vadd.f32 %v5773_v27, %v5790_v43 }
0x1c47   :  { %2667 = vrot.lane.b32.xlu1 %v2660_v20, %s5217_s2 }
0x1c94   :  { %v2740_v21 = vpop.f32.mrb[28].mxu1 }
0x1c95   :  { %v2744_v6 = vadd.f32 %v2740_v21, %v2227_v13  ;;  %v4564_v22 = vpop.f32.mrb[29].mxu1 }
0x1c97   :  { %5117 = vtanh.f32 %v2744_v6  ;;  %v4139_v36 = vmul.f32 -1.442695, %v2744_v6 }
0x1c99   :  { %5119 = vpow2.f32 %v4139_v36 }
0x1ca1   :  { %v5118_v24 = vpop.eup %5117 }
0x1ca2   :  { %2828 = vrot.lane.b32.xlu0 %v5118_v24, %s5216_s0  ;;  %v2232_v24 = vadd.f32 %v5810_v63, %v5797_v45 }
0x1ca3   :  { %v5120_v28 = vpop.eup %5119 }
0x1ca4   :  { %v2822_v29 = vadd.f32 1.0, %v5120_v28 }
0x1ca6   :  { %5121 = vrcp.f32 %v2822_v29 }
0x1cb0   :  { %v5122_v15 = vpop.eup %5121 }
0x1cb1   :  { %v2826_v32 = vmul.f32 %v5122_v15, %v5844_v56 }
0x1cb9   :  { %v2668_v25 = vpop.permute.xlu1 %2667 }
0x1cba   :  { %2670 = vst.msk [vmem:[#allocation5 + $0x30] sm:$0xff] %vm68_vm1, %v2668_v25  ;;  %4574 = vmatmul.mubr.msk.f32.vlgmr.msra.gmra.mrb[30].mxu1 %vm68_vm1, %v2668_v25 }
0x1cbb   :  { %4866 = vmatpush3.bf16.msra.mxu1 %v5665_v47  ;;  %4584 = vmatprep.mubr.msk.f32.mxu1 %vm5215_vm0, %v5214_v4 }
0x1cbc   :  { %4867 = vmatprep.subr.bf16.mxu1 %v5213_v3 }
0x1cbf   :  { %4869 = vmatpush3.bf16.msra.mxu1 %v5675_v50 }
0x1cc0   :  { %4870 = vmatprep.subr.bf16.mxu1 %v5213_v3 }
0x1d14   :  { %v2829_v30 = vpop.permute.xlu0 %2828 }
0x1d15   :  { %v2831_v31 = vmul.f32 %v5122_v15, %v2829_v30 }
0x1d17   :  { %2833 = vrot.lane.b32.xlu1 %v2831_v31, %s5217_s2 }
0x1d89   :  { %v2834_v2 = vpop.permute.xlu1 %2833 }
0x1d8a   :  { %v5880_v33 = vadd.f32 %v2834_v2, %v2826_v32 }
0x1d8c   :  { %5123 = vtanh.f32 %v5880_v33 }
0x1d8d   :  { %v2814_v34 = vpop.f32.mrb[30].mxu1 }
0x1d8e   :  { %v2818_v39 = vadd.f32 %v2814_v34, %v2234_v51  ;;  %v4575_v41 = vpop.f32.mrb[31].mxu1 }
0x1d90   :  { %5125 = vtanh.f32 %v2818_v39  ;;  %v4140_v55 = vmul.f32 -1.442695, %v2818_v39 }
0x1d92   :  { %5127 = vpow2.f32 %v4140_v55 }
0x1d96   :  { %v5124_v0 = vpop.eup %5123 }
0x1d97   :  { %2839 = vrot.lane.b32.xlu0 %v5124_v0, %s5216_s0 }
0x1d9a   :  { %v5126_v40 = vpop.eup %5125 }
0x1d9b   :  { %2852 = vrot.lane.b32.xlu0 %v5126_v40, %s5216_s0 }
0x1d9c   :  { %v5128_v11 = vpop.eup %5127 }
0x1d9d   :  { %v2846_v56 = vadd.f32 1.0, %v5128_v11 }
0x1d9f   :  { %5129 = vrcp.f32 %v2846_v56 }
0x1da9   :  { %v5130_v48 = vpop.eup %5129 }
0x1daa   :  { %v2850_v5 = vmul.f32 %v5130_v48, %v5860_v46 }
0x1e09   :  { %v2840_v57 = vpop.permute.xlu0 %2839 }
0x1e0a   :  { %v2842_v58 = vmul.f32 %v5122_v15, %v2840_v57  ;;  %v2231_v57 = vadd.f32 %v5773_v27, %v5795_v19 }
0x1e0c   :  { %2868 = vrot.lane.b32.xlu1 %v2842_v58, %s5217_s2 }
0x1e0d   :  { %v2853_v59 = vpop.permute.xlu0 %2852 }
0x1e0e   :  { %v2855_v62 = vmul.f32 %v5130_v48, %v2853_v59 }
0x1e10   :  { %2857 = vrot.lane.b32.xlu1 %v2855_v62, %s5217_s2 }
0x1e7e   :  { %v2869_v60 = vpop.permute.xlu1 %2868 }
0x1e7f   :  { %2871 = vst.msk [vmem:[#allocation4 + $0x10] sm:$0xff] %vm68_vm1, %v2869_v60  ;;  %4585 = vmatmul.mubr.msk.f32.vlgmr.msra.gmra.mrb[32].mxu1 %vm68_vm1, %v2869_v60 }
0x1e80   :  { %4872 = vmatpush3.bf16.msra.mxu1 %v5745_v26  ;;  %4595 = vmatprep.mubr.msk.f32.mxu1 %vm5215_vm0, %v5214_v4 }
0x1e81   :  { %4873 = vmatprep.subr.bf16.mxu1 %v5213_v3 }
0x1e82   :  { %v2858_v7 = vpop.permute.xlu1 %2857 }
0x1e83   :  { %v5896_v9 = vadd.f32 %v2858_v7, %v2850_v5 }
0x1e84   :  { %4875 = vmatpush3.bf16.msra.mxu1 %v5755_v23 }
0x1e85   :  { %5131 = vtanh.f32 %v5896_v9  ;;  %4882 = vmatprep.subr.bf16.mxu1 %v5213_v3 }
0x1e8f   :  { %v5132_v12 = vpop.eup %5131 }
0x1e90   :  { %2863 = vrot.lane.b32.xlu0 %v5132_v12, %s5216_s0 }
0x1f02   :  { %v2864_v14 = vpop.permute.xlu0 %2863 }
0x1f03   :  { %v2866_v16 = vmul.f32 %v5130_v48, %v2864_v14 }
0x1f05   :  { %2873 = vrot.lane.b32.xlu1 %v2866_v16, %s5217_s2 }
0x1f52   :  { %v2946_v17 = vpop.f32.mrb[32].mxu1 }
0x1f53   :  { %v2950_v49 = vadd.f32 %v2946_v17, %v2229_v53  ;;  %v4586_v35 = vpop.f32.mrb[33].mxu1 }
0x1f55   :  { %5133 = vtanh.f32 %v2950_v49  ;;  %v4143_v43 = vmul.f32 -1.442695, %v2950_v49  ;;  %v2230_v49 = vadd.f32 %v5810_v63, %v5792_v44 }
0x1f57   :  { %5135 = vpow2.f32 %v4143_v43 }
0x1f5f   :  { %v5134_v38 = vpop.eup %5133 }
0x1f60   :  { %3034 = vrot.lane.b32.xlu0 %v5134_v38, %s5216_s0 }
0x1f61   :  { %v5136_v46 = vpop.eup %5135 }
0x1f62   :  { %v3028_v61 = vadd.f32 1.0, %v5136_v46 }
0x1f64   :  { %5137 = vrcp.f32 %v3028_v61 }
0x1f6e   :  { %v5138_v54 = vpop.eup %5137 }
0x1f6f   :  { %v3032_v21 = vmul.f32 %v5138_v54, %v5880_v33 }
0x1f77   :  { %v2874_v18 = vpop.permute.xlu1 %2873 }
0x1f78   :  { %2876 = vst.msk [vmem:[#allocation5 + $0x28] sm:$0xff] %vm68_vm1, %v2874_v18  ;;  %4596 = vmatmul.mubr.msk.f32.vlgmr.msra.gmra.mrb[34].mxu1 %vm68_vm1, %v2874_v18 }
0x1f79   :  { %4884 = vmatpush3.bf16.msra.mxu1 %v5745_v26  ;;  %4617 = vmatprep.mubr.msk.f32.mxu1 %vm5215_vm0, %v5214_v4 }
0x1f7a   :  { %4885 = vmatprep.subr.bf16.mxu1 %v5213_v3 }
0x1f7d   :  { %4887 = vmatpush3.bf16.msra.mxu1 %v5755_v23 }
0x1f7e   :  { %4894 = vmatprep.subr.bf16.mxu1 %v5213_v3 }
0x1fd2   :  { %v3035_v20 = vpop.permute.xlu0 %3034 }
0x1fd3   :  { %v3037_v13 = vmul.f32 %v5138_v54, %v3035_v20 }
0x1fd5   :  { %3039 = vrot.lane.b32.xlu1 %v3037_v13, %s5217_s2 }
0x2047   :  { %v3040_v6 = vpop.permute.xlu1 %3039 }
0x2048   :  { %v5916_v22 = vadd.f32 %v3040_v6, %v3032_v21 }
0x204a   :  { %5139 = vtanh.f32 %v5916_v22 }
0x204b   :  { %v3020_v25 = vpop.f32.mrb[34].mxu1 }
0x204c   :  { %v3024_v36 = vadd.f32 %v3020_v25, %v2232_v24  ;;  %v4597_v28 = vpop.f32.mrb[35].mxu1 }
0x204e   :  { %5141 = vtanh.f32 %v3024_v36  ;;  %v4144_v30 = vmul.f32 -1.442695, %v3024_v36 }
0x2050   :  { %5143 = vpow2.f32 %v4144_v30 }
0x2054   :  { %v5140_v29 = vpop.eup %5139 }
0x2055   :  { %3045 = vrot.lane.b32.xlu0 %v5140_v29, %s5216_s0 }
0x2058   :  { %v5142_v15 = vpop.eup %5141 }
0x2059   :  { %3058 = vrot.lane.b32.xlu0 %v5142_v15, %s5216_s0 }
0x205a   :  { %v5144_v31 = vpop.eup %5143 }
0x205b   :  { %v3052_v32 = vadd.f32 1.0, %v5144_v31  ;;  %v2233_v31 = vadd.f32 %v5773_v27, %v5799_v8 }
0x205d   :  { %5145 = vrcp.f32 %v3052_v32 }
0x2067   :  { %v5146_v45 = vpop.eup %5145 }
0x2068   :  { %v3056_v41 = vmul.f32 %v5146_v45, %v5896_v9 }
0x20c7   :  { %v3046_v2 = vpop.permute.xlu0 %3045 }
0x20c8   :  { %v3048_v33 = vmul.f32 %v5138_v54, %v3046_v2 }
0x20ca   :  { %3074 = vrot.lane.b32.xlu1 %v3048_v33, %s5217_s2 }
0x20cb   :  { %v3059_v51 = vpop.permute.xlu0 %3058 }
0x20cc   :  { %v3061_v34 = vmul.f32 %v5146_v45, %v3059_v51 }
0x20ce   :  { %3063 = vrot.lane.b32.xlu1 %v3061_v34, %s5217_s2 }
0x213c   :  { %v3075_v39 = vpop.permute.xlu1 %3074 }
0x213d   :  { %3077 = vst.msk [vmem:[#allocation4 + $0x18] sm:$0xff] %vm68_vm1, %v3075_v39  ;;  %4607 = vmatmul.mubr.msk.f32.vlgmr.msra.gmra.mrb[44].mxu0 %vm68_vm1, %v3075_v39 }
0x213e   :  { %4890 = vmatpush3.bf16.msra.mxu0 %v5665_v47  ;;  %4628 = vmatprep.mubr.msk.f32.mxu0 %vm5215_vm0, %v5214_v4 }
0x213f   :  { %4891 = vmatprep.subr.bf16.mxu0 %v5213_v3 }
0x2140   :  { %v3064_v0 = vpop.permute.xlu1 %3063 }
0x2141   :  { %v5932_v40 = vadd.f32 %v3064_v0, %v3056_v41 }
0x2142   :  { %4893 = vmatpush3.bf16.msra.mxu0 %v5675_v50 }
0x2143   :  { %5147 = vtanh.f32 %v5932_v40  ;;  %4900 = vmatprep.subr.bf16.mxu0 %v5213_v3 }
0x214d   :  { %v5148_v55 = vpop.eup %5147 }
0x214e   :  { %3069 = vrot.lane.b32.xlu0 %v5148_v55, %s5216_s0 }
0x21c0   :  { %v3070_v11 = vpop.permute.xlu0 %3069 }
0x21c1   :  { %v3072_v56 = vmul.f32 %v5146_v45, %v3070_v11 }
0x21c3   :  { %3079 = vrot.lane.b32.xlu1 %v3072_v56, %s5217_s2 }
0x2210   :  { %v3152_v58 = vpop.f32.mrb[44].mxu0 }
0x2211   :  { %v3156_v48 = vadd.f32 %v3152_v58, %v2231_v57  ;;  %v4608_v59 = vpop.f32.mrb[45].mxu0  ;;  %v2228_v57 = vadd.f32 %v5810_v63, %v5788_v10 }
0x2213   :  { %5149 = vtanh.f32 %v3156_v48  ;;  %v4147_v19 = vmul.f32 -1.442695, %v3156_v48 }
0x2215   :  { %5151 = vpow2.f32 %v4147_v19 }
0x221d   :  { %v5150_v62 = vpop.eup %5149 }
0x221e   :  { %3240 = vrot.lane.b32.xlu0 %v5150_v62, %s5216_s0 }
0x221f   :  { %v5152_v5 = vpop.eup %5151 }
0x2220   :  { %v3234_v7 = vadd.f32 1.0, %v5152_v5 }
0x2222   :  { %5153 = vrcp.f32 %v3234_v7 }
0x222c   :  { %v5154_v9 = vpop.eup %5153 }
0x222d   :  { %v3238_v16 = vmul.f32 %v5154_v9, %v5916_v22 }
0x2235   :  { %v3080_v60 = vpop.permute.xlu1 %3079 }
0x2236   :  { %3082 = vst.msk [vmem:[#allocation5 + $0x20] sm:$0xff] %vm68_vm1, %v3080_v60  ;;  %4618 = vmatmul.mubr.msk.f32.vlgmr.msra.gmra.mrb[36].mxu1 %vm68_vm1, %v3080_v60 }
0x2237   :  { %4896 = vmatpush3.bf16.msra.mxu1 %v5745_v26  ;;  %4639 = vmatprep.mubr.msk.f32.mxu1 %vm5215_vm0, %v5214_v4 }
0x2238   :  { %4897 = vmatprep.subr.bf16.mxu1 %v5213_v3 }
0x223b   :  { %4899 = vmatpush3.bf16.msra.mxu1 %v5755_v23 }
0x223c   :  { %4906 = vmatprep.subr.bf16.mxu1 %v5213_v3 }
0x2290   :  { %v3241_v12 = vpop.permute.xlu0 %3240 }
0x2291   :  { %v3243_v14 = vmul.f32 %v5154_v9, %v3241_v12 }
0x2293   :  { %3245 = vrot.lane.b32.xlu1 %v3243_v14, %s5217_s2 }
0x2305   :  { %v3246_v53 = vpop.permute.xlu1 %3245 }
0x2306   :  { %v5952_v17 = vadd.f32 %v3246_v53, %v3238_v16 }
0x2308   :  { %5155 = vtanh.f32 %v5952_v17 }
0x2309   :  { %v3226_v35 = vpop.f32.mrb[36].mxu1 }
0x230a   :  { %v3230_v38 = vadd.f32 %v3226_v35, %v2230_v49  ;;  %v4619_v18 = vpop.f32.mrb[37].mxu1 }
0x230c   :  { %5157 = vtanh.f32 %v3230_v38  ;;  %v4148_v61 = vmul.f32 -1.442695, %v3230_v38 }
0x230e   :  { %5159 = vpow2.f32 %v4148_v61 }
0x2312   :  { %v5156_v43 = vpop.eup %5155 }
0x2313   :  { %3251 = vrot.lane.b32.xlu0 %v5156_v43, %s5216_s0  ;;  %v2235_v43 = vadd.f32 %v5773_v27, %v5803_v52 }
0x2316   :  { %v5158_v46 = vpop.eup %5157 }
0x2317   :  { %3264 = vrot.lane.b32.xlu0 %v5158_v46, %s5216_s0 }
0x2318   :  { %v5160_v54 = vpop.eup %5159 }
0x2319   :  { %v3258_v20 = vadd.f32 1.0, %v5160_v54 }
0x231b   :  { %5161 = vrcp.f32 %v3258_v20 }
0x2325   :  { %v5162_v44 = vpop.eup %5161 }
0x2326   :  { %v3262_v25 = vmul.f32 %v5162_v44, %v5932_v40 }
0x2385   :  { %v3252_v13 = vpop.permute.xlu0 %3251 }
0x2386   :  { %v3254_v21 = vmul.f32 %v5154_v9, %v3252_v13 }
0x2388   :  { %3280 = vrot.lane.b32.xlu1 %v3254_v21, %s5217_s2 }
0x2389   :  { %v3265_v6 = vpop.permute.xlu0 %3264 }
0x238a   :  { %v3267_v22 = vmul.f32 %v5162_v44, %v3265_v6 }
0x238c   :  { %3269 = vrot.lane.b32.xlu1 %v3267_v22, %s5217_s2 }
0x23fa   :  { %v3281_v24 = vpop.permute.xlu1 %3280 }
0x23fb   :  { %3283 = vst.msk [vmem:[#allocation4 + $0x20] sm:$0xff] %vm68_vm1, %v3281_v24  ;;  %4629 = vmatmul.mubr.msk.f32.vlgmr.msra.gmra.mrb[46].mxu0 %vm68_vm1, %v3281_v24 }
0x23fc   :  { %4902 = vmatpush3.bf16.msra.mxu0 %v5665_v47  ;;  %4650 = vmatprep.mubr.msk.f32.mxu0 %vm5215_vm0, %v5214_v4 }
0x23fd   :  { %4903 = vmatprep.subr.bf16.mxu0 %v5213_v3 }
0x23fe   :  { %v3270_v36 = vpop.permute.xlu1 %3269 }
0x23ff   :  { %v5968_v28 = vadd.f32 %v3270_v36, %v3262_v25 }
0x2400   :  { %4905 = vmatpush3.bf16.msra.mxu0 %v5675_v50 }
0x2401   :  { %5163 = vtanh.f32 %v5968_v28  ;;  %4912 = vmatprep.subr.bf16.mxu0 %v5213_v3 }
0x240b   :  { %v5164_v29 = vpop.eup %5163 }
0x240c   :  { %3275 = vrot.lane.b32.xlu0 %v5164_v29, %s5216_s0 }
0x247e   :  { %v3276_v15 = vpop.permute.xlu0 %3275 }
0x247f   :  { %v3278_v30 = vmul.f32 %v5162_v44, %v3276_v15 }
0x2481   :  { %3285 = vrot.lane.b32.xlu1 %v3278_v30, %s5217_s2 }
0x24ce   :  { %v3358_v32 = vpop.f32.mrb[46].mxu0 }
0x24cf   :  { %v3362_v2 = vadd.f32 %v3358_v32, %v2233_v31  ;;  %v4630_v33 = vpop.f32.mrb[47].mxu0 }
0x24d1   :  { %5165 = vtanh.f32 %v3362_v2  ;;  %v4151_v8 = vmul.f32 -1.442695, %v3362_v2 }
0x24d3   :  { %5167 = vpow2.f32 %v4151_v8 }
0x24db   :  { %v5166_v45 = vpop.eup %5165 }
0x24dc   :  { %3446 = vrot.lane.b32.xlu0 %v5166_v45, %s5216_s0 }
0x24dd   :  { %v5168_v34 = vpop.eup %5167 }
0x24de   :  { %v3440_v39 = vadd.f32 1.0, %v5168_v34  ;;  %v3913_v34 = vld [vmem:[%s6109_s9 + $0x20] sm:$0xff] }
0x24e0   :  { %5169 = vrcp.f32 %v3440_v39  ;;  %v3914_v39 = vld [vmem:[%s6109_s9 + $0x28] sm:$0xff] }
0x24ea   :  { %v5170_v41 = vpop.eup %5169 }
0x24eb   :  { %v3444_v55 = vmul.f32 %v5170_v41, %v5952_v17 }
0x24f3   :  { %v3286_v51 = vpop.permute.xlu1 %3285 }
0x24f4   :  { %3288 = vst.msk [vmem:[#allocation5 + $0x18] sm:$0xff] %vm68_vm1, %v3286_v51  ;;  %4640 = vmatmul.mubr.msk.f32.vlgmr.msra.gmra.mrb[38].mxu1 %vm68_vm1, %v3286_v51 }
0x24f5   :  { %4908 = vmatpush3.bf16.msra.mxu1 %v5745_v26  ;;  %4661 = vmatprep.mubr.msk.f32.mxu1 %vm5215_vm0, %v5214_v4 }
0x24f6   :  { %4909 = vmatprep.subr.bf16.mxu1 %v5213_v3 }
0x24f9   :  { %4911 = vmatpush3.bf16.msra.mxu1 %v5755_v23 }
0x24fa   :  { %4918 = vmatprep.subr.bf16.mxu1 %v5213_v3 }
0x254e   :  { %v3447_v0 = vpop.permute.xlu0 %3446 }
0x254f   :  { %v3449_v40 = vmul.f32 %v5170_v41, %v3447_v0  ;;  %v3915_v0 = vld [vmem:[%s6109_s9 + $0x30] sm:$0xff] }
0x2551   :  { %3451 = vrot.lane.b32.xlu1 %v3449_v40, %s5217_s2  ;;  %v3916_v40 = vld [vmem:[%s6109_s9 + $0x38] sm:$0xff] }
0x25c3   :  { %v3452_v11 = vpop.permute.xlu1 %3451 }
0x25c4   :  { %v5988_v56 = vadd.f32 %v3452_v11, %v3444_v55  ;;  %v4928_v11 = vpack.c.bf16 %v3916_v40, %v3915_v0 }
0x25c6   :  { %5171 = vtanh.f32 %v5988_v56 }
0x25c7   :  { %v3432_v58 = vpop.f32.mrb[38].mxu1 }
0x25c8   :  { %v3436_v48 = vadd.f32 %v3432_v58, %v2228_v57  ;;  %v4641_v59 = vpop.f32.mrb[39].mxu1 }
0x25ca   :  { %5173 = vtanh.f32 %v3436_v48  ;;  %v4152_v19 = vmul.f32 -1.442695, %v3436_v48  ;;  %v3908_v48 = vld [vmem:[#allocation5 + $0x38] sm:$0xff] }
0x25cc   :  { %5175 = vpow2.f32 %v4152_v19  ;;  %v2237_v19 = vadd.f32 %v5773_v27, %v5812_v1 }
0x25d0   :  { %v5172_v62 = vpop.eup %5171 }
0x25d1   :  { %3457 = vrot.lane.b32.xlu0 %v5172_v62, %s5216_s0 }
0x25d4   :  { %v5174_v60 = vpop.eup %5173 }
0x25d5   :  { %3470 = vrot.lane.b32.xlu0 %v5174_v60, %s5216_s0 }
0x25d6   :  { %v5176_v5 = vpop.eup %5175 }
0x25d7   :  { %v3464_v7 = vadd.f32 1.0, %v5176_v5 }
0x25d9   :  { %5177 = vrcp.f32 %v3464_v7 }
0x25e3   :  { %v5178_v10 = vpop.eup %5177 }
0x25e4   :  { %v3468_v17 = vmul.f32 %v5178_v10, %v5968_v28 }
0x2643   :  { %v3458_v9 = vpop.permute.xlu0 %3457 }
0x2644   :  { %v3460_v12 = vmul.f32 %v5170_v41, %v3458_v9  ;;  %v4925_v41 = vpack.c.bf16 %v3914_v39, %v3913_v34 }
0x2646   :  { %3486 = vrot.lane.b32.xlu1 %v3460_v12, %s5217_s2 }
0x2647   :  { %v3471_v14 = vpop.permute.xlu0 %3470 }
0x2648   :  { %v3473_v16 = vmul.f32 %v5178_v10, %v3471_v14 }
0x264a   :  { %3475 = vrot.lane.b32.xlu1 %v3473_v16, %s5217_s2 }
0x26b8   :  { %v3487_v53 = vpop.permute.xlu1 %3486 }
0x26b9   :  { %3489 = vst.msk [vmem:[#allocation4 + $0x28] sm:$0xff] %vm68_vm1, %v3487_v53  ;;  %4651 = vmatmul.mubr.msk.f32.vlgmr.msra.gmra.mrb[48].mxu0 %vm68_vm1, %v3487_v53 }
0x26ba   :  { %4914 = vmatpush3.bf16.msra.mxu0 %v5665_v47  ;;  %4672 = vmatprep.mubr.msk.f32.mxu0 %vm5215_vm0, %v5214_v4 }
0x26bb   :  { %4915 = vmatprep.subr.bf16.mxu0 %v5213_v3 }
0x26bc   :  { %v3476_v49 = vpop.permute.xlu1 %3475 }
0x26bd   :  { %v6004_v35 = vadd.f32 %v3476_v49, %v3468_v17 }
0x26be   :  { %4917 = vmatpush3.bf16.msra.mxu0 %v5675_v50 }
0x26bf   :  { %5179 = vtanh.f32 %v6004_v35  ;;  %4924 = vmatprep.subr.bf16.mxu0 %v5213_v3 }
0x26c9   :  { %v5180_v38 = vpop.eup %5179 }
0x26ca   :  { %3481 = vrot.lane.b32.xlu0 %v5180_v38, %s5216_s0 }
0x273c   :  { %v3482_v47 = vpop.permute.xlu0 %3481 }
0x273d   :  { %v3484_v18 = vmul.f32 %v5178_v10, %v3482_v47 }
0x273f   :  { %3491 = vrot.lane.b32.xlu1 %v3484_v18, %s5217_s2 }
0x278c   :  { %v3564_v46 = vpop.f32.mrb[48].mxu0 }
0x278d   :  { %v3568_v61 = vadd.f32 %v3564_v46, %v2235_v43  ;;  %v4652_v54 = vpop.f32.mrb[49].mxu0  ;;  %v2224_v43 = vadd.f32 %v5810_v63, %v5777_v37  ;;  %v3910_v37 = vld [vmem:[%s6109_s9 + $0x8] sm:$0xff] }
0x278f   :  { %5181 = vtanh.f32 %v3568_v61  ;;  %v4155_v52 = vmul.f32 -1.442695, %v3568_v61 }
0x2791   :  { %5183 = vpow2.f32 %v4155_v52 }
0x2799   :  { %v5182_v20 = vpop.eup %5181 }
0x279a   :  { %3652 = vrot.lane.b32.xlu0 %v5182_v20, %s5216_s0 }
0x279b   :  { %v5184_v13 = vpop.eup %5183 }
0x279c   :  { %v3646_v21 = vadd.f32 1.0, %v5184_v13  ;;  %v3909_v13 = vld [vmem:[%s6109_s9] sm:$0xff] }
0x279e   :  { %5185 = vrcp.f32 %v3646_v21  ;;  %v4931_v21 = vpack.c.bf16 %v3910_v37, %v3909_v13 }
0x27a8   :  { %v5186_v44 = vpop.eup %5185 }
0x27b1   :  { %v3492_v50 = vpop.permute.xlu1 %3491 }
0x27b2   :  { %3494 = vst.msk [vmem:[#allocation5 + $0x10] sm:$0xff] %vm68_vm1, %v3492_v50  ;;  %4662 = vmatmul.mubr.msk.f32.vlgmr.msra.gmra.mrb[40].mxu1 %vm68_vm1, %v3492_v50 }
0x27b3   :  { %4920 = vmatpush3.bf16.msra.mxu1 %v5745_v26  ;;  %4683 = vmatprep.mubr.msk.f32.mxu1 %vm5215_vm0, %v5214_v4  ;;  %v3650_v26 = vmul.f32 %v5186_v44, %v5988_v56 }
0x27b4   :  { %4921 = vmatprep.subr.bf16.mxu1 %v5213_v3 }
0x27b7   :  { %4923 = vmatpush3.bf16.msra.mxu1 %v5755_v23  ;;  %v2226_v23 = vadd.f32 %v5810_v63, %v5781_v42 }
0x27b8   :  { %4930 = vmatprep.subr.bf16.mxu1 %v5213_v3 }
0x280c   :  { %v3653_v6 = vpop.permute.xlu0 %3652 }
0x280d   :  { %v3655_v22 = vmul.f32 %v5186_v44, %v3653_v6  ;;  %v3912_v6 = vld [vmem:[%s6109_s9 + $0x18] sm:$0xff] }
0x280f   :  { %3657 = vrot.lane.b32.xlu1 %v3655_v22, %s5217_s2 }
0x2881   :  { %v3658_v24 = vpop.permute.xlu1 %3657 }
0x2882   :  { %v6024_v25 = vadd.f32 %v3658_v24, %v3650_v26 }
0x2884   :  { %5187 = vtanh.f32 %v6024_v25 }
0x2885   :  { %v3638_v36 = vpop.f32.mrb[40].mxu1 }
0x2886   :  { %v3642_v28 = vadd.f32 %v3638_v36, %v2226_v23  ;;  %v4663_v29 = vpop.f32.mrb[41].mxu1 }
0x2888   :  { %5189 = vtanh.f32 %v3642_v28  ;;  %v4156_v31 = vmul.f32 -1.442695, %v3642_v28 }
0x288a   :  { %5191 = vpow2.f32 %v4156_v31  ;;  %v16_v31 = vstv %s6110_s10 }
0x288b   :  { %17 = vst [vmem:[#allocation6] sm:$0x1] %v16_v31 }
0x288e   :  { %v5188_v15 = vpop.eup %5187 }
0x288f   :  { %3663 = vrot.lane.b32.xlu0 %v5188_v15, %s5216_s0 }
0x2892   :  { %v5190_v30 = vpop.eup %5189 }
0x2893   :  { %3676 = vrot.lane.b32.xlu0 %v5190_v30, %s5216_s0 }
0x2894   :  { %v5192_v32 = vpop.eup %5191 }
0x2895   :  { %v3670_v2 = vadd.f32 1.0, %v5192_v32 }
0x2897   :  { %5193 = vrcp.f32 %v3670_v2 }
0x28a1   :  { %v5194_v42 = vpop.eup %5193 }
0x28a2   :  { %v3674_v56 = vmul.f32 %v5194_v42, %v6004_v35 }
0x2901   :  { %v3664_v33 = vpop.permute.xlu0 %3663 }
0x2902   :  { %v3666_v45 = vmul.f32 %v5186_v44, %v3664_v33  ;;  %v3911_v44 = vld [vmem:[%s6109_s9 + $0x10] sm:$0xff] }
0x2903   :  { %v4934_v22 = vpack.c.bf16 %v3912_v6, %v3911_v44 }
0x2904   :  { %3692 = vrot.lane.b32.xlu1 %v3666_v45, %s5217_s2 }
0x2905   :  { %v3677_v51 = vpop.permute.xlu0 %3676 }
0x2906   :  { %v3679_v8 = vmul.f32 %v5194_v42, %v3677_v51 }
0x2908   :  { %3681 = vrot.lane.b32.xlu1 %v3679_v8, %s5217_s2 }
0x2976   :  { %v3693_v55 = vpop.permute.xlu1 %3692 }
0x2977   :  { %3695 = vst.msk [vmem:[#allocation4 + $0x30] sm:$0xff] %vm68_vm1, %v3693_v55  ;;  %4673 = vmatmul.mubr.msk.f32.vlgmr.msra.gmra.mrb[50].mxu0 %vm68_vm1, %v3693_v55 }
0x2978   :  { %4926 = vmatpush3.bf16.msra.mxu0 %v4925_v41  ;;  %4694 = vmatprep.mubr.msk.f32.mxu0 %vm5215_vm0, %v5214_v4 }
0x2979   :  { %4927 = vmatprep.subr.bf16.mxu0 %v5213_v3 }
0x297a   :  { %v3682_v57 = vpop.permute.xlu1 %3681 }
0x297b   :  { %v6051_v58 = vadd.f32 %v3682_v57, %v3674_v56 }
0x297c   :  { %4929 = vmatpush3.bf16.msra.mxu0 %v4928_v11 }
0x297d   :  { %5195 = vtanh.f32 %v6051_v58 }
0x297f   :  { %4695 = vmatmul.mubr.msk.f32.vlgmr.msra.gmra.mrb[52].mxu0 %vm68_vm1, %v3908_v48 }
0x2987   :  { %v5196_v59 = vpop.eup %5195 }
0x2988   :  { %3687 = vrot.lane.b32.xlu0 %v5196_v59, %s5216_s0 }
0x29fa   :  { %v3688_v62 = vpop.permute.xlu0 %3687 }
0x29fb   :  { %v3690_v60 = vmul.f32 %v5194_v42, %v3688_v62  ;;  %v4163_v42 = vld [vmem:[#allocation6] ss:$0 sm:$0xff] }
0x29fd   :  { %3697 = vrot.lane.b32.xlu1 %v3690_v60, %s5217_s2 }
0x2a4a   :  { %v3770_v5 = vpop.f32.mrb[50].mxu0 }
0x2a4b   :  { %v3774_v7 = vadd.f32 %v3770_v5, %v2237_v19  ;;  %v4674_v9 = vpop.f32.mrb[51].mxu0 }
0x2a4d   :  { %5197 = vtanh.f32 %v3774_v7  ;;  %v4159_v53 = vmul.f32 -1.442695, %v3774_v7 }
0x2a4f   :  { %5199 = vpow2.f32 %v4159_v53 }
0x2a52   :  { %v6059_v12 = vpop.f32.mrb[52].mxu0 }
0x2a53   :  { %v4696_v10 = vpop.f32.mrb[53].mxu0 }
0x2a57   :  { %v5198_v14 = vpop.eup %5197 }
0x2a58   :  { %3858 = vrot.lane.b32.xlu0 %v5198_v14, %s5216_s0 }
0x2a59   :  { %v5200_v27 = vpop.eup %5199 }
0x2a5a   :  { %v3852_v1 = vadd.f32 1.0, %v5200_v27 }
0x2a5c   :  { %5201 = vrcp.f32 %v3852_v1 }
0x2a66   :  { %v5202_v17 = vpop.eup %5201 }
0x2a67   :  { %v3856_v38 = vmul.f32 %v5202_v17, %v6024_v25 }
0x2a6f   :  { %v3698_v16 = vpop.permute.xlu1 %3697 }
0x2a70   :  { %3700 = vst.msk [vmem:[#allocation5 + $0x8] sm:$0xff] %vm68_vm1, %v3698_v16  ;;  %4684 = vmatmul.mubr.msk.f32.vlgmr.msra.gmra.mrb[42].mxu1 %vm68_vm1, %v3698_v16 }
0x2a71   :  { %4705 = vmatprep.mubr.msk.f32.mxu1 %vm5215_vm0, %v5214_v4  ;;  %4932 = vmatpush3.bf16.msra.mxu1 %v4931_v21 }
0x2a72   :  { %4933 = vmatprep.subr.bf16.mxu1 %v5213_v3 }
0x2a75   :  { %4935 = vmatpush3.bf16.msra.mxu1 %v4934_v22 }
0x2aca   :  { %v3859_v49 = vpop.permute.xlu0 %3858 }
0x2acb   :  { %v3861_v35 = vmul.f32 %v5202_v17, %v3859_v49 }
0x2acd   :  { %3863 = vrot.lane.b32.xlu1 %v3861_v35, %s5217_s2 }
0x2b3f   :  { %v3864_v47 = vpop.permute.xlu1 %3863 }
0x2b40   :  { %v3866_v18 = vadd.f32 %v3864_v47, %v3856_v38 }
0x2b42   :  { %5203 = vtanh.f32 %v3866_v18 }
0x2b43   :  { %v3844_v46 = vpop.f32.mrb[42].mxu1 }
0x2b44   :  { %v3848_v4 = vadd.f32 %v3844_v46, %v2224_v43  ;;  %v4685_v61 = vpop.f32.mrb[43].mxu1 }
0x2b46   :  { %5205 = vtanh.f32 %v3848_v4  ;;  %v4160_v50 = vmul.f32 -1.442695, %v3848_v4 }
0x2b48   :  { %5207 = vpow2.f32 %v4160_v50 }
0x2b4c   :  { %v5204_v54 = vpop.eup %5203 }
0x2b4d   :  { %3869 = vrot.lane.b32.xlu0 %v5204_v54, %s5216_s0 }
0x2b50   :  { %v5206_v20 = vpop.eup %5205 }
0x2b51   :  { %3882 = vrot.lane.b32.xlu0 %v5206_v20, %s5216_s0 }
0x2b52   :  { %v5208_v52 = vpop.eup %5207 }
0x2b53   :  { %v3876_v63 = vadd.f32 1.0, %v5208_v52 }
0x2b55   :  { %5209 = vrcp.f32 %v3876_v63 }
0x2b5f   :  { %v5210_v25 = vpop.eup %5209 }
0x2b60   :  { %v3880_v28 = vmul.f32 %v5210_v25, %v6051_v58 }
0x2bbf   :  { %v3870_v26 = vpop.permute.xlu0 %3869 }
0x2bc0   :  { %v3872_v24 = vmul.f32 %v5202_v17, %v3870_v26 }
0x2bc2   :  { %3898 = vrot.lane.b32.xlu1 %v3872_v24, %s5217_s2 }
0x2bc3   :  { %v3883_v23 = vpop.permute.xlu0 %3882 }
0x2bc4   :  { %v3885_v36 = vmul.f32 %v5210_v25, %v3883_v23 }
0x2bc6   :  { %3887 = vrot.lane.b32.xlu1 %v3885_v36, %s5217_s2 }
0x2c34   :  { %v3899_v3 = vpop.permute.xlu1 %3898 }
0x2c35   :  { %3901 = vst.msk [vmem:[#allocation4 + $0x38] sm:$0xff] %vm68_vm1, %v3899_v3 }
0x2c38   :  { %v3888_v29 = vpop.permute.xlu1 %3887 }
0x2c39   :  { %v3890_v15 = vadd.f32 %v3888_v29, %v3880_v28 }
0x2c3b   :  { %5211 = vtanh.f32 %v3890_v15 }
0x2c3c   :  { %v3907_v30 = vld [vmem:[#allocation4 + $0x38] sm:$0xff] }
0x2c3d   :  { %4706 = vmatmul.mubr.msk.f32.vlgmr.msra.gmra.mrb[44].mxu1 %vm68_vm1, %v3907_v30 }
0x2c45   :  { %v5212_v32 = vpop.eup %5211 }
0x2c46   :  { %3893 = vrot.lane.b32.xlu0 %v5212_v32, %s5216_s0 }
0x2cb8   :  { %v3894_v2 = vpop.permute.xlu0 %3893 }
0x2cb9   :  { %v3896_v33 = vmul.f32 %v5210_v25, %v3894_v2 }
0x2cbb   :  { %3903 = vrot.lane.b32.xlu1 %v3896_v33, %s5217_s2 }
0x2d10   :  { %v4059_v45 = vpop.f32.mrb[44].mxu1 }
0x2d11   :  { %v4060_v51 = vadd.f32 %v4059_v45, %v6059_v12  ;;  %v4707_v8 = vpop.f32.mrb[45].mxu1 }
0x2d13   :  { %v4070_v34 = vadd.f32 %v4163_v42, %v4060_v51 }
0x2d15   :  { %4072 = vst.msk [vmem:[%s6111_s11] sm:$0xff] %vm4071_vm2, %v4070_v34 }
0x2d2d   :  { %v3904_v39 = vpop.permute.xlu1 %3903 }
0x2d2e   :  { %3906 = vst.msk [vmem:[#allocation5] sm:$0xff] %vm68_vm1, %v3904_v39 }

</bundles_post_ra>
